<compile_context>
chip_gen: v7x
topology: tpu7x:2x2x1
jax: 0.10.0
libtpu: 0.0.40
codegen_flags: <defaults>
</compile_context>

<pallas_src>
from collections import deque

import numpy as np
import jax
import jax.numpy as jnp
from jax.experimental import pallas as pl
from jax.experimental.pallas import tpu as pltpu


def _spinn_tree_lstm_kernel(
    lidx_ref,    # VMEM (D, N, 1) int32   left-child stack row (-1 = leaf / shift)
    ridx_ref,    # VMEM (D, N, 1) int32   right-child stack row (-1 = leaf / shift)
    labels_ref,  # VMEM (D*N, H)  bf16    embedded node labels, flattened over (step, batch)
    wx_ref,      # VMEM (H, 5H)   bf16    x-projection weights
    wlr_ref,     # VMEM (2H, 5H)  bf16    [Wl; Wr] child-projection weights
    b_ref,       # VMEM (1, 5H)   f32     bias
    out_c_ref,   # VMEM (N, H)    f32     cells_stack[D-1]
    out_h_ref,   # VMEM (N, H)    f32     embeddings_stack[D-1]
    zx,          # VMEM scratch (D*N, 5H) f32  hoisted x-projection
):
    D = lidx_ref.shape[0]
    N, H = out_h_ref.shape

    # Hoisted x-projection: one parallel bf16 MXU matmul for all D*N nodes, f32
    # accumulation.  No recurrence dependency -> off the serial critical path (the
    # LLO scheduler is free to overlap it with the first steps of the loop below).
    zx[...] = (jnp.dot(labels_ref[...], wx_ref[...],
                       preferred_element_type=jnp.float32) + b_ref[...])

    # Pushed rows kept as live values across the fully-unrolled static loop
    # (thin stacks are never materialized; output only needs row D-1).
    hs = []
    cs = []

    for step in range(D):
        z = zx[pl.ds(step * N, N), :]                       # (N, 5H) f32

        if step >= 2:
            # Masked gather of the popped children.  Child rows are always < step
            # (triangular), so only loop over rows pushed so far.  -1 (shift/leaf,
            # incl. padded batch columns) matches nothing -> zeros == leaf_input.
            lsel = lidx_ref[step]                           # (N, 1) int32
            rsel = ridx_ref[step]                           # (N, 1) int32
            h_l = jnp.zeros((N, H), jnp.float32)
            c_l = jnp.zeros((N, H), jnp.float32)
            h_r = jnp.zeros((N, H), jnp.float32)
            c_r = jnp.zeros((N, H), jnp.float32)
            for j in range(step):
                ml = (lsel == j).astype(jnp.float32)        # (N, 1) lane-broadcast mask
                mr = (rsel == j).astype(jnp.float32)
                h_l = h_l + ml * hs[j]
                c_l = c_l + ml * cs[j]
                h_r = h_r + mr * hs[j]
                c_r = c_r + mr * cs[j]

            # Single merged child projection: K = 2H uses the full 256-deep MXU on
            # v6e/v7x in one pass; bf16 operands, f32 accumulation.
            hlr = jnp.concatenate([h_l, h_r], axis=-1).astype(jnp.bfloat16)
            z = z + jnp.dot(hlr, wlr_ref[...],
                            preferred_element_type=jnp.float32)

        # Fused gate transcendentals: one sigmoid over 4H lanes + one tanh over H.
        gates = jax.nn.sigmoid(z[:, : 4 * H])
        u_g = jnp.tanh(z[:, 4 * H:])
        i_g = gates[:, 0 * H:1 * H]
        o_g = gates[:, 3 * H:4 * H]

        if step >= 2:
            f_l = gates[:, 1 * H:2 * H]
            f_r = gates[:, 2 * H:3 * H]
            c = i_g * u_g + f_l * c_l + f_r * c_r
        else:
            # Steps 0/1 are structurally shift-only: children are leaf_input (zeros).
            c = i_g * u_g
        h = o_g * jnp.tanh(c)

        hs.append(h)
        cs.append(c)

    # Spinn output: (cells_stack[D-1], embeddings_stack[D-1]).
    out_c_ref[...] = cs[D - 1]
    out_h_ref[...] = hs[D - 1]


def spinn_tree_lstm_forward(transitions, label_ids, embedding, W, b):
    """Pallas emulation of Spinn.forward / EmulatedBinaryTreeLSTM.forward.

    transitions: (D, N) int32, 1 = reduce, 0 = shift
    label_ids:   (D, N) int32, indices into `embedding` (row 0 = padding)
    embedding:   (V, H) float32
    W:           (3H, 5H) float32  (rows: [x | h_left | h_right])
    b:           (5H,) float32
    returns (cells_stack[D-1], embeddings_stack[D-1]), each (N, H)

    NOTE: the deque bookkeeping consumes `transitions` as concrete host data, so this
    wrapper cannot be jit-ted with `transitions` as a traced argument (API constraint,
    matching the data-dependent Python control flow of the PyTorch original).
    """
    D, N = transitions.shape
    H = embedding.shape[1]
    N_pad = int(-(-N // 8) * 8)          # pad batch to sublane width

    # Host-side emulation of _get_indices / active_pointers: 'right' is popped first,
    # then 'left', exactly as in the PyTorch host control flow.
    t_np = np.asarray(transitions)
    left_idx = np.full((D, N_pad), -1, dtype=np.int32)
    right_idx = np.full((D, N_pad), -1, dtype=np.int32)
    ptrs = [deque() for _ in range(N)]
    for step in range(D):
        for i in range(N):
            if t_np[step, i] != 0:
                right_idx[step, i] = ptrs[i].pop()
                left_idx[step, i] = ptrs[i].pop()
        for i in range(N):
            ptrs[i].append(step)

    lidx = jnp.asarray(left_idx).reshape(D, N_pad, 1)
    ridx = jnp.asarray(right_idx).reshape(D, N_pad, 1)

    # nn.Embedding lookup (plain-JAX glue).  Padded batch columns (N..N_pad) use
    # padding row 0 and lidx/ridx = -1: they compute bias-only garbage that is never
    # gathered by real columns and is sliced off below -- do NOT read those rows.
    ids_pad = jnp.zeros((D, N_pad), jnp.int32).at[:, :N].set(label_ids)
    labels_flat = embedding[ids_pad].reshape(D * N_pad, H).astype(jnp.bfloat16)

    Wx = W[:H].astype(jnp.bfloat16)            # (H, 5H)
    W_lr = W[H:3 * H].astype(jnp.bfloat16)     # (2H, 5H) = [Wl; Wr]
    b2 = b.reshape(1, 5 * H).astype(jnp.float32)

    # VMEM scaling guard: everything is resident in one invocation.  v7x has only
    # 64 MiB physical (32 MiB default scoped) VMEM vs 128 MiB on v5e/v6e; if H or
    # D*N grow, tile zx / the 5H dim with a grid axis instead of raising the limit.
    est_vmem_bytes = (
        2 * D * N_pad * 128 * 4          # lidx, ridx (lane-padded)
        + D * N_pad * H * 2              # labels (bf16)
        + H * 5 * H * 2                  # Wx (bf16)
        + 2 * H * 5 * H * 2              # W_lr (bf16)
        + 5 * H * 4                      # bias
        + 2 * N_pad * H * 4              # outputs
        + D * N_pad * 5 * H * 4          # zx scratch
    )
    assert est_vmem_bytes < 24 * 1024 * 1024, (
        f"all-resident SPINN kernel needs ~{est_vmem_bytes} B VMEM; re-tile for v7x")

    vmem = pltpu.MemorySpace.VMEM
    out_c, out_h = pl.pallas_call(
        _spinn_tree_lstm_kernel,
        out_shape=(
            jax.ShapeDtypeStruct((N_pad, H), jnp.float32),
            jax.ShapeDtypeStruct((N_pad, H), jnp.float32),
        ),
        in_specs=[pl.BlockSpec(memory_space=vmem)] * 6,
        out_specs=(
            pl.BlockSpec(memory_space=vmem),
            pl.BlockSpec(memory_space=vmem),
        ),
        scratch_shapes=[
            pltpu.VMEM((D * N_pad, 5 * H), jnp.float32),   # zx (hoisted x-projection)
        ],
        compiler_params=pltpu.CompilerParams(
            vmem_limit_bytes=32 * 1024 * 1024),
    )(lidx, ridx, labels_flat, Wx, W_lr, b2)

    return out_c[:N], out_h[:N]


def _reference(transitions, label_ids, embedding, W, b):
    """Pure-numpy reimplementation of Spinn.forward for verification."""
    t = np.asarray(transitions)
    ids = np.asarray(label_ids)
    emb = np.asarray(embedding)
    Wn = np.asarray(W)
    bn = np.asarray(b)
    D, N = t.shape
    H = emb.shape[1]
    stack_h = np.zeros((D, N, H), np.float32)
    stack_c = np.zeros((D, N, H), np.float32)
    ptrs = [deque() for _ in range(N)]

    def sig(x):
        return 1.0 / (1.0 + np.exp(-x))

    for step in range(D):
        hl = np.zeros((N, H), np.float32); hr = np.zeros((N, H), np.float32)
        cl = np.zeros((N, H), np.float32); cr = np.zeros((N, H), np.float32)
        for i in range(N):
            if t[step, i] != 0:
                ri = ptrs[i].pop(); li = ptrs[i].pop()
                hr[i] = stack_h[ri, i]; cr[i] = stack_c[ri, i]
                hl[i] = stack_h[li, i]; cl[i] = stack_c[li, i]
        x = emb[ids[step]]
        z = np.concatenate([x, hl, hr], axis=-1) @ Wn + bn
        i_g = sig(z[:, 0 * H:1 * H]); f_l = sig(z[:, 1 * H:2 * H]); f_r = sig(z[:, 2 * H:3 * H])
        o_g = sig(z[:, 3 * H:4 * H]); u_g = np.tanh(z[:, 4 * H:5 * H])
        c = i_g * u_g + f_l * cl + f_r * cr
        h = o_g * np.tanh(c)
        stack_h[step] = h
        stack_c[step] = c
        for i in range(N):
            ptrs[i].append(step)
    return stack_c[D - 1], stack_h[D - 1]


if __name__ == "__main__":
    H = 128   # h_dim (== label_dim: EmulatedBinaryTreeLSTM builds Spinn(h_dim, h_dim, ...))
    V = 50    # lexicon_size
    D = 7     # shift/reduce steps (4-leaf binary trees: 4 shifts + 3 reduces)
    N = 2     # batch of trees

    # TODO(synk): Tree -> shift/reduce conversion (binary_tree_to_sr / sr_to_tensor /
    # as_batch) operates on Python Tree objects and has no tensor equivalent; two
    # synthetic shift/reduce sequences are constructed directly instead.
    transitions = jnp.array(
        [[0, 0],
         [0, 0],
         [1, 0],
         [0, 0],
         [1, 1],
         [0, 1],
         [1, 1]], dtype=jnp.int32)

    key = jax.random.PRNGKey(0)
    k_emb, k_w, k_b, k_ids = jax.random.split(key, 4)

    # leaf tokens on shift steps, padding index 0 on reduce steps
    label_ids = jnp.where(
        transitions == 0,
        jax.random.randint(k_ids, (D, N), 1, V, dtype=jnp.int32),
        jnp.zeros((D, N), jnp.int32)).astype(jnp.int32)

    embedding = (jax.random.normal(k_emb, (V, H), jnp.float32) * 0.1).at[0].set(0.0)  # padding_idx=0
    W = jax.random.normal(k_w, (3 * H, 5 * H), jnp.float32) * (1.0 / np.sqrt(3 * H))
    b = jax.random.normal(k_b, (5 * H,), jnp.float32) * 0.01

    out_c, out_h = spinn_tree_lstm_forward(transitions, label_ids, embedding, W, b)
    jax.block_until_ready((out_c, out_h))

    ref_c, ref_h = _reference(transitions, label_ids, embedding, W, b)
    # 5e-3 tolerance: bf16 MXU operands (weights / labels / children) with f32
    # accumulation vs. the full-f32 numpy reference.
    np.testing.assert_allclose(np.asarray(out_c), ref_c, atol=5e-3, rtol=5e-3)
    np.testing.assert_allclose(np.asarray(out_h), ref_h, atol=5e-3, rtol=5e-3)
    print("KERNEL_OK")
</pallas_src>

<mosaic_0001>
module attributes {stable_mosaic.version = 11 : i64} {
  func.func @_spinn_tree_lstm_kernel(%arg0: memref<7x8x1xi32, #tpu.memory_space<vmem>>, %arg1: memref<7x8x1xi32, #tpu.memory_space<vmem>>, %arg2: memref<56x128xbf16, #tpu.memory_space<vmem>>, %arg3: memref<128x640xbf16, #tpu.memory_space<vmem>>, %arg4: memref<256x640xbf16, #tpu.memory_space<vmem>>, %arg5: memref<1x640xf32, #tpu.memory_space<vmem>>, %arg6: memref<8x128xf32, #tpu.memory_space<vmem>>, %arg7: memref<8x128xf32, #tpu.memory_space<vmem>>, %arg8: memref<56x640xf32, #tpu.memory_space<vmem>>) attributes {dimension_semantics = [], scalar_prefetch = 0 : i64, scratch_operands = 1 : i64, tpu.core_type = #tpu.core_type<tc>} {
    %c0 = arith.constant 0 : index
    %c0_0 = arith.constant 0 : index
    %0 = vector.load %arg2[%c0, %c0_0] : memref<56x128xbf16, #tpu.memory_space<vmem>>, vector<56x128xbf16>
    %c0_1 = arith.constant 0 : index
    %c0_2 = arith.constant 0 : index
    %1 = vector.load %arg3[%c0_1, %c0_2] : memref<128x640xbf16, #tpu.memory_space<vmem>>, vector<128x640xbf16>
    %cst = arith.constant dense<0.000000e+00> : vector<56x640xf32>
    %2 = tpu.matmul %0, %1, %cst {dimension_numbers = #tpu.dot_dimension_numbers<[1], [0], [0], [1], [0, 0, 1, 1], [], []>} : vector<56x128xbf16>, vector<128x640xbf16>, vector<56x640xf32> -> vector<56x640xf32>
    %c0_3 = arith.constant 0 : index
    %c0_4 = arith.constant 0 : index
    %3 = vector.load %arg5[%c0_3, %c0_4] : memref<1x640xf32, #tpu.memory_space<vmem>>, vector<1x640xf32>
    %4 = vector.broadcast %3 : vector<1x640xf32> to vector<56x640xf32>
    %5 = arith.addf %2, %4 : vector<56x640xf32>
    %c0_5 = arith.constant 0 : index
    %c0_6 = arith.constant 0 : index
    %6 = vector.load %arg8[%c0_5, %c0_6] : memref<56x640xf32, #tpu.memory_space<vmem>>, vector<56x640xf32>
    tpu.vector_store %arg8[%c0_5, %c0_6], %5 {strides = array<i32>} : memref<56x640xf32, #tpu.memory_space<vmem>>, vector<56x640xf32>,
    %c0_7 = arith.constant 0 : index
    %c0_8 = arith.constant 0 : index
    %7 = vector.load %arg8[%c0_7, %c0_8] : memref<56x640xf32, #tpu.memory_space<vmem>>, vector<8x640xf32>
    %8 = vector.extract_strided_slice %7 {offsets = [0, 0], sizes = [8, 512], strides = [1, 1]} : vector<8x640xf32> to vector<8x512xf32>
    %9 = arith.negf %8 : vector<8x512xf32>
    %10 = math.exp %9 : vector<8x512xf32>
    %cst_9 = arith.constant 1.000000e+00 : f32
    %11 = vector.broadcast %cst_9 : f32 to vector<8x512xf32>
    %12 = arith.addf %11, %10 : vector<8x512xf32>
    %13 = arith.divf %11, %12 : vector<8x512xf32>
    %14 = vector.extract_strided_slice %7 {offsets = [0, 512], sizes = [8, 128], strides = [1, 1]} : vector<8x640xf32> to vector<8x128xf32>
    %15 = math.tanh %14 : vector<8x128xf32>
    %16 = vector.extract_strided_slice %13 {offsets = [0, 0], sizes = [8, 128], strides = [1, 1]} : vector<8x512xf32> to vector<8x128xf32>
    %17 = vector.extract_strided_slice %13 {offsets = [0, 384], sizes = [8, 128], strides = [1, 1]} : vector<8x512xf32> to vector<8x128xf32>
    %18 = arith.mulf %16, %15 : vector<8x128xf32>
    %19 = math.tanh %18 : vector<8x128xf32>
    %20 = arith.mulf %17, %19 : vector<8x128xf32>
    %c8 = arith.constant 8 : index
    %c0_10 = arith.constant 0 : index
    %21 = vector.load %arg8[%c8, %c0_10] : memref<56x640xf32, #tpu.memory_space<vmem>>, vector<8x640xf32>
    %22 = vector.extract_strided_slice %21 {offsets = [0, 0], sizes = [8, 512], strides = [1, 1]} : vector<8x640xf32> to vector<8x512xf32>
    %23 = arith.negf %22 : vector<8x512xf32>
    %24 = math.exp %23 : vector<8x512xf32>
    %cst_11 = arith.constant 1.000000e+00 : f32
    %25 = vector.broadcast %cst_11 : f32 to vector<8x512xf32>
    %26 = arith.addf %25, %24 : vector<8x512xf32>
    %27 = arith.divf %25, %26 : vector<8x512xf32>
    %28 = vector.extract_strided_slice %21 {offsets = [0, 512], sizes = [8, 128], strides = [1, 1]} : vector<8x640xf32> to vector<8x128xf32>
    %29 = math.tanh %28 : vector<8x128xf32>
    %30 = vector.extract_strided_slice %27 {offsets = [0, 0], sizes = [8, 128], strides = [1, 1]} : vector<8x512xf32> to vector<8x128xf32>
    %31 = vector.extract_strided_slice %27 {offsets = [0, 384], sizes = [8, 128], strides = [1, 1]} : vector<8x512xf32> to vector<8x128xf32>
    %32 = arith.mulf %30, %29 : vector<8x128xf32>
    %33 = math.tanh %32 : vector<8x128xf32>
    %34 = arith.mulf %31, %33 : vector<8x128xf32>
    %c16 = arith.constant 16 : index
    %c0_12 = arith.constant 0 : index
    %35 = vector.load %arg8[%c16, %c0_12] : memref<56x640xf32, #tpu.memory_space<vmem>>, vector<8x640xf32>
    %c2 = arith.constant 2 : index
    %c0_13 = arith.constant 0 : index
    %c0_14 = arith.constant 0 : index
    %36 = vector.load %arg0[%c2, %c0_13, %c0_14] : memref<7x8x1xi32, #tpu.memory_space<vmem>>, vector<1x8x1xi32>
    %37 = vector.shape_cast %36 : vector<1x8x1xi32> to vector<8x1xi32>
    %c2_15 = arith.constant 2 : index
    %c0_16 = arith.constant 0 : index
    %c0_17 = arith.constant 0 : index
    %38 = vector.load %arg1[%c2_15, %c0_16, %c0_17] : memref<7x8x1xi32, #tpu.memory_space<vmem>>, vector<1x8x1xi32>
    %39 = vector.shape_cast %38 : vector<1x8x1xi32> to vector<8x1xi32>
    %cst_18 = arith.constant 0.000000e+00 : f32
    %40 = vector.broadcast %cst_18 : f32 to vector<8x128xf32>
    %cst_19 = arith.constant 0.000000e+00 : f32
    %41 = vector.broadcast %cst_19 : f32 to vector<8x128xf32>
    %cst_20 = arith.constant 0.000000e+00 : f32
    %42 = vector.broadcast %cst_20 : f32 to vector<8x128xf32>
    %cst_21 = arith.constant 0.000000e+00 : f32
    %43 = vector.broadcast %cst_21 : f32 to vector<8x128xf32>
    %c0_i32 = arith.constant 0 : i32
    %44 = vector.broadcast %c0_i32 : i32 to vector<8x1xi32>
    %45 = arith.cmpi eq, %37, %44 : vector<8x1xi32>
    %46 = arith.extui %45 : vector<8x1xi1> to vector<8x1xi32>
    %47 = arith.sitofp %46 : vector<8x1xi32> to vector<8x1xf32>
    %c0_i32_22 = arith.constant 0 : i32
    %48 = vector.broadcast %c0_i32_22 : i32 to vector<8x1xi32>
    %49 = arith.cmpi eq, %39, %48 : vector<8x1xi32>
    %50 = arith.extui %49 : vector<8x1xi1> to vector<8x1xi32>
    %51 = arith.sitofp %50 : vector<8x1xi32> to vector<8x1xf32>
    %52 = vector.broadcast %47 : vector<8x1xf32> to vector<8x128xf32>
    %53 = arith.mulf %52, %20 : vector<8x128xf32>
    %54 = arith.addf %40, %53 : vector<8x128xf32>
    %55 = vector.broadcast %47 : vector<8x1xf32> to vector<8x128xf32>
    %56 = arith.mulf %55, %18 : vector<8x128xf32>
    %57 = arith.addf %41, %56 : vector<8x128xf32>
    %58 = vector.broadcast %51 : vector<8x1xf32> to vector<8x128xf32>
    %59 = arith.mulf %58, %20 : vector<8x128xf32>
    %60 = arith.addf %42, %59 : vector<8x128xf32>
    %61 = vector.broadcast %51 : vector<8x1xf32> to vector<8x128xf32>
    %62 = arith.mulf %61, %18 : vector<8x128xf32>
    %63 = arith.addf %43, %62 : vector<8x128xf32>
    %c1_i32 = arith.constant 1 : i32
    %64 = vector.broadcast %c1_i32 : i32 to vector<8x1xi32>
    %65 = arith.cmpi eq, %37, %64 : vector<8x1xi32>
    %66 = arith.extui %65 : vector<8x1xi1> to vector<8x1xi32>
    %67 = arith.sitofp %66 : vector<8x1xi32> to vector<8x1xf32>
    %c1_i32_23 = arith.constant 1 : i32
    %68 = vector.broadcast %c1_i32_23 : i32 to vector<8x1xi32>
    %69 = arith.cmpi eq, %39, %68 : vector<8x1xi32>
    %70 = arith.extui %69 : vector<8x1xi1> to vector<8x1xi32>
    %71 = arith.sitofp %70 : vector<8x1xi32> to vector<8x1xf32>
    %72 = vector.broadcast %67 : vector<8x1xf32> to vector<8x128xf32>
    %73 = arith.mulf %72, %34 : vector<8x128xf32>
    %74 = arith.addf %54, %73 : vector<8x128xf32>
    %75 = vector.broadcast %67 : vector<8x1xf32> to vector<8x128xf32>
    %76 = arith.mulf %75, %32 : vector<8x128xf32>
    %77 = arith.addf %57, %76 : vector<8x128xf32>
    %78 = vector.broadcast %71 : vector<8x1xf32> to vector<8x128xf32>
    %79 = arith.mulf %78, %34 : vector<8x128xf32>
    %80 = arith.addf %60, %79 : vector<8x128xf32>
    %81 = vector.broadcast %71 : vector<8x1xf32> to vector<8x128xf32>
    %82 = arith.mulf %81, %32 : vector<8x128xf32>
    %83 = arith.addf %63, %82 : vector<8x128xf32>
    %84 = tpu.concatenate %74, %80 in 1 : vector<8x128xf32>, vector<8x128xf32> -> vector<8x256xf32>
    %85 = arith.truncf %84 : vector<8x256xf32> to vector<8x256xbf16>
    %c0_24 = arith.constant 0 : index
    %c0_25 = arith.constant 0 : index
    %86 = vector.load %arg4[%c0_24, %c0_25] : memref<256x640xbf16, #tpu.memory_space<vmem>>, vector<256x640xbf16>
    %cst_26 = arith.constant dense<0.000000e+00> : vector<8x640xf32>
    %87 = tpu.matmul %85, %86, %cst_26 {dimension_numbers = #tpu.dot_dimension_numbers<[1], [0], [0], [1], [0, 0, 1, 1], [], []>} : vector<8x256xbf16>, vector<256x640xbf16>, vector<8x640xf32> -> vector<8x640xf32>
    %88 = arith.addf %35, %87 : vector<8x640xf32>
    %89 = vector.extract_strided_slice %88 {offsets = [0, 0], sizes = [8, 512], strides = [1, 1]} : vector<8x640xf32> to vector<8x512xf32>
    %90 = arith.negf %89 : vector<8x512xf32>
    %91 = math.exp %90 : vector<8x512xf32>
    %cst_27 = arith.constant 1.000000e+00 : f32
    %92 = vector.broadcast %cst_27 : f32 to vector<8x512xf32>
    %93 = arith.addf %92, %91 : vector<8x512xf32>
    %94 = arith.divf %92, %93 : vector<8x512xf32>
    %95 = vector.extract_strided_slice %88 {offsets = [0, 512], sizes = [8, 128], strides = [1, 1]} : vector<8x640xf32> to vector<8x128xf32>
    %96 = math.tanh %95 : vector<8x128xf32>
    %97 = vector.extract_strided_slice %94 {offsets = [0, 0], sizes = [8, 128], strides = [1, 1]} : vector<8x512xf32> to vector<8x128xf32>
    %98 = vector.extract_strided_slice %94 {offsets = [0, 384], sizes = [8, 128], strides = [1, 1]} : vector<8x512xf32> to vector<8x128xf32>
    %99 = vector.extract_strided_slice %94 {offsets = [0, 128], sizes = [8, 128], strides = [1, 1]} : vector<8x512xf32> to vector<8x128xf32>
    %100 = vector.extract_strided_slice %94 {offsets = [0, 256], sizes = [8, 128], strides = [1, 1]} : vector<8x512xf32> to vector<8x128xf32>
    %101 = arith.mulf %97, %96 : vector<8x128xf32>
    %102 = arith.mulf %99, %77 : vector<8x128xf32>
    %103 = arith.addf %101, %102 : vector<8x128xf32>
    %104 = arith.mulf %100, %83 : vector<8x128xf32>
    %105 = arith.addf %103, %104 : vector<8x128xf32>
    %106 = math.tanh %105 : vector<8x128xf32>
    %107 = arith.mulf %98, %106 : vector<8x128xf32>
    %c24 = arith.constant 24 : index
    %c0_28 = arith.constant 0 : index
    %108 = vector.load %arg8[%c24, %c0_28] : memref<56x640xf32, #tpu.memory_space<vmem>>, vector<8x640xf32>
    %c3 = arith.constant 3 : index
    %c0_29 = arith.constant 0 : index
    %c0_30 = arith.constant 0 : index
    %109 = vector.load %arg0[%c3, %c0_29, %c0_30] : memref<7x8x1xi32, #tpu.memory_space<vmem>>, vector<1x8x1xi32>
    %110 = vector.shape_cast %109 : vector<1x8x1xi32> to vector<8x1xi32>
    %c3_31 = arith.constant 3 : index
    %c0_32 = arith.constant 0 : index
    %c0_33 = arith.constant 0 : index
    %111 = vector.load %arg1[%c3_31, %c0_32, %c0_33] : memref<7x8x1xi32, #tpu.memory_space<vmem>>, vector<1x8x1xi32>
    %112 = vector.shape_cast %111 : vector<1x8x1xi32> to vector<8x1xi32>
    %cst_34 = arith.constant 0.000000e+00 : f32
    %113 = vector.broadcast %cst_34 : f32 to vector<8x128xf32>
    %cst_35 = arith.constant 0.000000e+00 : f32
    %114 = vector.broadcast %cst_35 : f32 to vector<8x128xf32>
    %cst_36 = arith.constant 0.000000e+00 : f32
    %115 = vector.broadcast %cst_36 : f32 to vector<8x128xf32>
    %cst_37 = arith.constant 0.000000e+00 : f32
    %116 = vector.broadcast %cst_37 : f32 to vector<8x128xf32>
    %c0_i32_38 = arith.constant 0 : i32
    %117 = vector.broadcast %c0_i32_38 : i32 to vector<8x1xi32>
    %118 = arith.cmpi eq, %110, %117 : vector<8x1xi32>
    %119 = arith.extui %118 : vector<8x1xi1> to vector<8x1xi32>
    %120 = arith.sitofp %119 : vector<8x1xi32> to vector<8x1xf32>
    %c0_i32_39 = arith.constant 0 : i32
    %121 = vector.broadcast %c0_i32_39 : i32 to vector<8x1xi32>
    %122 = arith.cmpi eq, %112, %121 : vector<8x1xi32>
    %123 = arith.extui %122 : vector<8x1xi1> to vector<8x1xi32>
    %124 = arith.sitofp %123 : vector<8x1xi32> to vector<8x1xf32>
    %125 = vector.broadcast %120 : vector<8x1xf32> to vector<8x128xf32>
    %126 = arith.mulf %125, %20 : vector<8x128xf32>
    %127 = arith.addf %113, %126 : vector<8x128xf32>
    %128 = vector.broadcast %120 : vector<8x1xf32> to vector<8x128xf32>
    %129 = arith.mulf %128, %18 : vector<8x128xf32>
    %130 = arith.addf %114, %129 : vector<8x128xf32>
    %131 = vector.broadcast %124 : vector<8x1xf32> to vector<8x128xf32>
    %132 = arith.mulf %131, %20 : vector<8x128xf32>
    %133 = arith.addf %115, %132 : vector<8x128xf32>
    %134 = vector.broadcast %124 : vector<8x1xf32> to vector<8x128xf32>
    %135 = arith.mulf %134, %18 : vector<8x128xf32>
    %136 = arith.addf %116, %135 : vector<8x128xf32>
    %c1_i32_40 = arith.constant 1 : i32
    %137 = vector.broadcast %c1_i32_40 : i32 to vector<8x1xi32>
    %138 = arith.cmpi eq, %110, %137 : vector<8x1xi32>
    %139 = arith.extui %138 : vector<8x1xi1> to vector<8x1xi32>
    %140 = arith.sitofp %139 : vector<8x1xi32> to vector<8x1xf32>
    %c1_i32_41 = arith.constant 1 : i32
    %141 = vector.broadcast %c1_i32_41 : i32 to vector<8x1xi32>
    %142 = arith.cmpi eq, %112, %141 : vector<8x1xi32>
    %143 = arith.extui %142 : vector<8x1xi1> to vector<8x1xi32>
    %144 = arith.sitofp %143 : vector<8x1xi32> to vector<8x1xf32>
    %145 = vector.broadcast %140 : vector<8x1xf32> to vector<8x128xf32>
    %146 = arith.mulf %145, %34 : vector<8x128xf32>
    %147 = arith.addf %127, %146 : vector<8x128xf32>
    %148 = vector.broadcast %140 : vector<8x1xf32> to vector<8x128xf32>
    %149 = arith.mulf %148, %32 : vector<8x128xf32>
    %150 = arith.addf %130, %149 : vector<8x128xf32>
    %151 = vector.broadcast %144 : vector<8x1xf32> to vector<8x128xf32>
    %152 = arith.mulf %151, %34 : vector<8x128xf32>
    %153 = arith.addf %133, %152 : vector<8x128xf32>
    %154 = vector.broadcast %144 : vector<8x1xf32> to vector<8x128xf32>
    %155 = arith.mulf %154, %32 : vector<8x128xf32>
    %156 = arith.addf %136, %155 : vector<8x128xf32>
    %c2_i32 = arith.constant 2 : i32
    %157 = vector.broadcast %c2_i32 : i32 to vector<8x1xi32>
    %158 = arith.cmpi eq, %110, %157 : vector<8x1xi32>
    %159 = arith.extui %158 : vector<8x1xi1> to vector<8x1xi32>
    %160 = arith.sitofp %159 : vector<8x1xi32> to vector<8x1xf32>
    %c2_i32_42 = arith.constant 2 : i32
    %161 = vector.broadcast %c2_i32_42 : i32 to vector<8x1xi32>
    %162 = arith.cmpi eq, %112, %161 : vector<8x1xi32>
    %163 = arith.extui %162 : vector<8x1xi1> to vector<8x1xi32>
    %164 = arith.sitofp %163 : vector<8x1xi32> to vector<8x1xf32>
    %165 = vector.broadcast %160 : vector<8x1xf32> to vector<8x128xf32>
    %166 = arith.mulf %165, %107 : vector<8x128xf32>
    %167 = arith.addf %147, %166 : vector<8x128xf32>
    %168 = vector.broadcast %160 : vector<8x1xf32> to vector<8x128xf32>
    %169 = arith.mulf %168, %105 : vector<8x128xf32>
    %170 = arith.addf %150, %169 : vector<8x128xf32>
    %171 = vector.broadcast %164 : vector<8x1xf32> to vector<8x128xf32>
    %172 = arith.mulf %171, %107 : vector<8x128xf32>
    %173 = arith.addf %153, %172 : vector<8x128xf32>
    %174 = vector.broadcast %164 : vector<8x1xf32> to vector<8x128xf32>
    %175 = arith.mulf %174, %105 : vector<8x128xf32>
    %176 = arith.addf %156, %175 : vector<8x128xf32>
    %177 = tpu.concatenate %167, %173 in 1 : vector<8x128xf32>, vector<8x128xf32> -> vector<8x256xf32>
    %178 = arith.truncf %177 : vector<8x256xf32> to vector<8x256xbf16>
    %c0_43 = arith.constant 0 : index
    %c0_44 = arith.constant 0 : index
    %179 = vector.load %arg4[%c0_43, %c0_44] : memref<256x640xbf16, #tpu.memory_space<vmem>>, vector<256x640xbf16>
    %cst_45 = arith.constant dense<0.000000e+00> : vector<8x640xf32>
    %180 = tpu.matmul %178, %179, %cst_45 {dimension_numbers = #tpu.dot_dimension_numbers<[1], [0], [0], [1], [0, 0, 1, 1], [], []>} : vector<8x256xbf16>, vector<256x640xbf16>, vector<8x640xf32> -> vector<8x640xf32>
    %181 = arith.addf %108, %180 : vector<8x640xf32>
    %182 = vector.extract_strided_slice %181 {offsets = [0, 0], sizes = [8, 512], strides = [1, 1]} : vector<8x640xf32> to vector<8x512xf32>
    %183 = arith.negf %182 : vector<8x512xf32>
    %184 = math.exp %183 : vector<8x512xf32>
    %cst_46 = arith.constant 1.000000e+00 : f32
    %185 = vector.broadcast %cst_46 : f32 to vector<8x512xf32>
    %186 = arith.addf %185, %184 : vector<8x512xf32>
    %187 = arith.divf %185, %186 : vector<8x512xf32>
    %188 = vector.extract_strided_slice %181 {offsets = [0, 512], sizes = [8, 128], strides = [1, 1]} : vector<8x640xf32> to vector<8x128xf32>
    %189 = math.tanh %188 : vector<8x128xf32>
    %190 = vector.extract_strided_slice %187 {offsets = [0, 0], sizes = [8, 128], strides = [1, 1]} : vector<8x512xf32> to vector<8x128xf32>
    %191 = vector.extract_strided_slice %187 {offsets = [0, 384], sizes = [8, 128], strides = [1, 1]} : vector<8x512xf32> to vector<8x128xf32>
    %192 = vector.extract_strided_slice %187 {offsets = [0, 128], sizes = [8, 128], strides = [1, 1]} : vector<8x512xf32> to vector<8x128xf32>
    %193 = vector.extract_strided_slice %187 {offsets = [0, 256], sizes = [8, 128], strides = [1, 1]} : vector<8x512xf32> to vector<8x128xf32>
    %194 = arith.mulf %190, %189 : vector<8x128xf32>
    %195 = arith.mulf %192, %170 : vector<8x128xf32>
    %196 = arith.addf %194, %195 : vector<8x128xf32>
    %197 = arith.mulf %193, %176 : vector<8x128xf32>
    %198 = arith.addf %196, %197 : vector<8x128xf32>
    %199 = math.tanh %198 : vector<8x128xf32>
    %200 = arith.mulf %191, %199 : vector<8x128xf32>
    %c32 = arith.constant 32 : index
    %c0_47 = arith.constant 0 : index
    %201 = vector.load %arg8[%c32, %c0_47] : memref<56x640xf32, #tpu.memory_space<vmem>>, vector<8x640xf32>
    %c4 = arith.constant 4 : index
    %c0_48 = arith.constant 0 : index
    %c0_49 = arith.constant 0 : index
    %202 = vector.load %arg0[%c4, %c0_48, %c0_49] : memref<7x8x1xi32, #tpu.memory_space<vmem>>, vector<1x8x1xi32>
    %203 = vector.shape_cast %202 : vector<1x8x1xi32> to vector<8x1xi32>
    %c4_50 = arith.constant 4 : index
    %c0_51 = arith.constant 0 : index
    %c0_52 = arith.constant 0 : index
    %204 = vector.load %arg1[%c4_50, %c0_51, %c0_52] : memref<7x8x1xi32, #tpu.memory_space<vmem>>, vector<1x8x1xi32>
    %205 = vector.shape_cast %204 : vector<1x8x1xi32> to vector<8x1xi32>
    %cst_53 = arith.constant 0.000000e+00 : f32
    %206 = vector.broadcast %cst_53 : f32 to vector<8x128xf32>
    %cst_54 = arith.constant 0.000000e+00 : f32
    %207 = vector.broadcast %cst_54 : f32 to vector<8x128xf32>
    %cst_55 = arith.constant 0.000000e+00 : f32
    %208 = vector.broadcast %cst_55 : f32 to vector<8x128xf32>
    %cst_56 = arith.constant 0.000000e+00 : f32
    %209 = vector.broadcast %cst_56 : f32 to vector<8x128xf32>
    %c0_i32_57 = arith.constant 0 : i32
    %210 = vector.broadcast %c0_i32_57 : i32 to vector<8x1xi32>
    %211 = arith.cmpi eq, %203, %210 : vector<8x1xi32>
    %212 = arith.extui %211 : vector<8x1xi1> to vector<8x1xi32>
    %213 = arith.sitofp %212 : vector<8x1xi32> to vector<8x1xf32>
    %c0_i32_58 = arith.constant 0 : i32
    %214 = vector.broadcast %c0_i32_58 : i32 to vector<8x1xi32>
    %215 = arith.cmpi eq, %205, %214 : vector<8x1xi32>
    %216 = arith.extui %215 : vector<8x1xi1> to vector<8x1xi32>
    %217 = arith.sitofp %216 : vector<8x1xi32> to vector<8x1xf32>
    %218 = vector.broadcast %213 : vector<8x1xf32> to vector<8x128xf32>
    %219 = arith.mulf %218, %20 : vector<8x128xf32>
    %220 = arith.addf %206, %219 : vector<8x128xf32>
    %221 = vector.broadcast %213 : vector<8x1xf32> to vector<8x128xf32>
    %222 = arith.mulf %221, %18 : vector<8x128xf32>
    %223 = arith.addf %207, %222 : vector<8x128xf32>
    %224 = vector.broadcast %217 : vector<8x1xf32> to vector<8x128xf32>
    %225 = arith.mulf %224, %20 : vector<8x128xf32>
    %226 = arith.addf %208, %225 : vector<8x128xf32>
    %227 = vector.broadcast %217 : vector<8x1xf32> to vector<8x128xf32>
    %228 = arith.mulf %227, %18 : vector<8x128xf32>
    %229 = arith.addf %209, %228 : vector<8x128xf32>
    %c1_i32_59 = arith.constant 1 : i32
    %230 = vector.broadcast %c1_i32_59 : i32 to vector<8x1xi32>
    %231 = arith.cmpi eq, %203, %230 : vector<8x1xi32>
    %232 = arith.extui %231 : vector<8x1xi1> to vector<8x1xi32>
    %233 = arith.sitofp %232 : vector<8x1xi32> to vector<8x1xf32>
    %c1_i32_60 = arith.constant 1 : i32
    %234 = vector.broadcast %c1_i32_60 : i32 to vector<8x1xi32>
    %235 = arith.cmpi eq, %205, %234 : vector<8x1xi32>
    %236 = arith.extui %235 : vector<8x1xi1> to vector<8x1xi32>
    %237 = arith.sitofp %236 : vector<8x1xi32> to vector<8x1xf32>
    %238 = vector.broadcast %233 : vector<8x1xf32> to vector<8x128xf32>
    %239 = arith.mulf %238, %34 : vector<8x128xf32>
    %240 = arith.addf %220, %239 : vector<8x128xf32>
    %241 = vector.broadcast %233 : vector<8x1xf32> to vector<8x128xf32>
    %242 = arith.mulf %241, %32 : vector<8x128xf32>
    %243 = arith.addf %223, %242 : vector<8x128xf32>
    %244 = vector.broadcast %237 : vector<8x1xf32> to vector<8x128xf32>
    %245 = arith.mulf %244, %34 : vector<8x128xf32>
    %246 = arith.addf %226, %245 : vector<8x128xf32>
    %247 = vector.broadcast %237 : vector<8x1xf32> to vector<8x128xf32>
    %248 = arith.mulf %247, %32 : vector<8x128xf32>
    %249 = arith.addf %229, %248 : vector<8x128xf32>
    %c2_i32_61 = arith.constant 2 : i32
    %250 = vector.broadcast %c2_i32_61 : i32 to vector<8x1xi32>
    %251 = arith.cmpi eq, %203, %250 : vector<8x1xi32>
    %252 = arith.extui %251 : vector<8x1xi1> to vector<8x1xi32>
    %253 = arith.sitofp %252 : vector<8x1xi32> to vector<8x1xf32>
    %c2_i32_62 = arith.constant 2 : i32
    %254 = vector.broadcast %c2_i32_62 : i32 to vector<8x1xi32>
    %255 = arith.cmpi eq, %205, %254 : vector<8x1xi32>
    %256 = arith.extui %255 : vector<8x1xi1> to vector<8x1xi32>
    %257 = arith.sitofp %256 : vector<8x1xi32> to vector<8x1xf32>
    %258 = vector.broadcast %253 : vector<8x1xf32> to vector<8x128xf32>
    %259 = arith.mulf %258, %107 : vector<8x128xf32>
    %260 = arith.addf %240, %259 : vector<8x128xf32>
    %261 = vector.broadcast %253 : vector<8x1xf32> to vector<8x128xf32>
    %262 = arith.mulf %261, %105 : vector<8x128xf32>
    %263 = arith.addf %243, %262 : vector<8x128xf32>
    %264 = vector.broadcast %257 : vector<8x1xf32> to vector<8x128xf32>
    %265 = arith.mulf %264, %107 : vector<8x128xf32>
    %266 = arith.addf %246, %265 : vector<8x128xf32>
    %267 = vector.broadcast %257 : vector<8x1xf32> to vector<8x128xf32>
    %268 = arith.mulf %267, %105 : vector<8x128xf32>
    %269 = arith.addf %249, %268 : vector<8x128xf32>
    %c3_i32 = arith.constant 3 : i32
    %270 = vector.broadcast %c3_i32 : i32 to vector<8x1xi32>
    %271 = arith.cmpi eq, %203, %270 : vector<8x1xi32>
    %272 = arith.extui %271 : vector<8x1xi1> to vector<8x1xi32>
    %273 = arith.sitofp %272 : vector<8x1xi32> to vector<8x1xf32>
    %c3_i32_63 = arith.constant 3 : i32
    %274 = vector.broadcast %c3_i32_63 : i32 to vector<8x1xi32>
    %275 = arith.cmpi eq, %205, %274 : vector<8x1xi32>
    %276 = arith.extui %275 : vector<8x1xi1> to vector<8x1xi32>
    %277 = arith.sitofp %276 : vector<8x1xi32> to vector<8x1xf32>
    %278 = vector.broadcast %273 : vector<8x1xf32> to vector<8x128xf32>
    %279 = arith.mulf %278, %200 : vector<8x128xf32>
    %280 = arith.addf %260, %279 : vector<8x128xf32>
    %281 = vector.broadcast %273 : vector<8x1xf32> to vector<8x128xf32>
    %282 = arith.mulf %281, %198 : vector<8x128xf32>
    %283 = arith.addf %263, %282 : vector<8x128xf32>
    %284 = vector.broadcast %277 : vector<8x1xf32> to vector<8x128xf32>
    %285 = arith.mulf %284, %200 : vector<8x128xf32>
    %286 = arith.addf %266, %285 : vector<8x128xf32>
    %287 = vector.broadcast %277 : vector<8x1xf32> to vector<8x128xf32>
    %288 = arith.mulf %287, %198 : vector<8x128xf32>
    %289 = arith.addf %269, %288 : vector<8x128xf32>
    %290 = tpu.concatenate %280, %286 in 1 : vector<8x128xf32>, vector<8x128xf32> -> vector<8x256xf32>
    %291 = arith.truncf %290 : vector<8x256xf32> to vector<8x256xbf16>
    %c0_64 = arith.constant 0 : index
    %c0_65 = arith.constant 0 : index
    %292 = vector.load %arg4[%c0_64, %c0_65] : memref<256x640xbf16, #tpu.memory_space<vmem>>, vector<256x640xbf16>
    %cst_66 = arith.constant dense<0.000000e+00> : vector<8x640xf32>
    %293 = tpu.matmul %291, %292, %cst_66 {dimension_numbers = #tpu.dot_dimension_numbers<[1], [0], [0], [1], [0, 0, 1, 1], [], []>} : vector<8x256xbf16>, vector<256x640xbf16>, vector<8x640xf32> -> vector<8x640xf32>
    %294 = arith.addf %201, %293 : vector<8x640xf32>
    %295 = vector.extract_strided_slice %294 {offsets = [0, 0], sizes = [8, 512], strides = [1, 1]} : vector<8x640xf32> to vector<8x512xf32>
    %296 = arith.negf %295 : vector<8x512xf32>
    %297 = math.exp %296 : vector<8x512xf32>
    %cst_67 = arith.constant 1.000000e+00 : f32
    %298 = vector.broadcast %cst_67 : f32 to vector<8x512xf32>
    %299 = arith.addf %298, %297 : vector<8x512xf32>
    %300 = arith.divf %298, %299 : vector<8x512xf32>
    %301 = vector.extract_strided_slice %294 {offsets = [0, 512], sizes = [8, 128], strides = [1, 1]} : vector<8x640xf32> to vector<8x128xf32>
    %302 = math.tanh %301 : vector<8x128xf32>
    %303 = vector.extract_strided_slice %300 {offsets = [0, 0], sizes = [8, 128], strides = [1, 1]} : vector<8x512xf32> to vector<8x128xf32>
    %304 = vector.extract_strided_slice %300 {offsets = [0, 384], sizes = [8, 128], strides = [1, 1]} : vector<8x512xf32> to vector<8x128xf32>
    %305 = vector.extract_strided_slice %300 {offsets = [0, 128], sizes = [8, 128], strides = [1, 1]} : vector<8x512xf32> to vector<8x128xf32>
    %306 = vector.extract_strided_slice %300 {offsets = [0, 256], sizes = [8, 128], strides = [1, 1]} : vector<8x512xf32> to vector<8x128xf32>
    %307 = arith.mulf %303, %302 : vector<8x128xf32>
    %308 = arith.mulf %305, %283 : vector<8x128xf32>
    %309 = arith.addf %307, %308 : vector<8x128xf32>
    %310 = arith.mulf %306, %289 : vector<8x128xf32>
    %311 = arith.addf %309, %310 : vector<8x128xf32>
    %312 = math.tanh %311 : vector<8x128xf32>
    %313 = arith.mulf %304, %312 : vector<8x128xf32>
    %c40 = arith.constant 40 : index
    %c0_68 = arith.constant 0 : index
    %314 = vector.load %arg8[%c40, %c0_68] : memref<56x640xf32, #tpu.memory_space<vmem>>, vector<8x640xf32>
    %c5 = arith.constant 5 : index
    %c0_69 = arith.constant 0 : index
    %c0_70 = arith.constant 0 : index
    %315 = vector.load %arg0[%c5, %c0_69, %c0_70] : memref<7x8x1xi32, #tpu.memory_space<vmem>>, vector<1x8x1xi32>
    %316 = vector.shape_cast %315 : vector<1x8x1xi32> to vector<8x1xi32>
    %c5_71 = arith.constant 5 : index
    %c0_72 = arith.constant 0 : index
    %c0_73 = arith.constant 0 : index
    %317 = vector.load %arg1[%c5_71, %c0_72, %c0_73] : memref<7x8x1xi32, #tpu.memory_space<vmem>>, vector<1x8x1xi32>
    %318 = vector.shape_cast %317 : vector<1x8x1xi32> to vector<8x1xi32>
    %cst_74 = arith.constant 0.000000e+00 : f32
    %319 = vector.broadcast %cst_74 : f32 to vector<8x128xf32>
    %cst_75 = arith.constant 0.000000e+00 : f32
    %320 = vector.broadcast %cst_75 : f32 to vector<8x128xf32>
    %cst_76 = arith.constant 0.000000e+00 : f32
    %321 = vector.broadcast %cst_76 : f32 to vector<8x128xf32>
    %cst_77 = arith.constant 0.000000e+00 : f32
    %322 = vector.broadcast %cst_77 : f32 to vector<8x128xf32>
    %c0_i32_78 = arith.constant 0 : i32
    %323 = vector.broadcast %c0_i32_78 : i32 to vector<8x1xi32>
    %324 = arith.cmpi eq, %316, %323 : vector<8x1xi32>
    %325 = arith.extui %324 : vector<8x1xi1> to vector<8x1xi32>
    %326 = arith.sitofp %325 : vector<8x1xi32> to vector<8x1xf32>
    %c0_i32_79 = arith.constant 0 : i32
    %327 = vector.broadcast %c0_i32_79 : i32 to vector<8x1xi32>
    %328 = arith.cmpi eq, %318, %327 : vector<8x1xi32>
    %329 = arith.extui %328 : vector<8x1xi1> to vector<8x1xi32>
    %330 = arith.sitofp %329 : vector<8x1xi32> to vector<8x1xf32>
    %331 = vector.broadcast %326 : vector<8x1xf32> to vector<8x128xf32>
    %332 = arith.mulf %331, %20 : vector<8x128xf32>
    %333 = arith.addf %319, %332 : vector<8x128xf32>
    %334 = vector.broadcast %326 : vector<8x1xf32> to vector<8x128xf32>
    %335 = arith.mulf %334, %18 : vector<8x128xf32>
    %336 = arith.addf %320, %335 : vector<8x128xf32>
    %337 = vector.broadcast %330 : vector<8x1xf32> to vector<8x128xf32>
    %338 = arith.mulf %337, %20 : vector<8x128xf32>
    %339 = arith.addf %321, %338 : vector<8x128xf32>
    %340 = vector.broadcast %330 : vector<8x1xf32> to vector<8x128xf32>
    %341 = arith.mulf %340, %18 : vector<8x128xf32>
    %342 = arith.addf %322, %341 : vector<8x128xf32>
    %c1_i32_80 = arith.constant 1 : i32
    %343 = vector.broadcast %c1_i32_80 : i32 to vector<8x1xi32>
    %344 = arith.cmpi eq, %316, %343 : vector<8x1xi32>
    %345 = arith.extui %344 : vector<8x1xi1> to vector<8x1xi32>
    %346 = arith.sitofp %345 : vector<8x1xi32> to vector<8x1xf32>
    %c1_i32_81 = arith.constant 1 : i32
    %347 = vector.broadcast %c1_i32_81 : i32 to vector<8x1xi32>
    %348 = arith.cmpi eq, %318, %347 : vector<8x1xi32>
    %349 = arith.extui %348 : vector<8x1xi1> to vector<8x1xi32>
    %350 = arith.sitofp %349 : vector<8x1xi32> to vector<8x1xf32>
    %351 = vector.broadcast %346 : vector<8x1xf32> to vector<8x128xf32>
    %352 = arith.mulf %351, %34 : vector<8x128xf32>
    %353 = arith.addf %333, %352 : vector<8x128xf32>
    %354 = vector.broadcast %346 : vector<8x1xf32> to vector<8x128xf32>
    %355 = arith.mulf %354, %32 : vector<8x128xf32>
    %356 = arith.addf %336, %355 : vector<8x128xf32>
    %357 = vector.broadcast %350 : vector<8x1xf32> to vector<8x128xf32>
    %358 = arith.mulf %357, %34 : vector<8x128xf32>
    %359 = arith.addf %339, %358 : vector<8x128xf32>
    %360 = vector.broadcast %350 : vector<8x1xf32> to vector<8x128xf32>
    %361 = arith.mulf %360, %32 : vector<8x128xf32>
    %362 = arith.addf %342, %361 : vector<8x128xf32>
    %c2_i32_82 = arith.constant 2 : i32
    %363 = vector.broadcast %c2_i32_82 : i32 to vector<8x1xi32>
    %364 = arith.cmpi eq, %316, %363 : vector<8x1xi32>
    %365 = arith.extui %364 : vector<8x1xi1> to vector<8x1xi32>
    %366 = arith.sitofp %365 : vector<8x1xi32> to vector<8x1xf32>
    %c2_i32_83 = arith.constant 2 : i32
    %367 = vector.broadcast %c2_i32_83 : i32 to vector<8x1xi32>
    %368 = arith.cmpi eq, %318, %367 : vector<8x1xi32>
    %369 = arith.extui %368 : vector<8x1xi1> to vector<8x1xi32>
    %370 = arith.sitofp %369 : vector<8x1xi32> to vector<8x1xf32>
    %371 = vector.broadcast %366 : vector<8x1xf32> to vector<8x128xf32>
    %372 = arith.mulf %371, %107 : vector<8x128xf32>
    %373 = arith.addf %353, %372 : vector<8x128xf32>
    %374 = vector.broadcast %366 : vector<8x1xf32> to vector<8x128xf32>
    %375 = arith.mulf %374, %105 : vector<8x128xf32>
    %376 = arith.addf %356, %375 : vector<8x128xf32>
    %377 = vector.broadcast %370 : vector<8x1xf32> to vector<8x128xf32>
    %378 = arith.mulf %377, %107 : vector<8x128xf32>
    %379 = arith.addf %359, %378 : vector<8x128xf32>
    %380 = vector.broadcast %370 : vector<8x1xf32> to vector<8x128xf32>
    %381 = arith.mulf %380, %105 : vector<8x128xf32>
    %382 = arith.addf %362, %381 : vector<8x128xf32>
    %c3_i32_84 = arith.constant 3 : i32
    %383 = vector.broadcast %c3_i32_84 : i32 to vector<8x1xi32>
    %384 = arith.cmpi eq, %316, %383 : vector<8x1xi32>
    %385 = arith.extui %384 : vector<8x1xi1> to vector<8x1xi32>
    %386 = arith.sitofp %385 : vector<8x1xi32> to vector<8x1xf32>
    %c3_i32_85 = arith.constant 3 : i32
    %387 = vector.broadcast %c3_i32_85 : i32 to vector<8x1xi32>
    %388 = arith.cmpi eq, %318, %387 : vector<8x1xi32>
    %389 = arith.extui %388 : vector<8x1xi1> to vector<8x1xi32>
    %390 = arith.sitofp %389 : vector<8x1xi32> to vector<8x1xf32>
    %391 = vector.broadcast %386 : vector<8x1xf32> to vector<8x128xf32>
    %392 = arith.mulf %391, %200 : vector<8x128xf32>
    %393 = arith.addf %373, %392 : vector<8x128xf32>
    %394 = vector.broadcast %386 : vector<8x1xf32> to vector<8x128xf32>
    %395 = arith.mulf %394, %198 : vector<8x128xf32>
    %396 = arith.addf %376, %395 : vector<8x128xf32>
    %397 = vector.broadcast %390 : vector<8x1xf32> to vector<8x128xf32>
    %398 = arith.mulf %397, %200 : vector<8x128xf32>
    %399 = arith.addf %379, %398 : vector<8x128xf32>
    %400 = vector.broadcast %390 : vector<8x1xf32> to vector<8x128xf32>
    %401 = arith.mulf %400, %198 : vector<8x128xf32>
    %402 = arith.addf %382, %401 : vector<8x128xf32>
    %c4_i32 = arith.constant 4 : i32
    %403 = vector.broadcast %c4_i32 : i32 to vector<8x1xi32>
    %404 = arith.cmpi eq, %316, %403 : vector<8x1xi32>
    %405 = arith.extui %404 : vector<8x1xi1> to vector<8x1xi32>
    %406 = arith.sitofp %405 : vector<8x1xi32> to vector<8x1xf32>
    %c4_i32_86 = arith.constant 4 : i32
    %407 = vector.broadcast %c4_i32_86 : i32 to vector<8x1xi32>
    %408 = arith.cmpi eq, %318, %407 : vector<8x1xi32>
    %409 = arith.extui %408 : vector<8x1xi1> to vector<8x1xi32>
    %410 = arith.sitofp %409 : vector<8x1xi32> to vector<8x1xf32>
    %411 = vector.broadcast %406 : vector<8x1xf32> to vector<8x128xf32>
    %412 = arith.mulf %411, %313 : vector<8x128xf32>
    %413 = arith.addf %393, %412 : vector<8x128xf32>
    %414 = vector.broadcast %406 : vector<8x1xf32> to vector<8x128xf32>
    %415 = arith.mulf %414, %311 : vector<8x128xf32>
    %416 = arith.addf %396, %415 : vector<8x128xf32>
    %417 = vector.broadcast %410 : vector<8x1xf32> to vector<8x128xf32>
    %418 = arith.mulf %417, %313 : vector<8x128xf32>
    %419 = arith.addf %399, %418 : vector<8x128xf32>
    %420 = vector.broadcast %410 : vector<8x1xf32> to vector<8x128xf32>
    %421 = arith.mulf %420, %311 : vector<8x128xf32>
    %422 = arith.addf %402, %421 : vector<8x128xf32>
    %423 = tpu.concatenate %413, %419 in 1 : vector<8x128xf32>, vector<8x128xf32> -> vector<8x256xf32>
    %424 = arith.truncf %423 : vector<8x256xf32> to vector<8x256xbf16>
    %c0_87 = arith.constant 0 : index
    %c0_88 = arith.constant 0 : index
    %425 = vector.load %arg4[%c0_87, %c0_88] : memref<256x640xbf16, #tpu.memory_space<vmem>>, vector<256x640xbf16>
    %cst_89 = arith.constant dense<0.000000e+00> : vector<8x640xf32>
    %426 = tpu.matmul %424, %425, %cst_89 {dimension_numbers = #tpu.dot_dimension_numbers<[1], [0], [0], [1], [0, 0, 1, 1], [], []>} : vector<8x256xbf16>, vector<256x640xbf16>, vector<8x640xf32> -> vector<8x640xf32>
    %427 = arith.addf %314, %426 : vector<8x640xf32>
    %428 = vector.extract_strided_slice %427 {offsets = [0, 0], sizes = [8, 512], strides = [1, 1]} : vector<8x640xf32> to vector<8x512xf32>
    %429 = arith.negf %428 : vector<8x512xf32>
    %430 = math.exp %429 : vector<8x512xf32>
    %cst_90 = arith.constant 1.000000e+00 : f32
    %431 = vector.broadcast %cst_90 : f32 to vector<8x512xf32>
    %432 = arith.addf %431, %430 : vector<8x512xf32>
    %433 = arith.divf %431, %432 : vector<8x512xf32>
    %434 = vector.extract_strided_slice %427 {offsets = [0, 512], sizes = [8, 128], strides = [1, 1]} : vector<8x640xf32> to vector<8x128xf32>
    %435 = math.tanh %434 : vector<8x128xf32>
    %436 = vector.extract_strided_slice %433 {offsets = [0, 0], sizes = [8, 128], strides = [1, 1]} : vector<8x512xf32> to vector<8x128xf32>
    %437 = vector.extract_strided_slice %433 {offsets = [0, 384], sizes = [8, 128], strides = [1, 1]} : vector<8x512xf32> to vector<8x128xf32>
    %438 = vector.extract_strided_slice %433 {offsets = [0, 128], sizes = [8, 128], strides = [1, 1]} : vector<8x512xf32> to vector<8x128xf32>
    %439 = vector.extract_strided_slice %433 {offsets = [0, 256], sizes = [8, 128], strides = [1, 1]} : vector<8x512xf32> to vector<8x128xf32>
    %440 = arith.mulf %436, %435 : vector<8x128xf32>
    %441 = arith.mulf %438, %416 : vector<8x128xf32>
    %442 = arith.addf %440, %441 : vector<8x128xf32>
    %443 = arith.mulf %439, %422 : vector<8x128xf32>
    %444 = arith.addf %442, %443 : vector<8x128xf32>
    %445 = math.tanh %444 : vector<8x128xf32>
    %446 = arith.mulf %437, %445 : vector<8x128xf32>
    %c48 = arith.constant 48 : index
    %c0_91 = arith.constant 0 : index
    %447 = vector.load %arg8[%c48, %c0_91] : memref<56x640xf32, #tpu.memory_space<vmem>>, vector<8x640xf32>
    %c6 = arith.constant 6 : index
    %c0_92 = arith.constant 0 : index
    %c0_93 = arith.constant 0 : index
    %448 = vector.load %arg0[%c6, %c0_92, %c0_93] : memref<7x8x1xi32, #tpu.memory_space<vmem>>, vector<1x8x1xi32>
    %449 = vector.shape_cast %448 : vector<1x8x1xi32> to vector<8x1xi32>
    %c6_94 = arith.constant 6 : index
    %c0_95 = arith.constant 0 : index
    %c0_96 = arith.constant 0 : index
    %450 = vector.load %arg1[%c6_94, %c0_95, %c0_96] : memref<7x8x1xi32, #tpu.memory_space<vmem>>, vector<1x8x1xi32>
    %451 = vector.shape_cast %450 : vector<1x8x1xi32> to vector<8x1xi32>
    %cst_97 = arith.constant 0.000000e+00 : f32
    %452 = vector.broadcast %cst_97 : f32 to vector<8x128xf32>
    %cst_98 = arith.constant 0.000000e+00 : f32
    %453 = vector.broadcast %cst_98 : f32 to vector<8x128xf32>
    %cst_99 = arith.constant 0.000000e+00 : f32
    %454 = vector.broadcast %cst_99 : f32 to vector<8x128xf32>
    %cst_100 = arith.constant 0.000000e+00 : f32
    %455 = vector.broadcast %cst_100 : f32 to vector<8x128xf32>
    %c0_i32_101 = arith.constant 0 : i32
    %456 = vector.broadcast %c0_i32_101 : i32 to vector<8x1xi32>
    %457 = arith.cmpi eq, %449, %456 : vector<8x1xi32>
    %458 = arith.extui %457 : vector<8x1xi1> to vector<8x1xi32>
    %459 = arith.sitofp %458 : vector<8x1xi32> to vector<8x1xf32>
    %c0_i32_102 = arith.constant 0 : i32
    %460 = vector.broadcast %c0_i32_102 : i32 to vector<8x1xi32>
    %461 = arith.cmpi eq, %451, %460 : vector<8x1xi32>
    %462 = arith.extui %461 : vector<8x1xi1> to vector<8x1xi32>
    %463 = arith.sitofp %462 : vector<8x1xi32> to vector<8x1xf32>
    %464 = vector.broadcast %459 : vector<8x1xf32> to vector<8x128xf32>
    %465 = arith.mulf %464, %20 : vector<8x128xf32>
    %466 = arith.addf %452, %465 : vector<8x128xf32>
    %467 = vector.broadcast %459 : vector<8x1xf32> to vector<8x128xf32>
    %468 = arith.mulf %467, %18 : vector<8x128xf32>
    %469 = arith.addf %453, %468 : vector<8x128xf32>
    %470 = vector.broadcast %463 : vector<8x1xf32> to vector<8x128xf32>
    %471 = arith.mulf %470, %20 : vector<8x128xf32>
    %472 = arith.addf %454, %471 : vector<8x128xf32>
    %473 = vector.broadcast %463 : vector<8x1xf32> to vector<8x128xf32>
    %474 = arith.mulf %473, %18 : vector<8x128xf32>
    %475 = arith.addf %455, %474 : vector<8x128xf32>
    %c1_i32_103 = arith.constant 1 : i32
    %476 = vector.broadcast %c1_i32_103 : i32 to vector<8x1xi32>
    %477 = arith.cmpi eq, %449, %476 : vector<8x1xi32>
    %478 = arith.extui %477 : vector<8x1xi1> to vector<8x1xi32>
    %479 = arith.sitofp %478 : vector<8x1xi32> to vector<8x1xf32>
    %c1_i32_104 = arith.constant 1 : i32
    %480 = vector.broadcast %c1_i32_104 : i32 to vector<8x1xi32>
    %481 = arith.cmpi eq, %451, %480 : vector<8x1xi32>
    %482 = arith.extui %481 : vector<8x1xi1> to vector<8x1xi32>
    %483 = arith.sitofp %482 : vector<8x1xi32> to vector<8x1xf32>
    %484 = vector.broadcast %479 : vector<8x1xf32> to vector<8x128xf32>
    %485 = arith.mulf %484, %34 : vector<8x128xf32>
    %486 = arith.addf %466, %485 : vector<8x128xf32>
    %487 = vector.broadcast %479 : vector<8x1xf32> to vector<8x128xf32>
    %488 = arith.mulf %487, %32 : vector<8x128xf32>
    %489 = arith.addf %469, %488 : vector<8x128xf32>
    %490 = vector.broadcast %483 : vector<8x1xf32> to vector<8x128xf32>
    %491 = arith.mulf %490, %34 : vector<8x128xf32>
    %492 = arith.addf %472, %491 : vector<8x128xf32>
    %493 = vector.broadcast %483 : vector<8x1xf32> to vector<8x128xf32>
    %494 = arith.mulf %493, %32 : vector<8x128xf32>
    %495 = arith.addf %475, %494 : vector<8x128xf32>
    %c2_i32_105 = arith.constant 2 : i32
    %496 = vector.broadcast %c2_i32_105 : i32 to vector<8x1xi32>
    %497 = arith.cmpi eq, %449, %496 : vector<8x1xi32>
    %498 = arith.extui %497 : vector<8x1xi1> to vector<8x1xi32>
    %499 = arith.sitofp %498 : vector<8x1xi32> to vector<8x1xf32>
    %c2_i32_106 = arith.constant 2 : i32
    %500 = vector.broadcast %c2_i32_106 : i32 to vector<8x1xi32>
    %501 = arith.cmpi eq, %451, %500 : vector<8x1xi32>
    %502 = arith.extui %501 : vector<8x1xi1> to vector<8x1xi32>
    %503 = arith.sitofp %502 : vector<8x1xi32> to vector<8x1xf32>
    %504 = vector.broadcast %499 : vector<8x1xf32> to vector<8x128xf32>
    %505 = arith.mulf %504, %107 : vector<8x128xf32>
    %506 = arith.addf %486, %505 : vector<8x128xf32>
    %507 = vector.broadcast %499 : vector<8x1xf32> to vector<8x128xf32>
    %508 = arith.mulf %507, %105 : vector<8x128xf32>
    %509 = arith.addf %489, %508 : vector<8x128xf32>
    %510 = vector.broadcast %503 : vector<8x1xf32> to vector<8x128xf32>
    %511 = arith.mulf %510, %107 : vector<8x128xf32>
    %512 = arith.addf %492, %511 : vector<8x128xf32>
    %513 = vector.broadcast %503 : vector<8x1xf32> to vector<8x128xf32>
    %514 = arith.mulf %513, %105 : vector<8x128xf32>
    %515 = arith.addf %495, %514 : vector<8x128xf32>
    %c3_i32_107 = arith.constant 3 : i32
    %516 = vector.broadcast %c3_i32_107 : i32 to vector<8x1xi32>
    %517 = arith.cmpi eq, %449, %516 : vector<8x1xi32>
    %518 = arith.extui %517 : vector<8x1xi1> to vector<8x1xi32>
    %519 = arith.sitofp %518 : vector<8x1xi32> to vector<8x1xf32>
    %c3_i32_108 = arith.constant 3 : i32
    %520 = vector.broadcast %c3_i32_108 : i32 to vector<8x1xi32>
    %521 = arith.cmpi eq, %451, %520 : vector<8x1xi32>
    %522 = arith.extui %521 : vector<8x1xi1> to vector<8x1xi32>
    %523 = arith.sitofp %522 : vector<8x1xi32> to vector<8x1xf32>
    %524 = vector.broadcast %519 : vector<8x1xf32> to vector<8x128xf32>
    %525 = arith.mulf %524, %200 : vector<8x128xf32>
    %526 = arith.addf %506, %525 : vector<8x128xf32>
    %527 = vector.broadcast %519 : vector<8x1xf32> to vector<8x128xf32>
    %528 = arith.mulf %527, %198 : vector<8x128xf32>
    %529 = arith.addf %509, %528 : vector<8x128xf32>
    %530 = vector.broadcast %523 : vector<8x1xf32> to vector<8x128xf32>
    %531 = arith.mulf %530, %200 : vector<8x128xf32>
    %532 = arith.addf %512, %531 : vector<8x128xf32>
    %533 = vector.broadcast %523 : vector<8x1xf32> to vector<8x128xf32>
    %534 = arith.mulf %533, %198 : vector<8x128xf32>
    %535 = arith.addf %515, %534 : vector<8x128xf32>
    %c4_i32_109 = arith.constant 4 : i32
    %536 = vector.broadcast %c4_i32_109 : i32 to vector<8x1xi32>
    %537 = arith.cmpi eq, %449, %536 : vector<8x1xi32>
    %538 = arith.extui %537 : vector<8x1xi1> to vector<8x1xi32>
    %539 = arith.sitofp %538 : vector<8x1xi32> to vector<8x1xf32>
    %c4_i32_110 = arith.constant 4 : i32
    %540 = vector.broadcast %c4_i32_110 : i32 to vector<8x1xi32>
    %541 = arith.cmpi eq, %451, %540 : vector<8x1xi32>
    %542 = arith.extui %541 : vector<8x1xi1> to vector<8x1xi32>
    %543 = arith.sitofp %542 : vector<8x1xi32> to vector<8x1xf32>
    %544 = vector.broadcast %539 : vector<8x1xf32> to vector<8x128xf32>
    %545 = arith.mulf %544, %313 : vector<8x128xf32>
    %546 = arith.addf %526, %545 : vector<8x128xf32>
    %547 = vector.broadcast %539 : vector<8x1xf32> to vector<8x128xf32>
    %548 = arith.mulf %547, %311 : vector<8x128xf32>
    %549 = arith.addf %529, %548 : vector<8x128xf32>
    %550 = vector.broadcast %543 : vector<8x1xf32> to vector<8x128xf32>
    %551 = arith.mulf %550, %313 : vector<8x128xf32>
    %552 = arith.addf %532, %551 : vector<8x128xf32>
    %553 = vector.broadcast %543 : vector<8x1xf32> to vector<8x128xf32>
    %554 = arith.mulf %553, %311 : vector<8x128xf32>
    %555 = arith.addf %535, %554 : vector<8x128xf32>
    %c5_i32 = arith.constant 5 : i32
    %556 = vector.broadcast %c5_i32 : i32 to vector<8x1xi32>
    %557 = arith.cmpi eq, %449, %556 : vector<8x1xi32>
    %558 = arith.extui %557 : vector<8x1xi1> to vector<8x1xi32>
    %559 = arith.sitofp %558 : vector<8x1xi32> to vector<8x1xf32>
    %c5_i32_111 = arith.constant 5 : i32
    %560 = vector.broadcast %c5_i32_111 : i32 to vector<8x1xi32>
    %561 = arith.cmpi eq, %451, %560 : vector<8x1xi32>
    %562 = arith.extui %561 : vector<8x1xi1> to vector<8x1xi32>
    %563 = arith.sitofp %562 : vector<8x1xi32> to vector<8x1xf32>
    %564 = vector.broadcast %559 : vector<8x1xf32> to vector<8x128xf32>
    %565 = arith.mulf %564, %446 : vector<8x128xf32>
    %566 = arith.addf %546, %565 : vector<8x128xf32>
    %567 = vector.broadcast %559 : vector<8x1xf32> to vector<8x128xf32>
    %568 = arith.mulf %567, %444 : vector<8x128xf32>
    %569 = arith.addf %549, %568 : vector<8x128xf32>
    %570 = vector.broadcast %563 : vector<8x1xf32> to vector<8x128xf32>
    %571 = arith.mulf %570, %446 : vector<8x128xf32>
    %572 = arith.addf %552, %571 : vector<8x128xf32>
    %573 = vector.broadcast %563 : vector<8x1xf32> to vector<8x128xf32>
    %574 = arith.mulf %573, %444 : vector<8x128xf32>
    %575 = arith.addf %555, %574 : vector<8x128xf32>
    %576 = tpu.concatenate %566, %572 in 1 : vector<8x128xf32>, vector<8x128xf32> -> vector<8x256xf32>
    %577 = arith.truncf %576 : vector<8x256xf32> to vector<8x256xbf16>
    %c0_112 = arith.constant 0 : index
    %c0_113 = arith.constant 0 : index
    %578 = vector.load %arg4[%c0_112, %c0_113] : memref<256x640xbf16, #tpu.memory_space<vmem>>, vector<256x640xbf16>
    %cst_114 = arith.constant dense<0.000000e+00> : vector<8x640xf32>
    %579 = tpu.matmul %577, %578, %cst_114 {dimension_numbers = #tpu.dot_dimension_numbers<[1], [0], [0], [1], [0, 0, 1, 1], [], []>} : vector<8x256xbf16>, vector<256x640xbf16>, vector<8x640xf32> -> vector<8x640xf32>
    %580 = arith.addf %447, %579 : vector<8x640xf32>
    %581 = vector.extract_strided_slice %580 {offsets = [0, 0], sizes = [8, 512], strides = [1, 1]} : vector<8x640xf32> to vector<8x512xf32>
    %582 = arith.negf %581 : vector<8x512xf32>
    %583 = math.exp %582 : vector<8x512xf32>
    %cst_115 = arith.constant 1.000000e+00 : f32
    %584 = vector.broadcast %cst_115 : f32 to vector<8x512xf32>
    %585 = arith.addf %584, %583 : vector<8x512xf32>
    %586 = arith.divf %584, %585 : vector<8x512xf32>
    %587 = vector.extract_strided_slice %580 {offsets = [0, 512], sizes = [8, 128], strides = [1, 1]} : vector<8x640xf32> to vector<8x128xf32>
    %588 = math.tanh %587 : vector<8x128xf32>
    %589 = vector.extract_strided_slice %586 {offsets = [0, 0], sizes = [8, 128], strides = [1, 1]} : vector<8x512xf32> to vector<8x128xf32>
    %590 = vector.extract_strided_slice %586 {offsets = [0, 384], sizes = [8, 128], strides = [1, 1]} : vector<8x512xf32> to vector<8x128xf32>
    %591 = vector.extract_strided_slice %586 {offsets = [0, 128], sizes = [8, 128], strides = [1, 1]} : vector<8x512xf32> to vector<8x128xf32>
    %592 = vector.extract_strided_slice %586 {offsets = [0, 256], sizes = [8, 128], strides = [1, 1]} : vector<8x512xf32> to vector<8x128xf32>
    %593 = arith.mulf %589, %588 : vector<8x128xf32>
    %594 = arith.mulf %591, %569 : vector<8x128xf32>
    %595 = arith.addf %593, %594 : vector<8x128xf32>
    %596 = arith.mulf %592, %575 : vector<8x128xf32>
    %597 = arith.addf %595, %596 : vector<8x128xf32>
    %598 = math.tanh %597 : vector<8x128xf32>
    %599 = arith.mulf %590, %598 : vector<8x128xf32>
    %c0_116 = arith.constant 0 : index
    %c0_117 = arith.constant 0 : index
    %600 = vector.load %arg6[%c0_116, %c0_117] : memref<8x128xf32, #tpu.memory_space<vmem>>, vector<8x128xf32>
    tpu.vector_store %arg6[%c0_116, %c0_117], %597 {strides = array<i32>} : memref<8x128xf32, #tpu.memory_space<vmem>>, vector<8x128xf32>,
    %c0_118 = arith.constant 0 : index
    %c0_119 = arith.constant 0 : index
    %601 = vector.load %arg7[%c0_118, %c0_119] : memref<8x128xf32, #tpu.memory_space<vmem>>, vector<8x128xf32>
    tpu.vector_store %arg7[%c0_118, %c0_119], %599 {strides = array<i32>} : memref<8x128xf32, #tpu.memory_space<vmem>>, vector<8x128xf32>,
    return
  }
}

</mosaic_0001>

<bundles_post_ra>
// kernel: tpu_custom_call.1
= control target key start
LH: loop header
LB: loop body
LE: loop exit
PB: predicated region body
PF: predicated region fallthrough
CT: control target
= control target key end

     0   :  { %13 = vsyncpa [#allocation4], 0  ;;  %s4793_s0 = inlined_call_operand.vmem [shape: s32[7,8,1], index: 0, kind: input, shape index: {}]   ;;  %s4794_s1 = inlined_call_operand.vmem [shape: s32[7,8,1], index: 1, kind: input, shape index: {}]   ;;  %s4795_s2 = inlined_call_operand.vmem [shape: bf16[56,128], index: 2, kind: input, shape index: {}]   ;;  %s4796_s3 = inlined_call_operand.hbm [shape: bf16[128,640], index: 3, kind: input, shape index: {}]   ;;  %s4797_s4 = inlined_call_operand.hbm [shape: bf16[256,640], index: 4, kind: input, shape index: {}]   ;;  %s4798_s5 = inlined_call_operand.vmem [shape: f32[1,640], index: 5, kind: input, shape index: {}]   ;;  %s4799_s6 = inlined_call_operand.hbm [shape: f32[8,128], index: 6, kind: output, shape index: {0}]   ;;  %s4800_s7 = inlined_call_operand.hbm [shape: f32[8,128], index: 7, kind: output, shape index: {1}]  }
   0x1   :  { %14 = vsyncpa [#allocation7], 0 }
   0x2   :  { %15 = vsyncpa [#allocation5], 0 }
   0x3   :  { %16 = vsyncpa [#allocation10], 0  ;;  %s3459_s24 = smov [#allocation3]   ;;  %s3363_s28 = scalar_lea.hbm %s4796_s3, 5120 }
   0x4   :  { %s28_s25 = sshll.u32 %s3459_s24, 4  ;;  %p3364_p0 = scmp.ne.s32.totalorder %s4796_s3, %s3363_s28  ;;  %s29_s25 = int_to_ptr.vmem [resolvable:$true] %s28_s25 }
   0x5   :  { %p3367_p1 = scmp.lt.u32.totalorder %s3363_s28, %s4796_s3 }
   0x7   :  { %p3369_p2 = pnand %p3367_p1, %p3364_p0 }
   0x9   :  { %3372 = shalt.err (!%p3369_p2)
}
   0xa   :  { %s3373_s10 = scalar_lea.vmem %s29_s25, 5120  ;;  %p3378_p4 = scmp.lt.s32.totalorder %s29_s25, %s29_s25 }
   0xb   :  { %p3374_p3 = scmp.ne.s32.totalorder %s29_s25, %s3373_s10  ;;  %p3379_p5 = scmp.lt.s32.totalorder %s3373_s10, %s3373_s10 }
   0xd   :  { %p3380_p6 = por %p3379_p5, %p3378_p4 }
   0xf   :  { %p3381_p7 = pnand %p3380_p6, %p3374_p3 }
  0x11   :  { %3384 = shalt.err (!%p3381_p7)
}
  0x12   :  { %s3460_s11 = smov 320   ;;  %s3461_s12 = smov 20  }
  0x13   :  { %34 = dma.hbm_to_vmem [thread:$0]  %s4796_s3, 5120, %s29_s25, [#allocation4], %s3460_s11, %s3460_s11, %s3461_s12  }
  0x14   :  { %s3462_s15 = smov [#allocation6]   ;;  %s3385_s19 = scalar_lea.hbm %s4797_s4, 10240 }
  0x15   :  { %s40_s16 = sshll.u32 %s3462_s15, 4  ;;  %p3386_p8 = scmp.ne.s32.totalorder %s4797_s4, %s3385_s19  ;;  %s41_s16 = int_to_ptr.vmem [resolvable:$true] %s40_s16 }
  0x16   :  { %p3389_p9 = scmp.lt.u32.totalorder %s3385_s19, %s4797_s4 }
  0x18   :  { %p3391_p10 = pnand %p3389_p9, %p3386_p8 }
  0x1a   :  { %3394 = shalt.err (!%p3391_p10)
}
  0x1b   :  { %s3395_s24 = scalar_lea.vmem %s41_s16, 10240  ;;  %p3400_p12 = scmp.lt.s32.totalorder %s41_s16, %s41_s16 }
  0x1c   :  { %p3396_p11 = scmp.ne.s32.totalorder %s41_s16, %s3395_s24  ;;  %p3401_p13 = scmp.lt.s32.totalorder %s3395_s24, %s3395_s24 }
  0x1e   :  { %p3402_p0 = por %p3401_p13, %p3400_p12 }
  0x20   :  { %p3403_p1 = pnand %p3402_p0, %p3396_p11 }
  0x22   :  { %3406 = shalt.err (!%p3403_p1)
}
  0x23   :  { %46 = dma.hbm_to_vmem [thread:$0]  %s4797_s4, 10240, %s41_s16, [#allocation7], %s3460_s11, %s3460_s11, %s3461_s12  }
  0x24   :  { %3451 = dma.done.wait [#allocation4], 5120  }
  0x25   :  { %3452 = vsyncadd [#allocation4], 4294962176 }
  0x26   :  { %3453 = dma.done.wait [#allocation7], 10240  }
  0x27   :  { %3454 = vsyncadd [#allocation7], 4294957056  ;;  %v3463_v0 = vmov 0   ;;  %v2987_v1 = vld [vmem:[#allocation3 + $0x4] ss:$20 sps:$4 sm:$0xff]   ;;  %v3538_v29 = vld [vmem:[%s4795_s2] sm:$0xff]  }
  0x28   :  { %400 = vmatprep.mubr.bf16.mxu0 %v3463_v0  ;;  %471 = vmatprep.mubr.bf16.mxu1 %v3463_v0  ;;  %v2989_v2 = vld [vmem:[#allocation3] ss:$20 sps:$4 sm:$0xff]   ;;  %v2992_v4 = vld [vmem:[#allocation3 + $0x28] ss:$20 sps:$4 sm:$0xff]   ;;  %v2995_v6 = vld [vmem:[#allocation3 + $0x50] ss:$20 sps:$4 sm:$0xff]  }
  0x29   :  { %2896 = vset.pattern.permute.xlu1 %v3463_v0  ;;  %2885 = vset.pattern.permute.xlu0 %v3463_v0  ;;  %v2990_v3 = vld [vmem:[#allocation3 + $0x2c] ss:$20 sps:$4 sm:$0xff]   ;;  %v2993_v5 = vld [vmem:[#allocation3 + $0x54] ss:$20 sps:$4 sm:$0xff]   ;;  %v2996_v7 = vld [vmem:[#allocation3 + $0x7c] ss:$20 sps:$4 sm:$0xff]  }
  0x2a   :  { %368 = vmatprep.subr.bf16.mxu0 %v2987_v1  ;;  %v2998_v8 = vld [vmem:[#allocation3 + $0x78] ss:$20 sps:$4 sm:$0xff]   ;;  %v3013_v10 = vld [vmem:[#allocation3 + $0x8] ss:$20 sps:$4 sm:$0xff]   ;;  %v3001_v12 = vld [vmem:[#allocation3 + $0xa0] ss:$20 sps:$4 sm:$0xff]  }
  0x2b   :  { %369 = vmatpush1.bf16.msra.mxu0 %v2989_v2  ;;  %v3010_v9 = vld [vmem:[#allocation3 + $0xc] ss:$20 sps:$4 sm:$0xff]   ;;  %v2999_v11 = vld [vmem:[#allocation3 + $0xa4] ss:$20 sps:$4 sm:$0xff]   ;;  %v3015_v13 = vld [vmem:[#allocation3 + $0x34] ss:$20 sps:$4 sm:$0xff]  }
  0x2c   :  { %370 = vmatprep.subr.bf16.mxu0 %v2990_v3  ;;  %439 = vmatprep.subr.bf16.mxu1 %v3010_v9  ;;  %v3002_v14 = vld [vmem:[#allocation3 + $0xcc] ss:$20 sps:$4 sm:$0xff]   ;;  %v3018_v15 = vld [vmem:[#allocation3 + $0x30] ss:$20 sps:$4 sm:$0xff]   ;;  %v3004_v17 = vld [vmem:[#allocation3 + $0xc8] ss:$20 sps:$4 sm:$0xff]  }
  0x2d   :  { %440 = vmatpush1.bf16.msra.mxu1 %v3013_v10  ;;  %v3019_v16 = vld [vmem:[#allocation3 + $0x5c] ss:$20 sps:$4 sm:$0xff]   ;;  %v3022_v18 = vld [vmem:[#allocation3 + $0x58] ss:$20 sps:$4 sm:$0xff]   ;;  %v3005_v20 = vld [vmem:[#allocation3 + $0xf4] ss:$20 sps:$4 sm:$0xff]  }
  0x2e   :  { %441 = vmatprep.subr.bf16.mxu1 %v3015_v13  ;;  %v3024_v19 = vld [vmem:[#allocation3 + $0x84] ss:$20 sps:$4 sm:$0xff]   ;;  %v3027_v22 = vld [vmem:[#allocation3 + $0x80] ss:$20 sps:$4 sm:$0xff]   ;;  %v3008_v24 = vld [vmem:[#allocation3 + $0x11c] ss:$20 sps:$4 sm:$0xff]  }
  0x2f   :  { %371 = vmatpush1.bf16.msra.mxu0 %v2992_v4  ;;  %v3007_v21 = vld [vmem:[#allocation3 + $0xf0] ss:$20 sps:$4 sm:$0xff]   ;;  %v3028_v23 = vld [vmem:[#allocation3 + $0xac] ss:$20 sps:$4 sm:$0xff]   ;;  %v3031_v26 = vld [vmem:[#allocation3 + $0xa8] ss:$20 sps:$4 sm:$0xff]  }
  0x30   :  { %372 = vmatprep.subr.bf16.mxu0 %v2993_v5  ;;  %v3012_v25 = vld [vmem:[#allocation3 + $0x118] ss:$20 sps:$4 sm:$0xff]   ;;  %v3033_v27 = vld [vmem:[#allocation3 + $0xd4] ss:$20 sps:$4 sm:$0xff]   ;;  %v3017_v28 = vld [vmem:[#allocation3 + $0x10] ss:$20 sps:$4 sm:$0xff]  }
  0x31   :  { %442 = vmatpush1.bf16.msra.mxu1 %v3018_v15  ;;  %v3036_v30 = vld [vmem:[#allocation3 + $0xd0] ss:$20 sps:$4 sm:$0xff]   ;;  %v3021_v31 = vld [vmem:[#allocation3 + $0x38] ss:$20 sps:$4 sm:$0xff]   ;;  %v4801_v39 = vmov 0.0  }
  0x32   :  { %443 = vmatprep.subr.bf16.mxu1 %v3019_v16  ;;  %v3037_v32 = vld [vmem:[#allocation3 + $0xfc] ss:$20 sps:$4 sm:$0xff]   ;;  %v3040_v33 = vld [vmem:[#allocation3 + $0xf8] ss:$20 sps:$4 sm:$0xff]   ;;  %v2660_v35 = vld [vmem:[%s4794_s1 + $0x18] sm:$0xff] }
  0x33   :  { %373 = vmatpush1.bf16.msra.mxu0 %v2995_v6  ;;  %v3042_v34 = vld [vmem:[#allocation3 + $0x124] ss:$20 sps:$4 sm:$0xff]   ;;  %vm1389_vm0 = vcmp.eq.s32.totalorder %v2660_v35, 0  ;;  %vm1413_vm1 = vcmp.eq.s32.totalorder %v2660_v35, 1  ;;  %v3561_v44 = vld [vmem:[%s4794_s1 + $0x20] sm:$0xff]  ;;  %v3566_v49 = vld [vmem:[%s4795_s2 + $0x8] sm:$0xff]  }
  0x34   :  { %374 = vmatprep.subr.bf16.mxu0 %v2996_v7  ;;  %v2570_v36 = vld [vmem:[%s4794_s1 + $0x10] sm:$0xff]  ;;  %v2659_v37 = vld [vmem:[%s4793_s0 + $0x18] sm:$0xff]  ;;  %v2662_v40 = vsel %vm1389_vm0, 1.0, %v4801_v39  ;;  %v2664_v41 = vsel %vm1413_vm1, 1.0, %v4801_v39  ;;  %v2671_v52 = vld [vmem:[%s4793_s0 + $0x20] sm:$0xff]  ;;  %vm1631_vm8 = vcmp.eq.s32.totalorder %v3561_v44, 0 }
  0x35   :  { %444 = vmatpush1.bf16.msra.mxu1 %v3022_v18  ;;  %vm659_vm2 = vcmp.eq.s32.totalorder %v2570_v36, 0  ;;  %vm683_vm3 = vcmp.eq.s32.totalorder %v2570_v36, 1  ;;  %v2569_v38 = vld [vmem:[%s4793_s0 + $0x10] sm:$0xff]  ;;  %v3026_v45 = vld [vmem:[#allocation3 + $0x60] ss:$20 sps:$4 sm:$0xff]   ;;  %v2897_v47 = vpack.i.bf16 %v2664_v41, %v2662_v40  ;;  %vm1386_vm4 = vcmp.eq.s32.totalorder %v2659_v37, 0 }
  0x36   :  { %445 = vmatprep.subr.bf16.mxu1 %v3024_v19  ;;  %v2572_v42 = vsel %vm659_vm2, 1.0, %v4801_v39  ;;  %v2574_v43 = vsel %vm683_vm3, 1.0, %v4801_v39  ;;  %v3045_v46 = vld [vmem:[#allocation3 + $0x120] ss:$20 sps:$4 sm:$0xff]   ;;  %vm1410_vm5 = vcmp.eq.s32.totalorder %v2659_v37, 1  ;;  %v2661_v50 = vsel %vm1386_vm4, 1.0, %v4801_v39 }
  0x37   :  { %375 = vmatpush1.bf16.msra.mxu0 %v2998_v8  ;;  %v2886_v48 = vpack.i.bf16 %v2574_v43, %v2572_v42  ;;  %v2663_v51 = vsel %vm1410_vm5, 1.0, %v4801_v39  ;;  %vm656_vm6 = vcmp.eq.s32.totalorder %v2569_v38, 0  ;;  %vm680_vm7 = vcmp.eq.s32.totalorder %v2569_v38, 1  ;;  %v3030_v53 = vld [vmem:[#allocation3 + $0x88] ss:$20 sps:$4 sm:$0xff]   ;;  %2898 = vperm.xlu1 %2896, %v2897_v47   ;;  %v3582_v59 = vld [vmem:[%s4794_s1 + $0x28] sm:$0xff] }
  0x38   :  { %376 = vmatprep.subr.bf16.mxu0 %v2999_v11  ;;  %v2571_v54 = vsel %vm656_vm6, 1.0, %v4801_v39  ;;  %v2573_v55 = vsel %vm680_vm7, 1.0, %v4801_v39  ;;  %vm1655_vm9 = vcmp.eq.s32.totalorder %v3561_v44, 1  ;;  %vm1434_vm10 = vcmp.eq.s32.totalorder %v2659_v37, 2  ;;  %v3035_v63 = vld [vmem:[#allocation3 + $0xb0] ss:$20 sps:$4 sm:$0xff]  }
  0x39   :  { %446 = vmatpush1.bf16.msra.mxu1 %v3027_v22  ;;  %2887 = vperm.xlu0 %2885, %v2886_v48   ;;  %v2902_v56 = vpack.i.bf16 %v2663_v51, %v2661_v50  ;;  %v2674_v57 = vsel %vm1631_vm8, 1.0, %v4801_v39  ;;  %v2676_v58 = vsel %vm1655_vm9, 1.0, %v4801_v39  ;;  %vm1437_vm11 = vcmp.eq.s32.totalorder %v2660_v35, 2  ;;  %v3592_v1 = vld [vmem:[%s4795_s2 + $0x10] sm:$0xff]   ;;  %v2685_v5 = vld [vmem:[%s4793_s0 + $0x28] sm:$0xff] }
  0x3a   :  { %447 = vmatprep.subr.bf16.mxu1 %v3028_v23  ;;  %v2891_v60 = vpack.i.bf16 %v2573_v55, %v2571_v54  ;;  %v2665_v61 = vsel %vm1434_vm10, 1.0, %v4801_v39  ;;  %v2666_v62 = vsel %vm1437_vm11, 1.0, %v4801_v39  ;;  %vm1676_vm12 = vcmp.eq.s32.totalorder %v2671_v52, 2  ;;  %v3039_v7 = vld [vmem:[#allocation3 + $0xd8] ss:$20 sps:$4 sm:$0xff]  }
  0x3b   :  { %377 = vmatpush1.bf16.msra.mxu0 %v3001_v12  ;;  %vm1679_vm13 = vcmp.eq.s32.totalorder %v3561_v44, 2  ;;  %vm1628_vm14 = vcmp.eq.s32.totalorder %v2671_v52, 0  ;;  %vm1652_vm15 = vcmp.eq.s32.totalorder %v2671_v52, 1  ;;  %2903 = vperm.xlu1 %2896, %v2902_v56   ;;  %v2912_v2 = vpack.i.bf16 %v2676_v58, %v2674_v57  ;;  %v3615_v15 = vld [vmem:[%s4793_s0 + $0x30] sm:$0xff]  ;;  %v3044_v16 = vld [vmem:[#allocation3 + $0x100] ss:$20 sps:$4 sm:$0xff]  }
  0x3c   :  { %378 = vmatprep.subr.bf16.mxu0 %v3002_v14  ;;  %v2907_v3 = vpack.i.bf16 %v2665_v61, %v2666_v62  ;;  %v2677_v4 = vsel %vm1676_vm12, 1.0, %v4801_v39  ;;  %v2678_v6 = vsel %vm1679_vm13, 1.0, %v4801_v39  ;;  %vm1897_vm0 = vcmp.eq.s32.totalorder %v3582_v59, 0  ;;  %v3623_v18 = vld [vmem:[%s4794_s1 + $0x30] sm:$0xff]  ;;  %v3041_v19 = vld [vmem:[%s4795_s2 + $0x18] ss:$0 sps:$4 sm:$0xff]  }
  0x3d   :  { %448 = vmatpush1.bf16.msra.mxu1 %v3031_v26  ;;  %2892 = vperm.xlu0 %2885, %v2891_v60   ;;  %vm1921_vm1 = vcmp.eq.s32.totalorder %v3582_v59, 1  ;;  %vm1700_vm2 = vcmp.eq.s32.totalorder %v2671_v52, 3  ;;  %v2673_v8 = vsel %vm1628_vm14, 1.0, %v4801_v39  ;;  %v2675_v9 = vsel %vm1652_vm15, 1.0, %v4801_v39  ;;  %v3669_v48 = vld [vmem:[#allocation6 + $0x4] ss:$20 sps:$4 sm:$0xff]  }
  0x3e   :  { %449 = vmatprep.subr.bf16.mxu1 %v3033_v27  ;;  %vm1703_vm3 = vcmp.eq.s32.totalorder %v3561_v44, 3  ;;  %v2922_v10 = vpack.i.bf16 %v2677_v4, %v2678_v6  ;;  %v2688_v11 = vsel %vm1897_vm0, 1.0, %v4801_v39  ;;  %v2690_v12 = vsel %vm1921_vm1, 1.0, %v4801_v39  ;;  %4962 = vst [vmem:[#allocation15_spill] sm:$0xff] %v3669_v48  ;;  %v3673_v50 = vld [vmem:[#allocation6 + $0xc] ss:$20 sps:$4 sm:$0xff]  }
  0x3f   :  { %379 = vmatpush1.bf16.msra.mxu0 %v3004_v17  ;;  %2913 = vperm.xlu1 %2896, %v2912_v2   ;;  %v2679_v13 = vsel %vm1700_vm2, 1.0, %v4801_v39  ;;  %v2917_v14 = vpack.i.bf16 %v2675_v9, %v2673_v8  ;;  %vm1942_vm4 = vcmp.eq.s32.totalorder %v2685_v5, 2  ;;  %vm1945_vm5 = vcmp.eq.s32.totalorder %v3582_v59, 2  ;;  %v3676_v51 = vld [vmem:[#allocation6 + $0x8] ss:$20 sps:$4 sm:$0xff]  }
  0x40   :  { %380 = vmatprep.subr.bf16.mxu0 %v3005_v20  ;;  %vm1894_vm6 = vcmp.eq.s32.totalorder %v2685_v5, 0  ;;  %v2680_v17 = vsel %vm1703_vm3, 1.0, %v4801_v39  ;;  %vm1918_vm7 = vcmp.eq.s32.totalorder %v2685_v5, 1  ;;  %vm1990_vm8 = vcmp.eq.s32.totalorder %v2685_v5, 4  ;;  %v3683_v52 = vld [vmem:[#allocation6 + $0x28] ss:$20 sps:$4 sm:$0xff]  }
  0x41   :  { %450 = vmatpush1.bf16.msra.mxu1 %v3036_v30  ;;  %2908 = vperm.xlu0 %2885, %v2907_v3   ;;  %vm1993_vm9 = vcmp.eq.s32.totalorder %v3582_v59, 4  ;;  %vm1966_vm10 = vcmp.eq.s32.totalorder %v2685_v5, 3  ;;  %v2932_v20 = vpack.i.bf16 %v2690_v12, %v2688_v11  ;;  %v2692_v22 = vsel %vm1945_vm5, 1.0, %v4801_v39  ;;  %v3688_v54 = vld [vmem:[#allocation6 + $0x30] ss:$20 sps:$4 sm:$0xff]  }
  0x42   :  { %451 = vmatprep.subr.bf16.mxu1 %v3037_v32  ;;  %v2687_v23 = vsel %vm1894_vm6, 1.0, %v4801_v39  ;;  %v2695_v26 = vsel %vm1990_vm8, 1.0, %v4801_v39  ;;  %v2696_v27 = vsel %vm1993_vm9, 1.0, %v4801_v39  ;;  %v2693_v30 = vsel %vm1966_vm10, 1.0, %v4801_v39  ;;  %v3693_v55 = vld [vmem:[#allocation6 + $0x54] ss:$20 sps:$4 sm:$0xff]  }
  0x43   :  { %381 = vmatpush1.bf16.msra.mxu0 %v3007_v21  ;;  %2923 = vperm.xlu1 %2896, %v2922_v10   ;;  %v2691_v21 = vsel %vm1942_vm4, 1.0, %v4801_v39  ;;  %vm1969_vm11 = vcmp.eq.s32.totalorder %v3582_v59, 3  ;;  %vm2184_vm12 = vcmp.eq.s32.totalorder %v3615_v15, 0  ;;  %vm2208_vm13 = vcmp.eq.s32.totalorder %v3615_v15, 1  ;;  %v3695_v56 = vld [vmem:[#allocation6 + $0x50] ss:$20 sps:$4 sm:$0xff]  }
  0x44   :  { %382 = vmatprep.subr.bf16.mxu0 %v3008_v24  ;;  %v2927_v24 = vpack.i.bf16 %v2679_v13, %v2680_v17  ;;  %vm2187_vm14 = vcmp.eq.s32.totalorder %v3623_v18, 0  ;;  %vm2211_vm15 = vcmp.eq.s32.totalorder %v3623_v18, 1  ;;  %vm2232_vm0 = vcmp.eq.s32.totalorder %v3615_v15, 2  ;;  %v3697_v57 = vld [vmem:[#allocation6 + $0x5c] ss:$20 sps:$4 sm:$0xff]  }
  0x45   :  { %452 = vmatpush1.bf16.msra.mxu1 %v3040_v33  ;;  %2918 = vperm.xlu0 %2885, %v2917_v14   ;;  %vm2235_vm1 = vcmp.eq.s32.totalorder %v3623_v18, 2  ;;  %vm2280_vm2 = vcmp.eq.s32.totalorder %v3615_v15, 4  ;;  %v2694_v33 = vsel %vm1969_vm11, 1.0, %v4801_v39  ;;  %vm2283_vm3 = vcmp.eq.s32.totalorder %v3623_v18, 4  ;;  %v3700_v58 = vld [vmem:[#allocation6 + $0x58] ss:$20 sps:$4 sm:$0xff]  }
  0x46   :  { %453 = vmatprep.subr.bf16.mxu1 %v3042_v34  ;;  %v2703_v34 = vsel %vm2184_vm12, 1.0, %v4801_v39  ;;  %v2705_v35 = vsel %vm2208_vm13, 1.0, %v4801_v39  ;;  %v2704_v36 = vsel %vm2187_vm14, 1.0, %v4801_v39  ;;  %v2706_v37 = vsel %vm2211_vm15, 1.0, %v4801_v39  ;;  %4963 = vst [vmem:[#allocation16_spill] sm:$0xff] %v3700_v58 }
  0x47   :  { %383 = vmatpush1.bf16.msra.mxu0 %v3012_v25  ;;  %v2689_v25 = vsel %vm1918_vm7, 1.0, %v4801_v39  ;;  %2933 = vperm.xlu1 %2896, %v2932_v20   ;;  %v2707_v38 = vsel %vm2232_vm0, 1.0, %v4801_v39  ;;  %v2708_v40 = vsel %vm2235_vm1, 1.0, %v4801_v39  ;;  %v2711_v41 = vsel %vm2280_vm2, 1.0, %v4801_v39  ;;  %v3705_v59 = vld [vmem:[#allocation6 + $0x7c] ss:$20 sps:$4 sm:$0xff]  }
  0x48   :  { %2841 = vmatprep.subr.bf16.mxu0 %v3017_v28  ;;  %v2937_v32 = vpack.i.bf16 %v2689_v25, %v2687_v23  ;;  %v2952_v42 = vpack.i.bf16 %v2695_v26, %v2696_v27  ;;  %v2712_v43 = vsel %vm2283_vm3, 1.0, %v4801_v39  ;;  %v2947_v44 = vpack.i.bf16 %v2693_v30, %v2694_v33  ;;  %v3707_v60 = vld [vmem:[#allocation6 + $0x78] ss:$20 sps:$4 sm:$0xff]   ;;  %v3712_v62 = vld [vmem:[#allocation6 + $0x80] ss:$20 sps:$4 sm:$0xff]  }
  0x49   :  { %454 = vmatpush1.bf16.msra.mxu1 %v3045_v46  ;;  %2928 = vperm.xlu0 %2885, %v2927_v24   ;;  %v2967_v46 = vpack.i.bf16 %v2707_v38, %v2708_v40  ;;  %v2977_v47 = vpack.i.bf16 %v2711_v41, %v2712_v43  ;;  %v3709_v61 = vld [vmem:[#allocation6 + $0x84] ss:$20 sps:$4 sm:$0xff]   ;;  %4965 = vst [vmem:[#allocation18_spill] sm:$0xff] %v3712_v62  ;;  %v3721_v2 = vld [vmem:[#allocation6 + $0xac] ss:$20 sps:$4 sm:$0xff]   ;;  %vm2256_vm4 = vcmp.eq.s32.totalorder %v3615_v15, 3 }
  0x4a   :  { %401 = vmatmul.mubr.bf16.vlgmr.msra.gmra.mrb[0].mxu0 %v3538_v29  ;;  %1218 = vmatprep.subr.bf16.mxu1 %v3669_v48  ;;  %4964 = vst [vmem:[#allocation17_spill] sm:$0xff] %v3709_v61  ;;  %4966 = vst [vmem:[#allocation19_spill] sm:$0xff] %v3721_v2  ;;  %v3723_v3 = vld [vmem:[#allocation6 + $0xa8] ss:$20 sps:$4 sm:$0xff]   ;;  %v3725_v4 = vld [vmem:[#allocation6 + $0xcc] ss:$20 sps:$4 sm:$0xff]  }
  0x4b   :  { %2842 = vmatpush3.bf16.msra.mxu0 %v3017_v28  ;;  %410 = vmatprep.mubr.bf16.mxu0 %v3463_v0  ;;  %v3046_v28 = vld [vmem:[#allocation3 + $0x128] ss:$20 sps:$4 sm:$0xff]   ;;  %4967 = vst [vmem:[#allocation20_spill] sm:$0xff] %v3723_v3  ;;  %v3743_v9 = vld [vmem:[#allocation6 + $0xf0] ss:$20 sps:$4 sm:$0xff]   ;;  %vm2259_vm5 = vcmp.eq.s32.totalorder %v3623_v18, 3 }
  0x4c   :  { %2843 = vmatprep.subr.bf16.mxu0 %v3021_v31  ;;  %472 = vmatmul.mubr.bf16.vlgmr.msra.gmra.mrb[0].mxu1 %v3538_v29  ;;  %v3729_v5 = vld [vmem:[#allocation6 + $0xd4] ss:$20 sps:$4 sm:$0xff]   ;;  %v3745_v10 = vld [vmem:[#allocation6 + $0xfc] ss:$20 sps:$4 sm:$0xff]   ;;  %v3748_v11 = vld [vmem:[#allocation6 + $0xf8] ss:$20 sps:$4 sm:$0xff]  }
  0x4d   :  { %481 = vmatprep.mubr.bf16.mxu1 %v3463_v0  ;;  %2938 = vperm.xlu0 %2885, %v2937_v32   ;;  %4968 = vst [vmem:[#allocation21_spill] sm:$0xff] %v3729_v5  ;;  %v3732_v6 = vld [vmem:[#allocation6 + $0xc8] ss:$20 sps:$4 sm:$0xff]   ;;  %4970 = vst [vmem:[#allocation23_spill] sm:$0xff] %v3745_v10  ;;  %v3755_v13 = vld [vmem:[#allocation6 + $0x118] ss:$20 sps:$4 sm:$0xff]  }
  0x4e   :  { %v3741_v8 = vld [vmem:[#allocation6 + $0xf4] ss:$20 sps:$4 sm:$0xff]   ;;  %4971 = vst [vmem:[#allocation24_spill] sm:$0xff] %v3748_v11  ;;  %v3753_v12 = vld [vmem:[#allocation6 + $0x11c] ss:$20 sps:$4 sm:$0xff]   ;;  %vm2304_vm6 = vcmp.eq.s32.totalorder %v3615_v15, 5 }
  0x4f   :  { %2844 = vmatpush3.bf16.msra.mxu0 %v3021_v31  ;;  %v2942_v31 = vpack.i.bf16 %v2691_v21, %v2692_v22  ;;  %v3757_v14 = vld [vmem:[#allocation6 + $0x124] ss:$20 sps:$4 sm:$0xff]   ;;  %v3769_v20 = vld [vmem:[#allocation6 + $0x14c] ss:$20 sps:$4 sm:$0xff]   ;;  %v3772_v21 = vld [vmem:[#allocation6 + $0x148] ss:$20 sps:$4 sm:$0xff]  }
  0x50   :  { %2845 = vmatprep.subr.bf16.mxu0 %v3026_v45  ;;  %4972 = vst [vmem:[#allocation25_spill] sm:$0xff] %v3757_v14  ;;  %v3765_v17 = vld [vmem:[#allocation6 + $0x144] ss:$20 sps:$4 sm:$0xff]   ;;  %4974 = vst [vmem:[#allocation27_spill] sm:$0xff] %v3769_v20  ;;  %v3777_v22 = vld [vmem:[#allocation6 + $0x16c] ss:$20 sps:$4 sm:$0xff]  }
  0x51   :  { %2943 = vperm.xlu1 %2896, %v2942_v31   ;;  %2948 = vperm.xlu0 %2885, %v2947_v44   ;;  %4975 = vst [vmem:[#allocation28_spill] sm:$0xff] %v3772_v21  ;;  %v3779_v23 = vld [vmem:[#allocation6 + $0x168] ss:$20 sps:$4 sm:$0xff]   ;;  %v3784_v25 = vld [vmem:[#allocation6 + $0x170] ss:$20 sps:$4 sm:$0xff]   ;;  %vm2307_vm7 = vcmp.eq.s32.totalorder %v3623_v18, 5 }
  0x52   :  { %411 = vmatmul.mubr.bf16.gmra.mrb[4].mxu0 %v3566_v49  ;;  %v3781_v24 = vld [vmem:[#allocation6 + $0x174] ss:$20 sps:$4 sm:$0xff]   ;;  %4977 = vst [vmem:[#allocation30_spill] sm:$0xff] %v3784_v25  ;;  %v3791_v27 = vld [vmem:[#allocation6 + $0x190] ss:$20 sps:$4 sm:$0xff]  }
  0x53   :  { %2846 = vmatpush3.bf16.msra.mxu0 %v3026_v45  ;;  %420 = vmatprep.mubr.bf16.mxu0 %v3463_v0  ;;  %v2957_v45 = vpack.i.bf16 %v2706_v37, %v2704_v36  ;;  %4976 = vst [vmem:[#allocation29_spill] sm:$0xff] %v3781_v24  ;;  %v3789_v26 = vld [vmem:[#allocation6 + $0x194] ss:$20 sps:$4 sm:$0xff]   ;;  %4979 = vst [vmem:[#allocation32_spill] sm:$0xff] %v3791_v27  ;;  %v3796_v30 = vld [vmem:[#allocation6 + $0x198] ss:$20 sps:$4 sm:$0xff]  }
  0x54   :  { %2847 = vmatprep.subr.bf16.mxu0 %v3030_v53  ;;  %482 = vmatmul.mubr.bf16.gmra.mrb[4].mxu1 %v3566_v49  ;;  %4978 = vst [vmem:[#allocation31_spill] sm:$0xff] %v3789_v26  ;;  %4981 = vst [vmem:[#allocation34_spill] sm:$0xff] %v3796_v30  ;;  %v3801_v31 = vld [vmem:[#allocation6 + $0x1bc] ss:$20 sps:$4 sm:$0xff]   ;;  %v3803_v32 = vld [vmem:[#allocation6 + $0x1b8] ss:$20 sps:$4 sm:$0xff]  }
  0x55   :  { %491 = vmatprep.mubr.bf16.mxu1 %v3463_v0  ;;  %2953 = vperm.xlu1 %2896, %v2952_v42   ;;  %4982 = vst [vmem:[#allocation35_spill] sm:$0xff] %v3801_v31  ;;  %4983 = vst [vmem:[#allocation36_spill] sm:$0xff] %v3803_v32  ;;  %v3805_v33 = vld [vmem:[#allocation6 + $0x1c4] ss:$20 sps:$4 sm:$0xff]   ;;  %v3815_v36 = vld [vmem:[#allocation6 + $0x1e0] ss:$20 sps:$4 sm:$0xff]  }
  0x56   :  { %2958 = vperm.xlu0 %2885, %v2957_v45   ;;  %4984 = vst [vmem:[#allocation37_spill] sm:$0xff] %v3805_v33  ;;  %4987 = vst [vmem:[#allocation40_spill] sm:$0xff] %v3815_v36  ;;  %v3817_v37 = vld [vmem:[#allocation6 + $0x1ec] ss:$20 sps:$4 sm:$0xff]   ;;  %v3820_v38 = vld [vmem:[#allocation6 + $0x1e8] ss:$20 sps:$4 sm:$0xff]  }
  0x57   :  { %2848 = vmatpush3.bf16.msra.mxu0 %v3030_v53  ;;  %v3685_v53 = vld [vmem:[#allocation6 + $0x34] ss:$20 sps:$4 sm:$0xff]   ;;  %4988 = vst [vmem:[#allocation41_spill] sm:$0xff] %v3817_v37  ;;  %4989 = vst [vmem:[#allocation42_spill] sm:$0xff] %v3820_v38  ;;  %v3825_v40 = vld [vmem:[#allocation6 + $0x20c] ss:$20 sps:$4 sm:$0xff]  }
  0x58   :  { %2849 = vmatprep.subr.bf16.mxu0 %v3035_v63  ;;  %4990 = vst [vmem:[#allocation43_spill] sm:$0xff] %v3825_v40  ;;  %v3827_v41 = vld [vmem:[#allocation6 + $0x208] ss:$20 sps:$4 sm:$0xff]   ;;  %v3832_v43 = vld [vmem:[#allocation6 + $0x210] ss:$20 sps:$4 sm:$0xff]  }
  0x59   :  { %4991 = vst [vmem:[#allocation44_spill] sm:$0xff] %v3827_v41  ;;  %v3829_v42 = vld [vmem:[#allocation6 + $0x214] ss:$20 sps:$4 sm:$0xff]   ;;  %4993 = vst [vmem:[#allocation46_spill] sm:$0xff] %v3832_v43  ;;  %v3841_v45 = vld [vmem:[#allocation6 + $0x23c] ss:$20 sps:$4 sm:$0xff]  }
  0x5a   :  { %421 = vmatmul.mubr.bf16.gmra.mrb[8].mxu0 %v3592_v1  ;;  %2968 = vperm.xlu0 %2885, %v2967_v46   ;;  %4992 = vst [vmem:[#allocation45_spill] sm:$0xff] %v3829_v42  ;;  %v3837_v44 = vld [vmem:[#allocation6 + $0x234] ss:$20 sps:$4 sm:$0xff]   ;;  %4996 = vst [vmem:[#allocation49_spill] sm:$0xff] %v3841_v45  ;;  %v3844_v46 = vld [vmem:[#allocation6 + $0x238] ss:$20 sps:$4 sm:$0xff]  }
  0x5b   :  { %2850 = vmatpush3.bf16.msra.mxu0 %v3035_v63  ;;  %430 = vmatprep.mubr.bf16.mxu0 %v3463_v0  ;;  %v3717_v63 = vld [vmem:[#allocation6 + $0xa4] ss:$20 sps:$4 sm:$0xff]   ;;  %4994 = vst [vmem:[#allocation47_spill] sm:$0xff] %v3837_v44  ;;  %4997 = vst [vmem:[#allocation50_spill] sm:$0xff] %v3844_v46 }
  0x5c   :  { %2851 = vmatprep.subr.bf16.mxu0 %v3039_v7  ;;  %492 = vmatmul.mubr.bf16.gmra.mrb[8].mxu1 %v3592_v1  ;;  %v3851_v39 = vld [vmem:[#allocation6 + $0x258] ss:$20 sps:$4 sm:$0xff]  }
  0x5d   :  { %501 = vmatprep.mubr.bf16.mxu1 %v3463_v0  ;;  %v3671_v0 = vld [vmem:[#allocation6] ss:$20 sps:$4 sm:$0xff]   ;;  %4999 = vst [vmem:[#allocation52_spill] sm:$0xff] %v3851_v39 }
  0x5e   :  { %2978 = vperm.xlu0 %2885, %v2977_v47   ;;  %1219 = vmatpush1.bf16.msra.mxu1 %v3671_v0  ;;  %v3849_v47 = vld [vmem:[#allocation6 + $0x25c] ss:$20 sps:$4 sm:$0xff]  }
  0x5f   :  { %2852 = vmatpush3.bf16.msra.mxu0 %v3039_v7  ;;  %v3736_v7 = vld [vmem:[#allocation6 + $0xd0] ss:$20 sps:$4 sm:$0xff]   ;;  %4998 = vst [vmem:[#allocation51_spill] sm:$0xff] %v3849_v47 }
  0x60   :  { %2853 = vmatprep.subr.bf16.mxu0 %v3044_v16  ;;  %4969 = vst [vmem:[#allocation22_spill] sm:$0xff] %v3736_v7 }
  0x62   :  { %431 = vmatmul.mubr.bf16.gmra.mrb[12].mxu0 %v3041_v19 }
  0x63   :  { %2854 = vmatpush3.bf16.msra.mxu0 %v3044_v16  ;;  %2857 = vmatprep.mubr.bf16.mxu0 %v3538_v29  ;;  %v2962_v29 = vpack.i.bf16 %v2705_v35, %v2703_v34  ;;  %v3760_v16 = vld [vmem:[#allocation6 + $0x120] ss:$20 sps:$4 sm:$0xff]   ;;  %v3813_v35 = vld [vmem:[#allocation6 + $0x1e4] ss:$20 sps:$4 sm:$0xff]  }
  0x64   :  { %2855 = vmatprep.subr.bf16.mxu0 %v3046_v28  ;;  %502 = vmatmul.mubr.bf16.gmra.mrb[12].mxu1 %v3041_v19  ;;  %4973 = vst [vmem:[#allocation26_spill] sm:$0xff] %v3760_v16  ;;  %v3808_v34 = vld [vmem:[#allocation6 + $0x1c0] ss:$20 sps:$4 sm:$0xff]   ;;  %4986 = vst [vmem:[#allocation39_spill] sm:$0xff] %v3813_v35 }
  0x65   :  { %2963 = vperm.xlu1 %2896, %v2962_v29   ;;  %4985 = vst [vmem:[#allocation38_spill] sm:$0xff] %v3808_v34  ;;  %v3839_v29 = vld [vmem:[#allocation6 + $0x230] ss:$20 sps:$4 sm:$0xff]  }
  0x66   :  { %4995 = vst [vmem:[#allocation48_spill] sm:$0xff] %v3839_v29 }
  0x67   :  { %2856 = vmatpush3.bf16.msra.mxu0 %v3046_v28  ;;  %v3793_v28 = vld [vmem:[#allocation6 + $0x19c] ss:$20 sps:$4 sm:$0xff]  }
  0x68   :  { %1259 = vmatprep.subr.bf16.mxu0 %v3673_v50  ;;  %4980 = vst [vmem:[#allocation33_spill] sm:$0xff] %v3793_v28 }
  0x6a   :  { %2858 = vmatmul.mubr.bf16.vlgmr.msra.gmra.mrb[16].mxu0 %v3566_v49  ;;  %v3681_v49 = vld [vmem:[#allocation6 + $0x2c] ss:$20 sps:$4 sm:$0xff]  }
  0x6b   :  { %2861 = vmatprep.mubr.bf16.mxu0 %v3592_v1  ;;  %1260 = vmatpush1.bf16.msra.mxu0 %v3676_v51  ;;  %v3719_v1 = vld [vmem:[#allocation6 + $0xa0] ss:$20 sps:$4 sm:$0xff]  }
  0x6c   :  { %1220 = vmatprep.subr.bf16.mxu1 %v3681_v49  ;;  %1261 = vmatprep.subr.bf16.mxu0 %v3685_v53 }
  0x6d   :  { %1221 = vmatpush1.bf16.msra.mxu1 %v3683_v52 }
  0x6e   :  { %1222 = vmatprep.subr.bf16.mxu1 %v3693_v55 }
  0x6f   :  { %1262 = vmatpush1.bf16.msra.mxu0 %v3688_v54 }
  0x70   :  { %1263 = vmatprep.subr.bf16.mxu0 %v3697_v57 }
  0x71   :  { %1223 = vmatpush1.bf16.msra.mxu1 %v3695_v56 }
  0x72   :  { %2862 = vmatmul.mubr.bf16.gmra.mrb[20].mxu0 %v3041_v19  ;;  %1224 = vmatprep.subr.bf16.mxu1 %v3705_v59  ;;  %v3767_v19 = vld [vmem:[#allocation6 + $0x140] ss:$20 sps:$4 sm:$0xff]  }
  0x73   :  { %1264 = vmatpush1.bf16.msra.mxu0 %v3700_v58 }
  0x74   :  { %1265 = vmatprep.subr.bf16.mxu0 %v3709_v61 }
  0x75   :  { %1225 = vmatpush1.bf16.msra.mxu1 %v3707_v60 }
  0x76   :  { %1226 = vmatprep.subr.bf16.mxu1 %v3717_v63 }
  0x77   :  { %1266 = vmatpush1.bf16.msra.mxu0 %v3712_v62 }
  0x78   :  { %1267 = vmatprep.subr.bf16.mxu0 %v3721_v2 }
  0x79   :  { %1227 = vmatpush1.bf16.msra.mxu1 %v3719_v1 }
  0x7a   :  { %1228 = vmatprep.subr.bf16.mxu1 %v3725_v4 }
  0x7b   :  { %1268 = vmatpush1.bf16.msra.mxu0 %v3723_v3 }
  0x7c   :  { %1269 = vmatprep.subr.bf16.mxu0 %v3729_v5 }
  0x7d   :  { %1229 = vmatpush1.bf16.msra.mxu1 %v3732_v6 }
  0x7e   :  { %1230 = vmatprep.subr.bf16.mxu1 %v3741_v8 }
  0x7f   :  { %1270 = vmatpush1.bf16.msra.mxu0 %v3736_v7 }
  0x80   :  { %1271 = vmatprep.subr.bf16.mxu0 %v3745_v10 }
  0x81   :  { %1231 = vmatpush1.bf16.msra.mxu1 %v3743_v9 }
  0x82   :  { %1232 = vmatprep.subr.bf16.mxu1 %v3753_v12 }
  0x83   :  { %1272 = vmatpush1.bf16.msra.mxu0 %v3748_v11 }
  0x84   :  { %1273 = vmatprep.subr.bf16.mxu0 %v3757_v14 }
  0x85   :  { %1233 = vmatpush1.bf16.msra.mxu1 %v3755_v13 }
  0x86   :  { %1234 = vmatprep.subr.bf16.mxu1 %v3765_v17 }
  0x87   :  { %1274 = vmatpush1.bf16.msra.mxu0 %v3760_v16 }
  0x88   :  { %1275 = vmatprep.subr.bf16.mxu0 %v3769_v20 }
  0x89   :  { %1235 = vmatpush1.bf16.msra.mxu1 %v3767_v19 }
  0x8a   :  { %1236 = vmatprep.subr.bf16.mxu1 %v3777_v22 }
  0x8b   :  { %1276 = vmatpush1.bf16.msra.mxu0 %v3772_v21 }
  0x8c   :  { %1277 = vmatprep.subr.bf16.mxu0 %v3781_v24 }
  0x8d   :  { %1237 = vmatpush1.bf16.msra.mxu1 %v3779_v23 }
  0x8e   :  { %1238 = vmatprep.subr.bf16.mxu1 %v3789_v26 }
  0x8f   :  { %1278 = vmatpush1.bf16.msra.mxu0 %v3784_v25 }
  0x90   :  { %1279 = vmatprep.subr.bf16.mxu0 %v3793_v28 }
  0x91   :  { %1239 = vmatpush1.bf16.msra.mxu1 %v3791_v27 }
  0x92   :  { %1240 = vmatprep.subr.bf16.mxu1 %v3801_v31 }
  0x93   :  { %1280 = vmatpush1.bf16.msra.mxu0 %v3796_v30 }
  0x94   :  { %1281 = vmatprep.subr.bf16.mxu0 %v3805_v33  ;;  %v113_v33 = vlaneseq }
  0x95   :  { %1241 = vmatpush1.bf16.msra.mxu1 %v3803_v32 }
  0x96   :  { %1242 = vmatprep.subr.bf16.mxu1 %v3813_v35  ;;  %v3873_v30 = vshrl.u32 %v113_v33, 7 }
  0x97   :  { %1282 = vmatpush1.bf16.msra.mxu0 %v3808_v34 }
  0x98   :  { %1283 = vmatprep.subr.bf16.mxu0 %v3817_v37  ;;  %5004 = vst [vmem:[#allocation56_spill] sm:$0xff] %v3873_v30  ;;  %v115_v24 = vsub.s32 0, %v3873_v30 }
  0x99   :  { %1243 = vmatpush1.bf16.msra.mxu1 %v3815_v36 }
  0x9a   :  { %1244 = vmatprep.subr.bf16.mxu1 %v3825_v40 }
  0x9b   :  { %1284 = vmatpush1.bf16.msra.mxu0 %v3820_v38  ;;  %v3861_v38 = vld [vmem:[#allocation6 + $0x150] ss:$20 sps:$4 sm:$0xff]  }
  0x9c   :  { %1285 = vmatprep.subr.bf16.mxu0 %v3829_v42  ;;  %v3855_v42 = vld [vmem:[#allocation6 + $0x260] ss:$20 sps:$4 sm:$0xff]   ;;  %5002 = vst [vmem:[#allocation55_spill] sm:$0xff] %v3861_v38 }
  0x9d   :  { %1245 = vmatpush1.bf16.msra.mxu1 %v3827_v41  ;;  %5001 = vst [vmem:[#allocation54_spill] sm:$0xff] %v3855_v42 }
  0x9e   :  { %1246 = vmatprep.subr.bf16.mxu1 %v3837_v44 }
  0x9f   :  { %1286 = vmatpush1.bf16.msra.mxu0 %v3832_v43  ;;  %v3853_v43 = vld [vmem:[#allocation6 + $0x264] ss:$20 sps:$4 sm:$0xff]  }
  0xa0   :  { %1287 = vmatprep.subr.bf16.mxu0 %v3841_v45  ;;  %5000 = vst [vmem:[#allocation53_spill] sm:$0xff] %v3853_v43 }
  0xa1   :  { %1247 = vmatpush1.bf16.msra.mxu1 %v3839_v29 }
  0xa2   :  { %1248 = vmatprep.subr.bf16.mxu1 %v3849_v47 }
  0xa3   :  { %1288 = vmatpush1.bf16.msra.mxu0 %v3844_v46  ;;  %v5003_v46 = vmov 0.0  }
  0xa4   :  { %1289 = vmatprep.subr.bf16.mxu0 %v3853_v43  ;;  %v2709_v45 = vsel %vm2256_vm4, 1.0, %v5003_v46  ;;  %v2710_v43 = vsel %vm2259_vm5, 1.0, %v5003_v46  ;;  %v2714_v37 = vsel %vm2307_vm7, 1.0, %v5003_v46 }
  0xa5   :  { %1249 = vmatpush1.bf16.msra.mxu1 %v3851_v39  ;;  %v2972_v34 = vpack.i.bf16 %v2709_v45, %v2710_v43 }
  0xa6   :  { %2731 = vmatprep.subr.bf16.mxu1 %v3861_v38 }
  0xa7   :  { %1290 = vmatpush1.bf16.msra.mxu0 %v3855_v42  ;;  %v2713_v42 = vsel %vm2304_vm6, 1.0, %v5003_v46  ;;  %2973 = vperm.xlu1 %2896, %v2972_v34   ;;  %v3883_v46 = vld [vmem:[%s4798_s5] sm:$0x1f]  ;;  %s3465_s5 = smov [#allocation8]  }
  0xa8   :  { %1460 = vmatprep.subr.bf16.mxu0 %v3669_v48  ;;  %v2982_v48 = vpack.i.bf16 %v2713_v42, %v2714_v37  ;;  %5005 = vst [vmem:[#allocation57_spill] sm:$0xff] %v3883_v46  ;;  %s2497_s27 = sshll.u32 %s3465_s5, 4  ;;  %s2498_s27 = int_to_ptr.vmem [resolvable:$true] %s2497_s27 }
  0xa9   :  { %s3407_s28 = scalar_lea.vmem %s2498_s27, 128  ;;  %p3412_p3 = scmp.lt.s32.totalorder %s2498_s27, %s2498_s27 }
  0xaa   :  { %p3408_p2 = scmp.ne.s32.totalorder %s2498_s27, %s3407_s28  ;;  %p3413_p4 = scmp.lt.s32.totalorder %s3407_s28, %s3407_s28 }
  0xab   :  { %2983 = vperm.xlu1 %2896, %v2982_v48   ;;  %v3888_v48 = vrot.slane %v3883_v46, %v115_v24 }
  0xac   :  { %p3414_p5 = por %p3413_p4, %p3412_p3 }
  0xad   :  { %5006 = vst [vmem:[#allocation58_spill] sm:$0xff] %v3888_v48 }
  0xae   :  { %p3415_p6 = pnand %p3414_p5, %p3408_p2 }
  0xb6   :  { %v3875_v28 = vpop.permute.xlu1 %2898 }
  0xb8   :  { %v3877_v25 = vpop.permute.xlu0 %2887 }
  0xba   :  { %v3885_v37 = vpop.permute.xlu1 %2903 }
  0xbb   :  { %v5044_v27 = vunpack.i.l.bf16 %v3885_v37 }
  0xbc   :  { %v3890_v33 = vpop.permute.xlu0 %2892 }
  0xbe   :  { %v3899_v38 = vpop.permute.xlu1 %2913 }
  0xc0   :  { %v3904_v16 = vpop.permute.xlu0 %2908 }
  0xc1   :  { %5011 = vst [vmem:[#allocation63_spill] sm:$0xff] %v3904_v16 }
 0x11d   :  { %v402_v15 = vpop.f32.mrb[0].mxu0 }
 0x11e   :  { %v404_v18 = vpop.f32.mrb[1].mxu0  ;;  %v403_v45 = vadd.f32 %v402_v15, %v3888_v48 }
 0x11f   :  { %v406_v21 = vpop.f32.mrb[2].mxu0 }
 0x120   :  { %v408_v34 = vpop.f32.mrb[3].mxu0  ;;  %v407_v20 = vadd.f32 %v406_v21, %v3888_v48  ;;  %v2565_v29 = vmul.f32 -1.442695, %v403_v45 }
 0x121   :  { %v473_v34 = vpop.f32.mrb[0].mxu1 }
 0x122   :  { %v475_v24 = vpop.f32.mrb[1].mxu1  ;;  %3159 = vpow2.f32 %v2565_v29  ;;  %v3918_v34 = vpop.permute.xlu0 %2918 }
 0x123   :  { %v477_v47 = vpop.f32.mrb[2].mxu1 }
 0x124   :  { %v479_v14 = vpop.f32.mrb[3].mxu1 }
 0x125   :  { %v3892_v42 = vpop.f32.mrb[4].mxu0 }
 0x126   :  { %5007 = vst [vmem:[#allocation59_spill] sm:$0xff] %v3892_v42  ;;  %v3894_v43 = vpop.f32.mrb[5].mxu0  ;;  %v127_v42 = vsub.s32 3, %v3873_v30 }
 0x127   :  { %5008 = vst [vmem:[#allocation60_spill] sm:$0xff] %v3894_v43  ;;  %v3897_v18 = vpop.f32.mrb[6].mxu0  ;;  %v2567_v43 = vmul.f32 -1.442695, %v407_v20  ;;  %v3922_v45 = vpop.f32.mrb[4].mxu1 }
 0x128   :  { %5009 = vst [vmem:[#allocation61_spill] sm:$0xff] %v3897_v18  ;;  %v3901_v39 = vpop.f32.mrb[7].mxu0  ;;  %v3911_v18 = vpop.permute.xlu1 %2923  ;;  %v3916_v21 = vrot.slane %v3883_v46, %v127_v42  ;;  %5018 = vst [vmem:[#allocation70_spill] sm:$0xff] %v3922_v45  ;;  %v131_v42 = vsub.s32 4, %v3873_v30 }
 0x129   :  { %5010 = vst [vmem:[#allocation62_spill] sm:$0xff] %v3901_v39  ;;  %5014 = vst [vmem:[#allocation66_spill] sm:$0xff] %v3911_v18  ;;  %3161 = vpow2.f32 %v2567_v43  ;;  %v3924_v20 = vpop.f32.mrb[5].mxu1  ;;  %v3935_v18 = vpop.permute.xlu0 %2928 }
 0x12a   :  { %5016 = vst [vmem:[#allocation68_spill] sm:$0xff] %v3916_v21  ;;  %5019 = vst [vmem:[#allocation71_spill] sm:$0xff] %v3924_v20  ;;  %v480_v29 = vadd.f32 %v479_v14, %v3916_v21 }
 0x12b   :  { %5022 = vst [vmem:[#allocation74_spill] sm:$0xff] %v3935_v18 }
 0x12c   :  { %v2568_v48 = vmul.f32 -1.442695, %v480_v29  ;;  %v3160_v43 = vpop.eup %3159 }
 0x12d   :  { %v3907_v11 = vpop.f32.mrb[8].mxu0  ;;  %v618_v30 = vadd.f32 1.0, %v3160_v43  ;;  %v3948_v18 = vpop.permute.xlu0 %2938 }
 0x12e   :  { %5012 = vst [vmem:[#allocation64_spill] sm:$0xff] %v3907_v11  ;;  %v3909_v15 = vpop.f32.mrb[9].mxu0  ;;  %v3926_v11 = vpop.f32.mrb[6].mxu1  ;;  %v2941_v10 = vunpack.i.h.bf16 %v3948_v18 }
 0x12f   :  { %5013 = vst [vmem:[#allocation65_spill] sm:$0xff] %v3909_v15  ;;  %v3913_v39 = vpop.f32.mrb[10].mxu0  ;;  %5020 = vst [vmem:[#allocation72_spill] sm:$0xff] %v3926_v11  ;;  %v476_v15 = vadd.f32 %v475_v24, %v3916_v21  ;;  %v3929_v16 = vpop.f32.mrb[7].mxu1  ;;  %v132_v11 = vrot.slane %v3883_v46, %v131_v42 }
 0x130   :  { %5015 = vst [vmem:[#allocation67_spill] sm:$0xff] %v3913_v39  ;;  %v3920_v47 = vpop.f32.mrb[11].mxu0  ;;  %5021 = vst [vmem:[#allocation73_spill] sm:$0xff] %v3929_v16  ;;  %v3932_v39 = vpop.permute.xlu1 %2933 }
 0x131   :  { %5017 = vst [vmem:[#allocation69_spill] sm:$0xff] %v3920_v47  ;;  %v2566_v47 = vmul.f32 -1.442695, %v476_v15  ;;  %v3937_v45 = vpop.f32.mrb[8].mxu1  ;;  %v3956_v43 = vpop.permute.xlu0 %2948 }
 0x132   :  { %5023 = vst [vmem:[#allocation75_spill] sm:$0xff] %v3937_v45  ;;  %v3939_v20 = vpop.f32.mrb[9].mxu1  ;;  %5031 = vst [vmem:[#allocation83_spill] sm:$0xff] %v3956_v43 }
 0x133   :  { %5024 = vst [vmem:[#allocation76_spill] sm:$0xff] %v3939_v20  ;;  %v3942_v24 = vpop.f32.mrb[10].mxu1  ;;  %v3162_v16 = vpop.eup %3161  ;;  %3163 = vpow2.f32 %v2566_v47 }
 0x134   :  { %5025 = vst [vmem:[#allocation77_spill] sm:$0xff] %v3942_v24  ;;  %v3944_v14 = vpop.permute.xlu1 %2943  ;;  %v3946_v21 = vpop.f32.mrb[11].mxu1  ;;  %3165 = vpow2.f32 %v2568_v48  ;;  %v637_v29 = vadd.f32 1.0, %v3162_v16 }
 0x135   :  { %5026 = vst [vmem:[#allocation78_spill] sm:$0xff] %v3944_v14  ;;  %5027 = vst [vmem:[#allocation79_spill] sm:$0xff] %v3946_v21  ;;  %3167 = vrcp.f32 %v618_v30 }
 0x138   :  { %v3954_v14 = vpop.permute.xlu1 %2953 }
 0x139   :  { %5030 = vst [vmem:[#allocation82_spill] sm:$0xff] %v3954_v14 }
 0x13d   :  { %v2859_v15 = vpop.f32.mrb[16].mxu0  ;;  %v3164_v48 = vpop.eup %3163 }
 0x13e   :  { %v3950_v45 = vadd.f32 %v2859_v15, %v132_v11  ;;  %v544_v44 = vpop.f32.mrb[17].mxu0  ;;  %v3166_v16 = vpop.eup %3165  ;;  %v619_v43 = vadd.f32 1.0, %v3164_v48 }
 0x13f   :  { %v545_v20 = vadd.f32 %v544_v44, %v132_v11  ;;  %v2860_v41 = vpop.f32.mrb[18].mxu0  ;;  %v638_v30 = vadd.f32 1.0, %v3166_v16 }
 0x140   :  { %5028 = vst [vmem:[#allocation80_spill] sm:$0xff] %v3950_v45  ;;  %v3952_v42 = vadd.f32 %v2860_v41, %v132_v11  ;;  %v547_v24 = vpop.f32.mrb[19].mxu0  ;;  %v3962_v41 = vpop.permute.xlu1 %2963 }
 0x141   :  { %3169 = vtanh.f32 %v545_v20  ;;  %v548_v47 = vadd.f32 %v547_v24, %v132_v11  ;;  %v2966_v44 = vunpack.i.h.bf16 %v3962_v41 }
 0x142   :  { %5029 = vst [vmem:[#allocation81_spill] sm:$0xff] %v3952_v42  ;;  %3171 = vrcp.f32 %v637_v29  ;;  %v3969_v42 = vpop.permute.xlu0 %2958 }
 0x143   :  { %3173 = vtanh.f32 %v548_v47  ;;  %v2940_v47 = vunpack.i.l.bf16 %v3948_v18  ;;  %v2960_v16 = vunpack.i.l.bf16 %v3969_v42  ;;  %v2961_v29 = vunpack.i.h.bf16 %v3969_v42 }
 0x144   :  { %3175 = vrcp.f32 %v619_v43  ;;  %v5035_v18 = vunpack.i.l.bf16 %v3932_v39 }
 0x145   :  { %v2863_v21 = vpop.f32.mrb[20].mxu0  ;;  %3177 = vrcp.f32 %v638_v30  ;;  %v5037_v30 = vunpack.i.h.bf16 %v3877_v25 }
 0x146   :  { %v3958_v15 = vadd.f32 %v2863_v21, %v132_v11  ;;  %v560_v45 = vpop.f32.mrb[21].mxu0 }
 0x147   :  { %v3964_v20 = vadd.f32 %v560_v45, %v132_v11  ;;  %v2864_v24 = vpop.f32.mrb[22].mxu0  ;;  %v3168_v45 = vpop.eup %3167 }
 0x148   :  { %5032 = vst [vmem:[#allocation84_spill] sm:$0xff] %v3958_v15  ;;  %v563_v21 = vpop.f32.mrb[23].mxu0  ;;  %v2894_v24 = vunpack.i.l.bf16 %v3890_v33  ;;  %v2965_v15 = vunpack.i.l.bf16 %v3962_v41  ;;  %v5036_v41 = vunpack.i.l.bf16 %v3877_v25 }
 0x149   :  { %5033 = vst [vmem:[#allocation85_spill] sm:$0xff] %v3964_v20  ;;  %v3973_v46 = vadd.f32 %v563_v21, %v132_v11  ;;  %v5038_v20 = vunpack.i.h.bf16 %v3890_v33 }
 0x14b   :  { %5034 = vst [vmem:[#allocation86_spill] sm:$0xff] %v3973_v46  ;;  %v3170_v48 = vpop.eup %3169 }
 0x14c   :  { %v3172_v11 = vpop.eup %3171  ;;  %v625_v21 = vmul.f32 %v3170_v48, %v3168_v45 }
 0x14d   :  { %v3174_v46 = vpop.eup %3173 }
 0x14e   :  { %3179 = vtanh.f32 %v625_v21  ;;  %v1916_v40 = vmul.f32 %v5035_v18, %v625_v21  ;;  %v644_v36 = vmul.f32 %v3174_v46, %v3172_v11  ;;  %v1907_v5 = vmul.f32 %v2940_v47, %v625_v21 }
 0x14f   :  { %v2197_v43 = vmul.f32 %v2965_v15, %v625_v21  ;;  %v2206_v45 = vmul.f32 %v2960_v16, %v625_v21  ;;  %v678_v48 = vmul.f32 %v5036_v41, %v625_v21  ;;  %v669_v42 = vmul.f32 %v2894_v24, %v625_v21 }
 0x150   :  { %3181 = vtanh.f32 %v644_v36  ;;  %v1931_v3 = vmul.f32 %v2941_v10, %v644_v36  ;;  %v2221_v14 = vmul.f32 %v2966_v44, %v644_v36  ;;  %v2230_v35 = vmul.f32 %v2961_v29, %v644_v36 }
 0x151   :  { %v702_v7 = vmul.f32 %v5037_v30, %v644_v36  ;;  %v693_v32 = vmul.f32 %v5038_v20, %v644_v36  ;;  %v5039_v18 = vunpack.i.l.bf16 %v3875_v28  ;;  %v5040_v11 = vunpack.i.h.bf16 %v3875_v28 }
 0x152   :  { %v4000_v62 = vadd.f32 %v1931_v3, %v1907_v5  ;;  %v4002_v41 = vadd.f32 %v2221_v14, %v2197_v43  ;;  %v4004_v31 = vadd.f32 %v2230_v35, %v2206_v45  ;;  %v1399_v61 = vmul.f32 %v5044_v27, %v625_v21 }
 0x153   :  { %v1408_v46 = vmul.f32 %v5039_v18, %v625_v21  ;;  %v1432_v2 = vmul.f32 %v5040_v11, %v644_v36  ;;  %v4008_v58 = vadd.f32 %v702_v7, %v678_v48  ;;  %v4010_v30 = vadd.f32 %v693_v32, %v669_v42  ;;  %v3176_v48 = vpop.eup %3175 }
 0x154   :  { %5041 = vst [vmem:[#allocation87_spill] sm:$0xff] %v4000_v62  ;;  %5042 = vst [vmem:[#allocation88_spill] sm:$0xff] %v4002_v41  ;;  %v5045_v18 = vunpack.i.h.bf16 %v3885_v37  ;;  %v5046_v11 = vunpack.i.l.bf16 %v3899_v38  ;;  %v5047_v5 = vunpack.i.h.bf16 %v3899_v38  ;;  %v5048_v35 = vunpack.i.l.bf16 %v3918_v34 }
 0x155   :  { %5043 = vst [vmem:[#allocation89_spill] sm:$0xff] %v4004_v31  ;;  %v4012_v20 = vadd.f32 %v1432_v2, %v1408_v46  ;;  %v5049_v27 = vunpack.i.h.bf16 %v3918_v34  ;;  %v5051_v2 = vunpack.i.h.bf16 %v3932_v39 }
 0x156   :  { %v1423_v26 = vmul.f32 %v5045_v18, %v644_v36  ;;  %v1650_v3 = vmul.f32 %v5046_v11, %v625_v21  ;;  %v1674_v14 = vmul.f32 %v5047_v5, %v644_v36  ;;  %v1641_v43 = vmul.f32 %v5048_v35, %v625_v21  ;;  %v3178_v18 = vpop.eup %3177 }
 0x157   :  { %v1665_v7 = vmul.f32 %v5049_v27, %v644_v36  ;;  %v1940_v32 = vmul.f32 %v5051_v2, %v644_v36  ;;  %v5053_v36 = vunpack.i.l.bf16 %v3875_v28 }
 0x158   :  { %v4024_v45 = vadd.f32 %v1423_v26, %v1399_v61  ;;  %v4028_v42 = vadd.f32 %v1674_v14, %v1650_v3  ;;  %v3180_v5 = vpop.eup %3179  ;;  %v5052_v61 = vunpack.i.l.bf16 %v3877_v25 }
 0x159   :  { %v4030_v46 = vadd.f32 %v1665_v7, %v1641_v43  ;;  %v4032_v11 = vadd.f32 %v1940_v32, %v1916_v40  ;;  %v627_v31 = vmul.f32 %v3180_v5, %v3176_v48  ;;  %v5054_v40 = vunpack.i.h.bf16 %v3877_v25 }
 0x15a   :  { %5050 = vst [vmem:[#allocation90_spill] sm:$0xff] %v4024_v45  ;;  %v3182_v41 = vpop.eup %3181  ;;  %v5055_v32 = vunpack.i.h.bf16 %v3890_v33 }
 0x15b   :  { %v646_v21 = vmul.f32 %v3182_v41, %v3178_v18  ;;  %v1905_v35 = vmul.f32 %v2940_v47, %v627_v31  ;;  %v2195_v62 = vmul.f32 %v2965_v15, %v627_v31  ;;  %v2204_v27 = vmul.f32 %v2960_v16, %v627_v31 }
 0x15c   :  { %v676_v26 = vmul.f32 %v5052_v61, %v627_v31  ;;  %v667_v45 = vmul.f32 %v2894_v24, %v627_v31  ;;  %v1406_v3 = vmul.f32 %v5053_v36, %v627_v31  ;;  %v5056_v47 = vunpack.i.h.bf16 %v3875_v28 }
 0x15d   :  { %v1929_v14 = vmul.f32 %v2941_v10, %v646_v21  ;;  %v2219_v43 = vmul.f32 %v2966_v44, %v646_v21  ;;  %v2228_v7 = vmul.f32 %v2961_v29, %v646_v21  ;;  %v700_v2 = vmul.f32 %v5054_v40, %v646_v21 }
 0x15e   :  { %v691_v48 = vmul.f32 %v5055_v32, %v646_v21  ;;  %v1430_v15 = vmul.f32 %v5056_v47, %v646_v21  ;;  %v5057_v16 = vunpack.i.l.bf16 %v3885_v37  ;;  %v5058_v24 = vunpack.i.h.bf16 %v3885_v37  ;;  %v4060_v32 = vld [vmem:[#allocation6 + $0x10] ss:$20 sps:$4 sm:$0xff]  }
 0x15f   :  { %v4048_v5 = vadd.f32 %v1929_v14, %v1905_v35  ;;  %v4050_v10 = vadd.f32 %v2219_v43, %v2195_v62  ;;  %v4052_v44 = vadd.f32 %v2228_v7, %v2204_v27  ;;  %v701_v25 = vadd.f32 %v700_v2, %v676_v26  ;;  %v4070_v7 = vld [vmem:[#allocation6 + $0x178] ss:$20 sps:$4 sm:$0xff]  }
 0x160   :  { %v1397_v41 = vmul.f32 %v5057_v16, %v627_v31  ;;  %v1421_v18 = vmul.f32 %v5058_v24, %v646_v21  ;;  %v692_v29 = vadd.f32 %v691_v48, %v667_v45  ;;  %v4054_v61 = vadd.f32 %v1430_v15, %v1406_v3  ;;  %v4097_v16 = vld [vmem:[#allocation6 + $0x88] ss:$20 sps:$4 sm:$0xff]  }
 0x161   :  { %v5059_v28 = vunpack.i.l.bf16 %v3899_v38  ;;  %v705_v40 = vpack.c.bf16 %v701_v25, %v701_v25  ;;  %v5060_v37 = vunpack.i.h.bf16 %v3899_v38  ;;  %v5061_v62 = vunpack.i.l.bf16 %v3918_v34  ;;  %v5076_v24 = vld [vmem:[#allocation40_spill] sm:$0xff]  ;;  %v5078_v25 = vld [vmem:[#allocation22_spill] sm:$0xff] }
 0x162   :  { %v4056_v33 = vadd.f32 %v1421_v18, %v1397_v41  ;;  %v5062_v27 = vunpack.i.h.bf16 %v3918_v34  ;;  %v5063_v45 = vunpack.i.l.bf16 %v3932_v39  ;;  %v704_v43 = vpack.c.bf16 %v692_v29, %v692_v29  ;;  %v4084_v34 = vld [vmem:[#allocation6 + $0x1a0] ss:$20 sps:$4 sm:$0xff]  }
 0x163   :  { %v1648_v36 = vmul.f32 %v5059_v28, %v627_v31  ;;  %v1672_v35 = vmul.f32 %v5060_v37, %v646_v21  ;;  %v1639_v14 = vmul.f32 %v5061_v62, %v627_v31  ;;  %v5064_v2 = vunpack.i.h.bf16 %v3932_v39  ;;  %1250 = vmatprep.mubr.bf16.mxu1 %v705_v40  ;;  %1291 = vmatprep.mubr.bf16.mxu0 %v705_v40  ;;  %v4089_v39 = vld [vmem:[#allocation6 + $0x60] ss:$20 sps:$4 sm:$0xff]   ;;  %v5080_v28 = vld [vmem:[#allocation44_spill] sm:$0xff] }
 0x164   :  { %v1663_v26 = vmul.f32 %v5062_v27, %v646_v21  ;;  %v1914_v3 = vmul.f32 %v5063_v45, %v627_v31  ;;  %1251 = vmatmul.mubr.bf16.vlgmr.msra.gmra.mrb[16].mxu1 %v704_v43  ;;  %1292 = vmatmul.mubr.bf16.vlgmr.msra.gmra.mrb[24].mxu0 %v704_v43  ;;  %v4081_v31 = vld [vmem:[#allocation6 + $0x38] ss:$20 sps:$4 sm:$0xff]   ;;  %v5075_v41 = vld [vmem:[#allocation21_spill] sm:$0xff]  ;;  %v5077_v18 = vld [vmem:[#allocation43_spill] sm:$0xff] }
 0x165   :  { %v1938_v48 = vmul.f32 %v5064_v2, %v646_v21  ;;  %v4074_v47 = vadd.f32 %v1672_v35, %v1648_v36  ;;  %2732 = vmatpush3.bf16.msra.mxu1 %v4060_v32  ;;  %1332 = vmatprep.mubr.bf16.mxu1 %v705_v40  ;;  %v4092_v21 = vld [vmem:[#allocation6 + $0x1c8] ss:$20 sps:$4 sm:$0xff]   ;;  %v5079_v29 = vld [vmem:[#allocation23_spill] sm:$0xff]  ;;  %v5083_v37 = vld [vmem:[#allocation25_spill] sm:$0xff] }
 0x166   :  { %v4076_v38 = vadd.f32 %v1663_v26, %v1639_v14  ;;  %2733 = vmatprep.subr.bf16.mxu1 %v4070_v7  ;;  %1461 = vmatpush1.bf16.msra.mxu0 %v3671_v0  ;;  %v4100_v0 = vld [vmem:[#allocation6 + $0x1f0] ss:$20 sps:$4 sm:$0xff]   ;;  %v5082_v40 = vld [vmem:[#allocation24_spill] sm:$0xff]  ;;  %v5086_v14 = vld [vmem:[#allocation26_spill] sm:$0xff] }
 0x167   :  { %v4078_v15 = vadd.f32 %v1938_v48, %v1914_v3  ;;  %1462 = vmatprep.subr.bf16.mxu0 %v3681_v49  ;;  %v4105_v49 = vld [vmem:[#allocation6 + $0xb0] ss:$20 sps:$4 sm:$0xff]   ;;  %v5084_v35 = vld [vmem:[#allocation48_spill] sm:$0xff]  ;;  %v5092_v2 = vld [vmem:[#allocation30_spill] sm:$0xff] }
 0x168   :  { %v5081_v36 = vld [vmem:[#allocation47_spill] sm:$0xff]  ;;  %v5088_v26 = vld [vmem:[#allocation52_spill] sm:$0xff]  ;;  %v5093_v48 = vld [vmem:[#allocation33_spill] sm:$0xff] }
 0x169   :  { %2734 = vmatpush3.bf16.msra.mxu1 %v4081_v31  ;;  %v5085_v62 = vld [vmem:[#allocation51_spill] sm:$0xff]  ;;  %v5090_v3 = vld [vmem:[#allocation28_spill] sm:$0xff] }
 0x16a   :  { %2735 = vmatprep.subr.bf16.mxu1 %v4084_v34  ;;  %1463 = vmatpush1.bf16.msra.mxu0 %v3683_v52  ;;  %v4108_v52 = vld [vmem:[#allocation6 + $0x218] ss:$20 sps:$4 sm:$0xff]   ;;  %v5087_v27 = vld [vmem:[#allocation27_spill] sm:$0xff] }
 0x16b   :  { %1464 = vmatprep.subr.bf16.mxu0 %v3693_v55  ;;  %v4113_v55 = vld [vmem:[#allocation6 + $0xd8] ss:$20 sps:$4 sm:$0xff]   ;;  %v5089_v45 = vld [vmem:[#allocation55_spill] sm:$0xff] }
 0x16d   :  { %2736 = vmatpush3.bf16.msra.mxu1 %v4089_v39 }
 0x16e   :  { %2737 = vmatprep.subr.bf16.mxu1 %v4092_v21  ;;  %1465 = vmatpush1.bf16.msra.mxu0 %v3695_v56  ;;  %v4116_v56 = vld [vmem:[#allocation6 + $0x240] ss:$20 sps:$4 sm:$0xff]  }
 0x16f   :  { %1466 = vmatprep.subr.bf16.mxu0 %v3705_v59  ;;  %v4121_v59 = vld [vmem:[#allocation6 + $0x100] ss:$20 sps:$4 sm:$0xff]  }
 0x171   :  { %2738 = vmatpush3.bf16.msra.mxu1 %v4097_v16 }
 0x172   :  { %2739 = vmatprep.subr.bf16.mxu1 %v4100_v0  ;;  %1467 = vmatpush1.bf16.msra.mxu0 %v3707_v60  ;;  %v4124_v60 = vld [vmem:[#allocation6 + $0x268] ss:$20 sps:$4 sm:$0xff]  }
 0x173   :  { %1468 = vmatprep.subr.bf16.mxu0 %v3717_v63  ;;  %v4129_v63 = vld [vmem:[#allocation6 + $0x128] ss:$20 sps:$4 sm:$0xff]  }
 0x175   :  { %2740 = vmatpush3.bf16.msra.mxu1 %v4105_v49 }
 0x176   :  { %2741 = vmatprep.subr.bf16.mxu1 %v4108_v52  ;;  %1469 = vmatpush1.bf16.msra.mxu0 %v3719_v1  ;;  %v5066_v1 = vld [vmem:[#allocation16_spill] sm:$0xff] }
 0x177   :  { %1470 = vmatprep.subr.bf16.mxu0 %v3725_v4  ;;  %v5067_v4 = vld [vmem:[#allocation17_spill] sm:$0xff] }
 0x179   :  { %2742 = vmatpush3.bf16.msra.mxu1 %v4113_v55 }
 0x17a   :  { %2743 = vmatprep.subr.bf16.mxu1 %v4116_v56  ;;  %1471 = vmatpush1.bf16.msra.mxu0 %v3732_v6  ;;  %v5068_v6 = vld [vmem:[#allocation32_spill] sm:$0xff] }
 0x17b   :  { %1472 = vmatprep.subr.bf16.mxu0 %v3741_v8  ;;  %v5071_v8 = vld [vmem:[#allocation19_spill] sm:$0xff] }
 0x17d   :  { %2744 = vmatpush3.bf16.msra.mxu1 %v4121_v59 }
 0x17e   :  { %2745 = vmatprep.subr.bf16.mxu1 %v4124_v60  ;;  %1473 = vmatpush1.bf16.msra.mxu0 %v3743_v9  ;;  %v5072_v9 = vld [vmem:[#allocation36_spill] sm:$0xff] }
 0x17f   :  { %1474 = vmatprep.subr.bf16.mxu0 %v3753_v12 }
 0x181   :  { %2746 = vmatpush3.bf16.msra.mxu1 %v4129_v63 }
 0x182   :  { %1501 = vmatprep.subr.bf16.mxu1 %v3673_v50  ;;  %1475 = vmatpush1.bf16.msra.mxu0 %v3755_v13  ;;  %v5065_v50 = vld [vmem:[#allocation31_spill] sm:$0xff] }
 0x183   :  { %1476 = vmatprep.subr.bf16.mxu0 %v3765_v17 }
 0x184   :  { %1333 = vmatmul.mubr.bf16.vlgmr.msra.gmra.mrb[20].mxu1 %v704_v43  ;;  %v5091_v43 = vld [vmem:[#allocation29_spill] sm:$0xff] }
 0x185   :  { %1502 = vmatpush1.bf16.msra.mxu1 %v3676_v51  ;;  %v5069_v51 = vld [vmem:[#allocation35_spill] sm:$0xff] }
 0x186   :  { %1503 = vmatprep.subr.bf16.mxu1 %v3685_v53  ;;  %1477 = vmatpush1.bf16.msra.mxu0 %v3767_v19  ;;  %v5070_v53 = vld [vmem:[#allocation18_spill] sm:$0xff] }
 0x187   :  { %1478 = vmatprep.subr.bf16.mxu0 %v3777_v22 }
 0x189   :  { %1504 = vmatpush1.bf16.msra.mxu1 %v3688_v54  ;;  %v5073_v54 = vld [vmem:[#allocation39_spill] sm:$0xff] }
 0x18a   :  { %1505 = vmatprep.subr.bf16.mxu1 %v3697_v57  ;;  %1479 = vmatpush1.bf16.msra.mxu0 %v3779_v23  ;;  %v5074_v57 = vld [vmem:[#allocation20_spill] sm:$0xff] }
 0x18b   :  { %1480 = vmatprep.subr.bf16.mxu0 %v5065_v50 }
 0x18d   :  { %1506 = vmatpush1.bf16.msra.mxu1 %v5066_v1  ;;  %v5094_v1 = vld [vmem:[#allocation34_spill] sm:$0xff] }
 0x18e   :  { %1507 = vmatprep.subr.bf16.mxu1 %v5067_v4  ;;  %1481 = vmatpush1.bf16.msra.mxu0 %v5068_v6  ;;  %v5095_v4 = vld [vmem:[#allocation37_spill] sm:$0xff] }
 0x18f   :  { %1482 = vmatprep.subr.bf16.mxu0 %v5069_v51 }
 0x191   :  { %1508 = vmatpush1.bf16.msra.mxu1 %v5070_v53  ;;  %v5096_v53 = vld [vmem:[#allocation38_spill] sm:$0xff] }
 0x192   :  { %1509 = vmatprep.subr.bf16.mxu1 %v5071_v8  ;;  %1483 = vmatpush1.bf16.msra.mxu0 %v5072_v9  ;;  %v5097_v8 = vld [vmem:[#allocation41_spill] sm:$0xff] }
 0x193   :  { %1484 = vmatprep.subr.bf16.mxu0 %v5073_v54 }
 0x195   :  { %1510 = vmatpush1.bf16.msra.mxu1 %v5074_v57  ;;  %v5098_v57 = vld [vmem:[#allocation42_spill] sm:$0xff] }
 0x196   :  { %1511 = vmatprep.subr.bf16.mxu1 %v5075_v41  ;;  %1485 = vmatpush1.bf16.msra.mxu0 %v5076_v24  ;;  %v5099_v41 = vld [vmem:[#allocation45_spill] sm:$0xff]  ;;  %v5124_v24 = vld [vmem:[#allocation88_spill] sm:$0xff] }
 0x197   :  { %1486 = vmatprep.subr.bf16.mxu0 %v5077_v18 }
 0x199   :  { %1512 = vmatpush1.bf16.msra.mxu1 %v5078_v25  ;;  %v5100_v25 = vld [vmem:[#allocation46_spill] sm:$0xff] }
 0x19a   :  { %1513 = vmatprep.subr.bf16.mxu1 %v5079_v29  ;;  %1487 = vmatpush1.bf16.msra.mxu0 %v5080_v28  ;;  %v5101_v29 = vld [vmem:[#allocation49_spill] sm:$0xff] }
 0x19b   :  { %1488 = vmatprep.subr.bf16.mxu0 %v5081_v36 }
 0x19d   :  { %1514 = vmatpush1.bf16.msra.mxu1 %v5082_v40  ;;  %v5102_v40 = vld [vmem:[#allocation50_spill] sm:$0xff] }
 0x19e   :  { %1515 = vmatprep.subr.bf16.mxu1 %v5083_v37  ;;  %1489 = vmatpush1.bf16.msra.mxu0 %v5084_v35  ;;  %v5103_v37 = vld [vmem:[#allocation53_spill] sm:$0xff] }
 0x19f   :  { %1490 = vmatprep.subr.bf16.mxu0 %v5085_v62 }
 0x1a1   :  { %1516 = vmatpush1.bf16.msra.mxu1 %v5086_v14  ;;  %v5104_v14 = vld [vmem:[#allocation54_spill] sm:$0xff] }
 0x1a2   :  { %1517 = vmatprep.subr.bf16.mxu1 %v5087_v27  ;;  %1491 = vmatpush1.bf16.msra.mxu0 %v5088_v26  ;;  %v5105_v27 = vld [vmem:[#allocation15_spill] sm:$0xff] }
 0x1a3   :  { %2753 = vmatprep.subr.bf16.mxu0 %v5089_v45 }
 0x1a5   :  { %1518 = vmatpush1.bf16.msra.mxu1 %v5090_v3  ;;  %v5106_v3 = vld [vmem:[#allocation56_spill] sm:$0xff] }
 0x1a6   :  { %1519 = vmatprep.subr.bf16.mxu1 %v5091_v43  ;;  %v123_v43 = vsub.s32 2, %v5106_v3 }
 0x1a9   :  { %1520 = vmatpush1.bf16.msra.mxu1 %v5092_v2  ;;  %v119_v2 = vsub.s32 1, %v5106_v3 }
 0x1aa   :  { %1521 = vmatprep.subr.bf16.mxu1 %v5093_v48  ;;  %v5107_v48 = vld [vmem:[#allocation57_spill] sm:$0xff] }
 0x1ad   :  { %1522 = vmatpush1.bf16.msra.mxu1 %v5094_v1  ;;  %v4189_v1 = vrot.slane %v5107_v48, %v123_v43 }
 0x1ae   :  { %1523 = vmatprep.subr.bf16.mxu1 %v5095_v4  ;;  %v4192_v4 = vrot.slane %v5107_v48, %v119_v2 }
 0x1af   :  { %5108 = vst [vmem:[#allocation31_spill] sm:$0xff] %v4189_v1 }
 0x1b0   :  { %5109 = vst [vmem:[#allocation16_spill] sm:$0xff] %v4192_v4 }
 0x1b1   :  { %1524 = vmatpush1.bf16.msra.mxu1 %v5096_v53  ;;  %v5110_v53 = vld [vmem:[#allocation58_spill] sm:$0xff] }
 0x1b2   :  { %1525 = vmatprep.subr.bf16.mxu1 %v5097_v8  ;;  %v5111_v8 = vld [vmem:[#allocation59_spill] sm:$0xff] }
 0x1b5   :  { %1526 = vmatpush1.bf16.msra.mxu1 %v5098_v57 }
 0x1b6   :  { %1527 = vmatprep.subr.bf16.mxu1 %v5099_v41  ;;  %v5115_v41 = vld [vmem:[#allocation71_spill] sm:$0xff] }
 0x1b9   :  { %1528 = vmatpush1.bf16.msra.mxu1 %v5100_v25 }
 0x1ba   :  { %1529 = vmatprep.subr.bf16.mxu1 %v5101_v29  ;;  %v413_v29 = vadd.f32 %v5111_v8, %v5110_v53 }
 0x1bd   :  { %1530 = vmatpush1.bf16.msra.mxu1 %v5102_v40  ;;  %v5112_v40 = vld [vmem:[#allocation70_spill] sm:$0xff] }
 0x1be   :  { %1531 = vmatprep.subr.bf16.mxu1 %v5103_v37  ;;  %v484_v37 = vadd.f32 %v5112_v40, %v4189_v1 }
 0x1c1   :  { %1532 = vmatpush1.bf16.msra.mxu1 %v5104_v14  ;;  %v5113_v14 = vld [vmem:[#allocation60_spill] sm:$0xff] }
 0x1c2   :  { %1726 = vmatprep.subr.bf16.mxu1 %v5105_v27  ;;  %v415_v25 = vadd.f32 %v5113_v14, %v4192_v4  ;;  %v5114_v27 = vld [vmem:[#allocation68_spill] sm:$0xff] }
 0x1c3   :  { %v486_v57 = vadd.f32 %v5115_v41, %v5114_v27 }
 0x237   :  { %v1252_v45 = vpop.f32.mrb[16].mxu1  ;;  %v1293_v3 = vpop.f32.mrb[24].mxu0 }
 0x238   :  { %v1340_v26 = vadd.f32 %v1252_v45, %v413_v29  ;;  %v1342_v43 = vadd.f32 %v1293_v3, %v484_v37  ;;  %v1254_v62 = vpop.f32.mrb[17].mxu1  ;;  %v1295_v35 = vpop.f32.mrb[25].mxu0 }
 0x239   :  { %v1341_v2 = vadd.f32 %v1254_v62, %v415_v25  ;;  %v1343_v48 = vadd.f32 %v1295_v35, %v486_v57  ;;  %v1256_v36 = vpop.f32.mrb[18].mxu1  ;;  %v1297_v28 = vpop.f32.mrb[26].mxu0 }
 0x23a   :  { %v2657_v8 = vmul.f32 -1.442695, %v1342_v43  ;;  %v1257_v53 = vpop.f32.mrb[19].mxu1  ;;  %v1298_v18 = vpop.f32.mrb[27].mxu0  ;;  %v2655_v14 = vmul.f32 -1.442695, %v1340_v26 }
 0x23b   :  { %v2656_v40 = vmul.f32 -1.442695, %v1341_v2  ;;  %v2658_v35 = vmul.f32 -1.442695, %v1343_v48 }
 0x23c   :  { %3183 = vpow2.f32 %v2657_v8 }
 0x23d   :  { %3185 = vpow2.f32 %v2656_v40 }
 0x23e   :  { %3187 = vpow2.f32 %v2655_v14  ;;  %v5118_v14 = vld [vmem:[#allocation78_spill] sm:$0xff] }
 0x246   :  { %v3184_v4 = vpop.eup %3183 }
 0x247   :  { %v3186_v1 = vpop.eup %3185  ;;  %v1359_v41 = vadd.f32 1.0, %v3184_v4  ;;  %v5116_v4 = vld [vmem:[#allocation80_spill] sm:$0xff] }
 0x248   :  { %v1358_v27 = vadd.f32 1.0, %v3186_v1  ;;  %v3188_v45 = vpop.eup %3187 }
 0x249   :  { %3189 = vrcp.f32 %v1359_v41  ;;  %v1357_v57 = vadd.f32 1.0, %v3188_v45  ;;  %v2946_v41 = vunpack.i.h.bf16 %v5118_v14  ;;  %v2945_v45 = vunpack.i.l.bf16 %v5118_v14 }
 0x24a   :  { %3191 = vrcp.f32 %v1358_v27 }
 0x24b   :  { %3193 = vpow2.f32 %v2658_v35 }
 0x24c   :  { %3195 = vrcp.f32 %v1357_v57 }
 0x253   :  { %v3190_v29 = vpop.eup %3189 }
 0x254   :  { %v3192_v62 = vpop.eup %3191  ;;  %v1373_v36 = vmul.f32 %v3190_v29, %v4008_v58  ;;  %v5117_v58 = vld [vmem:[#allocation66_spill] sm:$0xff]  ;;  %v5119_v29 = vld [vmem:[#allocation63_spill] sm:$0xff] }
 0x255   :  { %v1371_v28 = vmul.f32 %v3192_v62, %v4010_v30  ;;  %v3194_v1 = vpop.eup %3193  ;;  %v2925_v40 = vunpack.i.l.bf16 %v5117_v58  ;;  %v2926_v48 = vunpack.i.h.bf16 %v5117_v58  ;;  %v2911_v62 = vunpack.i.h.bf16 %v5119_v29 }
 0x256   :  { %v3196_v27 = vpop.eup %3195  ;;  %v1360_v8 = vadd.f32 1.0, %v3194_v1  ;;  %v2910_v35 = vunpack.i.l.bf16 %v5119_v29  ;;  %v5123_v29 = vld [vmem:[#allocation87_spill] sm:$0xff] }
 0x257   :  { %v2747_v18 = vpop.f32.mrb[20].mxu1 }
 0x258   :  { %v2748_v25 = vpop.f32.mrb[21].mxu1 }
 0x259   :  { %v2749_v37 = vadd.f32 %v2748_v25, %v2747_v18  ;;  %v2750_v26 = vpop.f32.mrb[22].mxu1  ;;  %v2969_v18 = vpop.permute.xlu0 %2968 }
 0x25a   :  { %v2751_v53 = vpop.f32.mrb[23].mxu1  ;;  %v2971_v25 = vunpack.i.h.bf16 %v2969_v18 }
 0x25b   :  { %v1344_v3 = vadd.f32 %v2749_v37, %v5116_v4  ;;  %v2970_v37 = vunpack.i.l.bf16 %v2969_v18 }
 0x25d   :  { %3197 = vtanh.f32 %v1344_v3 }
 0x25e   :  { %3199 = vrcp.f32 %v1360_v8 }
 0x267   :  { %v3198_v43 = vpop.eup %3197 }
 0x268   :  { %v1370_v2 = vmul.f32 %v3198_v43, %v3196_v27 }
 0x26a   :  { %v1372_v30 = vadd.f32 %v1371_v28, %v1370_v2  ;;  %v5120_v2 = vld [vmem:[#allocation90_spill] sm:$0xff] }
 0x26c   :  { %v1374_v57 = vadd.f32 %v1373_v36, %v1372_v30 }
 0x26e   :  { %3201 = vtanh.f32 %v1374_v57  ;;  %v1456_v26 = vmul.f32 %v2910_v35, %v1374_v57  ;;  %v1447_v53 = vmul.f32 %v2911_v62, %v1374_v57  ;;  %v1698_v4 = vmul.f32 %v2925_v40, %v1374_v57 }
 0x26f   :  { %v1689_v28 = vmul.f32 %v2926_v48, %v1374_v57  ;;  %v1964_v3 = vmul.f32 %v2945_v45, %v1374_v57  ;;  %v1955_v1 = vmul.f32 %v2946_v41, %v1374_v57  ;;  %v2245_v27 = vmul.f32 %v2971_v25, %v1374_v57 }
 0x270   :  { %v4212_v43 = vadd.f32 %v1456_v26, %v4012_v20  ;;  %v4215_v58 = vadd.f32 %v1447_v53, %v5120_v2  ;;  %v4218_v14 = vadd.f32 %v1698_v4, %v4028_v42  ;;  %v2254_v36 = vmul.f32 %v2970_v37, %v1374_v57  ;;  %v5125_v20 = vld [vmem:[#allocation89_spill] sm:$0xff]  ;;  %v3200_v53 = vpop.eup %3199 }
 0x271   :  { %v4221_v8 = vadd.f32 %v1689_v28, %v4030_v46  ;;  %v4224_v30 = vadd.f32 %v1964_v3, %v4032_v11  ;;  %v4227_v18 = vadd.f32 %v1955_v1, %v5123_v29  ;;  %v4230_v54 = vadd.f32 %v2245_v27, %v5124_v24 }
 0x272   :  { %5121 = vst [vmem:[#allocation17_spill] sm:$0xff] %v4218_v14  ;;  %v4233_v26 = vadd.f32 %v2254_v36, %v5125_v20  ;;  %v4310_v20 = vld [vmem:[#allocation6 + $0xc] ss:$20 sps:$4 sm:$0xff]  }
 0x273   :  { %5122 = vst [vmem:[#allocation32_spill] sm:$0xff] %v4221_v8 }
 0x278   :  { %v3202_v2 = vpop.eup %3201 }
 0x279   :  { %v1376_v42 = vmul.f32 %v3202_v2, %v3200_v53  ;;  %v4315_v53 = vld [vmem:[#allocation6 + $0x8] ss:$20 sps:$4 sm:$0xff]  }
 0x27a   :  { %5131 = vst [vmem:[#allocation21_spill] sm:$0xff] %v4315_v53  ;;  %v4318_v2 = vld [vmem:[#allocation6 + $0x34] ss:$20 sps:$4 sm:$0xff]  }
 0x27b   :  { %v1454_v4 = vmul.f32 %v2910_v35, %v1376_v42  ;;  %v1445_v57 = vmul.f32 %v2911_v62, %v1376_v42  ;;  %v1696_v14 = vmul.f32 %v2925_v40, %v1376_v42  ;;  %v1687_v46 = vmul.f32 %v2926_v48, %v1376_v42  ;;  %v4284_v62 = vld [vmem:[#allocation6 + $0xa4] ss:$20 sps:$4 sm:$0xff]   ;;  %v4289_v35 = vld [vmem:[#allocation6 + $0xa0] ss:$20 sps:$4 sm:$0xff]   ;;  %5132 = vst [vmem:[#allocation22_spill] sm:$0xff] %v4318_v2 }
 0x27c   :  { %v1962_v28 = vmul.f32 %v2945_v45, %v1376_v42  ;;  %v1953_v8 = vmul.f32 %v2946_v41, %v1376_v42  ;;  %v2252_v11 = vmul.f32 %v2970_v37, %v1376_v42  ;;  %v2243_v3 = vmul.f32 %v2971_v25, %v1376_v42  ;;  %v4281_v45 = vld [vmem:[#allocation6 + $0x78] ss:$20 sps:$4 sm:$0xff]   ;;  %5126 = vst [vmem:[#allocation35_spill] sm:$0xff] %v4289_v35  ;;  %v4297_v37 = vld [vmem:[#allocation6 + $0xc8] ss:$20 sps:$4 sm:$0xff]  }
 0x27d   :  { %v1455_v1 = vadd.f32 %v1454_v4, %v4054_v61  ;;  %v1446_v29 = vadd.f32 %v1445_v57, %v4056_v33  ;;  %v4238_v24 = vadd.f32 %v1696_v14, %v4074_v47  ;;  %v4241_v27 = vadd.f32 %v1687_v46, %v4076_v38  ;;  %v4257_v47 = vld [vmem:[#allocation6] ss:$20 sps:$4 sm:$0xff]   ;;  %v4273_v38 = vld [vmem:[#allocation6 + $0x50] ss:$20 sps:$4 sm:$0xff]   ;;  %5128 = vst [vmem:[#allocation19_spill] sm:$0xff] %v4297_v37 }
 0x27e   :  { %v4244_v36 = vadd.f32 %v1962_v28, %v4078_v15  ;;  %v4247_v40 = vadd.f32 %v1953_v8, %v4048_v5  ;;  %v4250_v48 = vadd.f32 %v2252_v11, %v4052_v44  ;;  %v4253_v41 = vadd.f32 %v2243_v3, %v4050_v10  ;;  %v4260_v5 = vld [vmem:[#allocation6 + $0x2c] ss:$20 sps:$4 sm:$0xff]   ;;  %v4265_v10 = vld [vmem:[#allocation6 + $0x28] ss:$20 sps:$4 sm:$0xff]   ;;  %v4305_v8 = vld [vmem:[#allocation6 + $0xf0] ss:$20 sps:$4 sm:$0xff]  }
 0x27f   :  { %v1459_v61 = vpack.c.bf16 %v1455_v1, %v1455_v1  ;;  %v1458_v33 = vpack.c.bf16 %v1446_v29, %v1446_v29  ;;  %v4268_v44 = vld [vmem:[#allocation6 + $0x54] ss:$20 sps:$4 sm:$0xff]   ;;  %v4276_v15 = vld [vmem:[#allocation6 + $0x7c] ss:$20 sps:$4 sm:$0xff]   ;;  %v4292_v25 = vld [vmem:[#allocation6 + $0xcc] ss:$20 sps:$4 sm:$0xff]  }
 0x280   :  { %5127 = vst [vmem:[#allocation18_spill] sm:$0xff] %v4292_v25  ;;  %v4300_v14 = vld [vmem:[#allocation6 + $0xf4] ss:$20 sps:$4 sm:$0xff]   ;;  %5130 = vst [vmem:[#allocation20_spill] sm:$0xff] %v4305_v8  ;;  %v4334_v42 = vld [vmem:[#allocation6 + $0x84] ss:$20 sps:$4 sm:$0xff]  }
 0x281   :  { %1492 = vmatprep.mubr.bf16.mxu0 %v1459_v61  ;;  %1533 = vmatprep.mubr.bf16.mxu1 %v1459_v61  ;;  %5129 = vst [vmem:[#allocation36_spill] sm:$0xff] %v4300_v14  ;;  %5136 = vst [vmem:[#allocation26_spill] sm:$0xff] %v4334_v42  ;;  %v4350_v4 = vld [vmem:[#allocation6 + $0xd4] ss:$20 sps:$4 sm:$0xff]   ;;  %v4355_v57 = vld [vmem:[#allocation6 + $0xd0] ss:$20 sps:$4 sm:$0xff]  }
 0x282   :  { %1493 = vmatmul.mubr.bf16.vlgmr.msra.gmra.mrb[28].mxu0 %v1458_v33  ;;  %1534 = vmatmul.mubr.bf16.vlgmr.msra.gmra.mrb[24].mxu1 %v1458_v33  ;;  %5141 = vst [vmem:[#allocation30_spill] sm:$0xff] %v4350_v4  ;;  %5144 = vst [vmem:[#allocation33_spill] sm:$0xff] %v4355_v57  ;;  %v4358_v46 = vld [vmem:[#allocation6 + $0xfc] ss:$20 sps:$4 sm:$0xff]   ;;  %v4363_v11 = vld [vmem:[#allocation6 + $0xf8] ss:$20 sps:$4 sm:$0xff]  }
 0x283   :  { %2754 = vmatpush3.bf16.msra.mxu0 %v4060_v32  ;;  %1574 = vmatprep.mubr.bf16.mxu0 %v1459_v61  ;;  %5145 = vst [vmem:[#allocation34_spill] sm:$0xff] %v4358_v46  ;;  %v5147_v28 = vld [vmem:[#allocation47_spill] sm:$0xff]  ;;  %5148 = vst [vmem:[#allocation37_spill] sm:$0xff] %v4363_v11  ;;  %v4366_v3 = vld [vmem:[#allocation6 + $0x124] ss:$20 sps:$4 sm:$0xff]  }
 0x284   :  { %2755 = vmatprep.subr.bf16.mxu0 %v4070_v7  ;;  %1727 = vmatpush1.bf16.msra.mxu1 %v4257_v47  ;;  %5149 = vst [vmem:[#allocation38_spill] sm:$0xff] %v4366_v3  ;;  %v5150_v1 = vld [vmem:[#allocation48_spill] sm:$0xff]  ;;  %v5151_v29 = vld [vmem:[#allocation51_spill] sm:$0xff] }
 0x285   :  { %1728 = vmatprep.subr.bf16.mxu1 %v4260_v5  ;;  %v4371_v61 = vld [vmem:[#allocation6 + $0x120] ss:$20 sps:$4 sm:$0xff]  }
 0x286   :  { %5152 = vst [vmem:[#allocation41_spill] sm:$0xff] %v4371_v61 }
 0x287   :  { %2756 = vmatpush3.bf16.msra.mxu0 %v4081_v31 }
 0x288   :  { %2757 = vmatprep.subr.bf16.mxu0 %v4084_v34  ;;  %1729 = vmatpush1.bf16.msra.mxu1 %v4265_v10 }
 0x289   :  { %1730 = vmatprep.subr.bf16.mxu1 %v4268_v44 }
 0x28b   :  { %2758 = vmatpush3.bf16.msra.mxu0 %v4089_v39 }
 0x28c   :  { %2759 = vmatprep.subr.bf16.mxu0 %v4092_v21  ;;  %1731 = vmatpush1.bf16.msra.mxu1 %v4273_v38 }
 0x28d   :  { %1732 = vmatprep.subr.bf16.mxu1 %v4276_v15 }
 0x28f   :  { %2760 = vmatpush3.bf16.msra.mxu0 %v4097_v16 }
 0x290   :  { %2761 = vmatprep.subr.bf16.mxu0 %v4100_v0  ;;  %1733 = vmatpush1.bf16.msra.mxu1 %v4281_v45 }
 0x291   :  { %1734 = vmatprep.subr.bf16.mxu1 %v4284_v62 }
 0x293   :  { %2762 = vmatpush3.bf16.msra.mxu0 %v4105_v49 }
 0x294   :  { %2763 = vmatprep.subr.bf16.mxu0 %v4108_v52  ;;  %1735 = vmatpush1.bf16.msra.mxu1 %v4289_v35 }
 0x295   :  { %1736 = vmatprep.subr.bf16.mxu1 %v4292_v25 }
 0x297   :  { %2764 = vmatpush3.bf16.msra.mxu0 %v4113_v55 }
 0x298   :  { %2765 = vmatprep.subr.bf16.mxu0 %v4116_v56  ;;  %1737 = vmatpush1.bf16.msra.mxu1 %v4297_v37 }
 0x299   :  { %1738 = vmatprep.subr.bf16.mxu1 %v4300_v14 }
 0x29b   :  { %2766 = vmatpush3.bf16.msra.mxu0 %v4121_v59 }
 0x29c   :  { %2767 = vmatprep.subr.bf16.mxu0 %v4124_v60  ;;  %1739 = vmatpush1.bf16.msra.mxu1 %v4305_v8 }
 0x29d   :  { %1740 = vmatprep.subr.bf16.mxu1 %v3753_v12  ;;  %v4323_v12 = vld [vmem:[#allocation6 + $0x30] ss:$20 sps:$4 sm:$0xff]  }
 0x29e   :  { %5133 = vst [vmem:[#allocation23_spill] sm:$0xff] %v4323_v12 }
 0x29f   :  { %2768 = vmatpush3.bf16.msra.mxu0 %v4129_v63 }
 0x2a0   :  { %1767 = vmatprep.subr.bf16.mxu0 %v4310_v20  ;;  %1741 = vmatpush1.bf16.msra.mxu1 %v3755_v13  ;;  %v4326_v13 = vld [vmem:[#allocation6 + $0x5c] ss:$20 sps:$4 sm:$0xff]  }
 0x2a1   :  { %1742 = vmatprep.subr.bf16.mxu1 %v3765_v17  ;;  %5134 = vst [vmem:[#allocation24_spill] sm:$0xff] %v4326_v13  ;;  %v4331_v17 = vld [vmem:[#allocation6 + $0x58] ss:$20 sps:$4 sm:$0xff]  }
 0x2a2   :  { %1575 = vmatmul.mubr.bf16.vlgmr.msra.gmra.mrb[32].mxu0 %v1458_v33  ;;  %5135 = vst [vmem:[#allocation25_spill] sm:$0xff] %v4331_v17  ;;  %v4374_v33 = vld [vmem:[#allocation6 + $0x14c] ss:$20 sps:$4 sm:$0xff]  }
 0x2a3   :  { %1768 = vmatpush1.bf16.msra.mxu0 %v4315_v53  ;;  %5153 = vst [vmem:[#allocation15_spill] sm:$0xff] %v4374_v33 }
 0x2a4   :  { %1769 = vmatprep.subr.bf16.mxu0 %v4318_v2  ;;  %1743 = vmatpush1.bf16.msra.mxu1 %v3767_v19  ;;  %v4339_v19 = vld [vmem:[#allocation6 + $0x80] ss:$20 sps:$4 sm:$0xff]  }
 0x2a5   :  { %1744 = vmatprep.subr.bf16.mxu1 %v3777_v22  ;;  %5137 = vst [vmem:[#allocation27_spill] sm:$0xff] %v4339_v19  ;;  %v4342_v22 = vld [vmem:[#allocation6 + $0xac] ss:$20 sps:$4 sm:$0xff]  }
 0x2a6   :  { %5138 = vst [vmem:[#allocation28_spill] sm:$0xff] %v4342_v22 }
 0x2a7   :  { %1770 = vmatpush1.bf16.msra.mxu0 %v4323_v12 }
 0x2a8   :  { %1771 = vmatprep.subr.bf16.mxu0 %v4326_v13  ;;  %1745 = vmatpush1.bf16.msra.mxu1 %v3779_v23  ;;  %v5139_v23 = vld [vmem:[#allocation39_spill] sm:$0xff] }
 0x2a9   :  { %1746 = vmatprep.subr.bf16.mxu1 %v5065_v50  ;;  %v4347_v50 = vld [vmem:[#allocation6 + $0xa8] ss:$20 sps:$4 sm:$0xff]  }
 0x2aa   :  { %5140 = vst [vmem:[#allocation29_spill] sm:$0xff] %v4347_v50 }
 0x2ab   :  { %1772 = vmatpush1.bf16.msra.mxu0 %v4331_v17 }
 0x2ac   :  { %1773 = vmatprep.subr.bf16.mxu0 %v4334_v42  ;;  %1747 = vmatpush1.bf16.msra.mxu1 %v5068_v6  ;;  %v5142_v6 = vld [vmem:[#allocation40_spill] sm:$0xff] }
 0x2ad   :  { %1748 = vmatprep.subr.bf16.mxu1 %v5069_v51  ;;  %v5143_v51 = vld [vmem:[#allocation43_spill] sm:$0xff] }
 0x2af   :  { %1774 = vmatpush1.bf16.msra.mxu0 %v4339_v19 }
 0x2b0   :  { %1775 = vmatprep.subr.bf16.mxu0 %v4342_v22  ;;  %1749 = vmatpush1.bf16.msra.mxu1 %v5072_v9  ;;  %v5146_v9 = vld [vmem:[#allocation44_spill] sm:$0xff] }
 0x2b1   :  { %1750 = vmatprep.subr.bf16.mxu1 %v5139_v23  ;;  %v5154_v23 = vld [vmem:[#allocation52_spill] sm:$0xff] }
 0x2b3   :  { %1776 = vmatpush1.bf16.msra.mxu0 %v4347_v50  ;;  %v5179_v50 = vld [vmem:[#allocation73_spill] sm:$0xff] }
 0x2b4   :  { %1777 = vmatprep.subr.bf16.mxu0 %v4350_v4  ;;  %1751 = vmatpush1.bf16.msra.mxu1 %v5142_v6  ;;  %v5155_v6 = vld [vmem:[#allocation55_spill] sm:$0xff] }
 0x2b5   :  { %1752 = vmatprep.subr.bf16.mxu1 %v5143_v51  ;;  %v4379_v51 = vld [vmem:[#allocation6 + $0x148] ss:$20 sps:$4 sm:$0xff]  }
 0x2b6   :  { %5156 = vst [vmem:[#allocation56_spill] sm:$0xff] %v4379_v51 }
 0x2b7   :  { %1778 = vmatpush1.bf16.msra.mxu0 %v4355_v57  ;;  %v5176_v57 = vld [vmem:[#allocation16_spill] sm:$0xff] }
 0x2b8   :  { %1779 = vmatprep.subr.bf16.mxu0 %v4358_v46  ;;  %1753 = vmatpush1.bf16.msra.mxu1 %v5146_v9  ;;  %v4382_v9 = vld [vmem:[#allocation6 + $0x174] ss:$20 sps:$4 sm:$0xff]   ;;  %v5175_v46 = vld [vmem:[#allocation72_spill] sm:$0xff] }
 0x2b9   :  { %1754 = vmatprep.subr.bf16.mxu1 %v5147_v28  ;;  %5157 = vst [vmem:[#allocation57_spill] sm:$0xff] %v4382_v9  ;;  %v4385_v28 = vld [vmem:[#allocation6 + $0x170] ss:$20 sps:$4 sm:$0xff]  }
 0x2ba   :  { %5158 = vst [vmem:[#allocation59_spill] sm:$0xff] %v4385_v28 }
 0x2bb   :  { %1780 = vmatpush1.bf16.msra.mxu0 %v4363_v11 }
 0x2bc   :  { %1781 = vmatprep.subr.bf16.mxu0 %v4366_v3  ;;  %1755 = vmatpush1.bf16.msra.mxu1 %v5150_v1  ;;  %v4388_v1 = vld [vmem:[#allocation6 + $0x19c] ss:$20 sps:$4 sm:$0xff]   ;;  %v4410_v3 = vld [vmem:[#allocation6 + $0x4] ss:$20 sps:$4 sm:$0xff]  }
 0x2bd   :  { %1756 = vmatprep.subr.bf16.mxu1 %v5151_v29  ;;  %5159 = vst [vmem:[#allocation70_spill] sm:$0xff] %v4388_v1  ;;  %v4391_v29 = vld [vmem:[#allocation6 + $0x198] ss:$20 sps:$4 sm:$0xff]   ;;  %5171 = vst [vmem:[#allocation78_spill] sm:$0xff] %v4410_v3 }
 0x2be   :  { %5160 = vst [vmem:[#allocation60_spill] sm:$0xff] %v4391_v29 }
 0x2bf   :  { %1782 = vmatpush1.bf16.msra.mxu0 %v4371_v61  ;;  %v5169_v61 = vld [vmem:[#allocation53_spill] sm:$0xff] }
 0x2c0   :  { %1783 = vmatprep.subr.bf16.mxu0 %v4374_v33  ;;  %1757 = vmatpush1.bf16.msra.mxu1 %v5154_v23  ;;  %v4394_v23 = vld [vmem:[#allocation6 + $0x1c4] ss:$20 sps:$4 sm:$0xff]  }
 0x2c1   :  { %2775 = vmatprep.subr.bf16.mxu1 %v5155_v6  ;;  %5161 = vst [vmem:[#allocation71_spill] sm:$0xff] %v4394_v23  ;;  %v4397_v6 = vld [vmem:[#allocation6 + $0x1c0] ss:$20 sps:$4 sm:$0xff]  }
 0x2c2   :  { %5162 = vst [vmem:[#allocation80_spill] sm:$0xff] %v4397_v6  ;;  %v5167_v33 = vld [vmem:[#allocation49_spill] sm:$0xff] }
 0x2c3   :  { %1784 = vmatpush1.bf16.msra.mxu0 %v4379_v51  ;;  %v5165_v51 = vld [vmem:[#allocation45_spill] sm:$0xff] }
 0x2c4   :  { %1785 = vmatprep.subr.bf16.mxu0 %v4382_v9  ;;  %v4400_v9 = vld [vmem:[#allocation6 + $0x1ec] ss:$20 sps:$4 sm:$0xff]  }
 0x2c5   :  { %5163 = vst [vmem:[#allocation66_spill] sm:$0xff] %v4400_v9 }
 0x2c7   :  { %1786 = vmatpush1.bf16.msra.mxu0 %v4385_v28  ;;  %v5164_v28 = vld [vmem:[#allocation42_spill] sm:$0xff] }
 0x2c8   :  { %1787 = vmatprep.subr.bf16.mxu0 %v4388_v1  ;;  %v5166_v1 = vld [vmem:[#allocation46_spill] sm:$0xff] }
 0x2cb   :  { %1788 = vmatpush1.bf16.msra.mxu0 %v4391_v29  ;;  %v5168_v29 = vld [vmem:[#allocation50_spill] sm:$0xff] }
 0x2cc   :  { %1789 = vmatprep.subr.bf16.mxu0 %v4394_v23  ;;  %v5170_v23 = vld [vmem:[#allocation54_spill] sm:$0xff] }
 0x2cf   :  { %1790 = vmatpush1.bf16.msra.mxu0 %v4397_v6  ;;  %v5172_v6 = vld [vmem:[#allocation58_spill] sm:$0xff] }
 0x2d0   :  { %1791 = vmatprep.subr.bf16.mxu0 %v4400_v9  ;;  %v5173_v9 = vld [vmem:[#allocation61_spill] sm:$0xff] }
 0x2d1   :  { %v417_v11 = vadd.f32 %v5173_v9, %v5172_v6 }
 0x2d3   :  { %1792 = vmatpush1.bf16.msra.mxu0 %v5164_v28  ;;  %v5174_v28 = vld [vmem:[#allocation31_spill] sm:$0xff] }
 0x2d4   :  { %1793 = vmatprep.subr.bf16.mxu0 %v5165_v51  ;;  %v488_v51 = vadd.f32 %v5175_v46, %v5174_v28 }
 0x2d7   :  { %1794 = vmatpush1.bf16.msra.mxu0 %v5166_v1  ;;  %v5177_v1 = vld [vmem:[#allocation62_spill] sm:$0xff] }
 0x2d8   :  { %1795 = vmatprep.subr.bf16.mxu0 %v5167_v33  ;;  %v419_v4 = vadd.f32 %v5177_v1, %v5176_v57  ;;  %v5178_v33 = vld [vmem:[#allocation68_spill] sm:$0xff] }
 0x2db   :  { %1796 = vmatpush1.bf16.msra.mxu0 %v5168_v29  ;;  %v490_v29 = vadd.f32 %v5179_v50, %v5178_v33 }
 0x2dc   :  { %1797 = vmatprep.subr.bf16.mxu0 %v5169_v61 }
 0x2df   :  { %1798 = vmatpush1.bf16.msra.mxu0 %v5170_v23 }
 0x2e0   :  { %2016 = vmatprep.subr.bf16.mxu0 %v4410_v3 }
 0x355   :  { %v1494_v22 = vpop.f32.mrb[28].mxu0  ;;  %v1535_v61 = vpop.f32.mrb[24].mxu1 }
 0x356   :  { %v1582_v19 = vadd.f32 %v1494_v22, %v417_v11  ;;  %v1584_v23 = vadd.f32 %v1535_v61, %v488_v51  ;;  %v1496_v42 = vpop.f32.mrb[29].mxu0  ;;  %v1537_v17 = vpop.f32.mrb[25].mxu1 }
 0x357   :  { %v1583_v13 = vadd.f32 %v1496_v42, %v419_v4  ;;  %v1585_v3 = vadd.f32 %v1537_v17, %v490_v29  ;;  %v1498_v12 = vpop.f32.mrb[30].mxu0  ;;  %v1539_v2 = vpop.f32.mrb[26].mxu1 }
 0x358   :  { %v2669_v9 = vmul.f32 -1.442695, %v1584_v23  ;;  %v1499_v6 = vpop.f32.mrb[31].mxu0  ;;  %v1540_v53 = vpop.f32.mrb[27].mxu1  ;;  %v2667_v1 = vmul.f32 -1.442695, %v1582_v19 }
 0x359   :  { %v2668_v46 = vmul.f32 -1.442695, %v1583_v13  ;;  %v2670_v17 = vmul.f32 -1.442695, %v1585_v3 }
 0x35a   :  { %3203 = vpow2.f32 %v2669_v9 }
 0x35b   :  { %3205 = vpow2.f32 %v2668_v46  ;;  %v5181_v46 = vld [vmem:[#allocation74_spill] sm:$0xff] }
 0x35c   :  { %3207 = vpow2.f32 %v2667_v1  ;;  %v2930_v3 = vunpack.i.l.bf16 %v5181_v46  ;;  %v5182_v1 = vld [vmem:[#allocation83_spill] sm:$0xff] }
 0x364   :  { %v3204_v57 = vpop.eup %3203 }
 0x365   :  { %v3206_v28 = vpop.eup %3205  ;;  %v1601_v50 = vadd.f32 1.0, %v3204_v57  ;;  %v5180_v57 = vld [vmem:[#allocation81_spill] sm:$0xff] }
 0x366   :  { %v1600_v33 = vadd.f32 1.0, %v3206_v28  ;;  %v3208_v22 = vpop.eup %3207 }
 0x367   :  { %3209 = vrcp.f32 %v1601_v50  ;;  %v1599_v13 = vadd.f32 1.0, %v3208_v22  ;;  %v2950_v50 = vunpack.i.l.bf16 %v5182_v1  ;;  %v2974_v22 = vpop.permute.xlu1 %2973 }
 0x368   :  { %3211 = vrcp.f32 %v1600_v33 }
 0x369   :  { %3213 = vpow2.f32 %v2670_v17  ;;  %v2976_v17 = vunpack.i.h.bf16 %v2974_v22 }
 0x36a   :  { %3215 = vrcp.f32 %v1599_v13 }
 0x371   :  { %v3210_v11 = vpop.eup %3209 }
 0x372   :  { %v3212_v42 = vpop.eup %3211  ;;  %v1615_v12 = vmul.f32 %v3210_v11, %v4212_v43 }
 0x373   :  { %v1613_v2 = vmul.f32 %v3212_v42, %v4215_v58  ;;  %v3214_v28 = vpop.eup %3213  ;;  %v2931_v58 = vunpack.i.h.bf16 %v5181_v46  ;;  %v2951_v42 = vunpack.i.h.bf16 %v5182_v1 }
 0x374   :  { %v3216_v33 = vpop.eup %3215  ;;  %v1602_v9 = vadd.f32 1.0, %v3214_v28  ;;  %v5184_v28 = vld [vmem:[#allocation32_spill] sm:$0xff] }
 0x375   :  { %v2769_v53 = vpop.f32.mrb[32].mxu0 }
 0x376   :  { %v2770_v4 = vpop.f32.mrb[33].mxu0 }
 0x377   :  { %v2771_v6 = vadd.f32 %v2770_v4, %v2769_v53  ;;  %v2772_v19 = vpop.f32.mrb[34].mxu0  ;;  %v2975_v53 = vunpack.i.l.bf16 %v2974_v22 }
 0x378   :  { %v2773_v51 = vpop.f32.mrb[35].mxu0 }
 0x379   :  { %v1586_v29 = vadd.f32 %v2771_v6, %v5180_v57  ;;  %v5183_v57 = vld [vmem:[#allocation17_spill] sm:$0xff] }
 0x37b   :  { %3217 = vtanh.f32 %v1586_v29 }
 0x37c   :  { %3219 = vrcp.f32 %v1602_v9 }
 0x385   :  { %v3218_v61 = vpop.eup %3217 }
 0x386   :  { %v1612_v23 = vmul.f32 %v3218_v61, %v3216_v33 }
 0x388   :  { %v1614_v43 = vadd.f32 %v1613_v2, %v1612_v23 }
 0x38a   :  { %v1616_v11 = vadd.f32 %v1615_v12, %v1614_v43  ;;  %v3220_v43 = vpop.eup %3219 }
 0x38c   :  { %3221 = vtanh.f32 %v1616_v11  ;;  %v1722_v13 = vmul.f32 %v2930_v3, %v1616_v11  ;;  %v1713_v4 = vmul.f32 %v2931_v58, %v1616_v11  ;;  %v1988_v6 = vmul.f32 %v2950_v50, %v1616_v11 }
 0x38d   :  { %v1979_v19 = vmul.f32 %v2951_v42, %v1616_v11  ;;  %v2269_v51 = vmul.f32 %v2976_v17, %v1616_v11  ;;  %v2278_v2 = vmul.f32 %v2975_v53, %v1616_v11 }
 0x38e   :  { %v4429_v29 = vadd.f32 %v1722_v13, %v5183_v57  ;;  %v4432_v33 = vadd.f32 %v1713_v4, %v5184_v28  ;;  %v4435_v12 = vadd.f32 %v1988_v6, %v4224_v30 }
 0x38f   :  { %v4438_v61 = vadd.f32 %v1979_v19, %v4227_v18  ;;  %v4441_v23 = vadd.f32 %v2269_v51, %v4230_v54  ;;  %v4444_v9 = vadd.f32 %v2278_v2, %v4233_v26  ;;  %v5209_v19 = vld [vmem:[#allocation34_spill] sm:$0xff] }
 0x390   :  { %v4540_v51 = vld [vmem:[#allocation6 + $0x208] ss:$20 sps:$4 sm:$0xff]  }
 0x391   :  { %5210 = vst [vmem:[#allocation55_spill] sm:$0xff] %v4540_v51  ;;  %v4543_v2 = vld [vmem:[#allocation6 + $0x234] ss:$20 sps:$4 sm:$0xff]  }
 0x392   :  { %5211 = vst [vmem:[#allocation42_spill] sm:$0xff] %v4543_v2 }
 0x396   :  { %v3222_v46 = vpop.eup %3221 }
 0x397   :  { %v1618_v1 = vmul.f32 %v3222_v46, %v3220_v43  ;;  %v5212_v43 = vld [vmem:[#allocation37_spill] sm:$0xff]  ;;  %v5213_v46 = vld [vmem:[#allocation38_spill] sm:$0xff] }
 0x399   :  { %v1720_v22 = vmul.f32 %v2930_v3, %v1618_v1  ;;  %v1711_v11 = vmul.f32 %v2931_v58, %v1618_v1  ;;  %v1986_v13 = vmul.f32 %v2950_v50, %v1618_v1  ;;  %v1977_v4 = vmul.f32 %v2951_v42, %v1618_v1  ;;  %v4532_v42 = vld [vmem:[#allocation6 + $0x1e0] ss:$20 sps:$4 sm:$0xff]  }
 0x39a   :  { %v2276_v57 = vmul.f32 %v2975_v53, %v1618_v1  ;;  %v2267_v28 = vmul.f32 %v2976_v17, %v1618_v1  ;;  %5206 = vst [vmem:[#allocation51_spill] sm:$0xff] %v4532_v42  ;;  %v4535_v17 = vld [vmem:[#allocation6 + $0x20c] ss:$20 sps:$4 sm:$0xff]   ;;  %v4548_v1 = vld [vmem:[#allocation6 + $0x230] ss:$20 sps:$4 sm:$0xff]  }
 0x39b   :  { %v1721_v30 = vadd.f32 %v1720_v22, %v4238_v24  ;;  %v1712_v18 = vadd.f32 %v1711_v11, %v4241_v27  ;;  %v4449_v6 = vadd.f32 %v1986_v13, %v4244_v36  ;;  %v4452_v54 = vadd.f32 %v1977_v4, %v4247_v40  ;;  %v5200_v24 = vld [vmem:[#allocation27_spill] sm:$0xff]  ;;  %v5201_v27 = vld [vmem:[#allocation28_spill] sm:$0xff]  ;;  %5207 = vst [vmem:[#allocation52_spill] sm:$0xff] %v4535_v17  ;;  %v5208_v53 = vld [vmem:[#allocation33_spill] sm:$0xff] }
 0x39c   :  { %v4455_v26 = vadd.f32 %v2276_v57, %v4250_v48  ;;  %v4458_v3 = vadd.f32 %v2267_v28, %v4253_v41  ;;  %v4524_v36 = vld [vmem:[#allocation6 + $0x1b8] ss:$20 sps:$4 sm:$0xff]   ;;  %v5204_v48 = vld [vmem:[#allocation29_spill] sm:$0xff]  ;;  %5214 = vst [vmem:[#allocation45_spill] sm:$0xff] %v4548_v1  ;;  %v4551_v22 = vld [vmem:[#allocation6 + $0x25c] ss:$20 sps:$4 sm:$0xff]  }
 0x39d   :  { %v1725_v58 = vpack.c.bf16 %v1721_v30, %v1721_v30  ;;  %v1724_v50 = vpack.c.bf16 %v1712_v18, %v1712_v18  ;;  %5202 = vst [vmem:[#allocation47_spill] sm:$0xff] %v4524_v36  ;;  %v4527_v40 = vld [vmem:[#allocation6 + $0x1e4] ss:$20 sps:$4 sm:$0xff]   ;;  %v5205_v41 = vld [vmem:[#allocation30_spill] sm:$0xff]  ;;  %5215 = vst [vmem:[#allocation46_spill] sm:$0xff] %v4551_v22 }
 0x39e   :  { %5203 = vst [vmem:[#allocation48_spill] sm:$0xff] %v4527_v40  ;;  %v5216_v11 = vld [vmem:[#allocation41_spill] sm:$0xff]  ;;  %v5217_v13 = vld [vmem:[#allocation15_spill] sm:$0xff]  ;;  %v4556_v4 = vld [vmem:[#allocation6 + $0x258] ss:$20 sps:$4 sm:$0xff]  }
 0x39f   :  { %1758 = vmatprep.mubr.bf16.mxu1 %v1725_v58  ;;  %1799 = vmatprep.mubr.bf16.mxu0 %v1725_v58  ;;  %5218 = vst [vmem:[#allocation49_spill] sm:$0xff] %v4556_v4  ;;  %v4559_v57 = vld [vmem:[#allocation6 + $0x150] ss:$20 sps:$4 sm:$0xff]   ;;  %v5220_v28 = vld [vmem:[#allocation56_spill] sm:$0xff] }
 0x3a0   :  { %1759 = vmatmul.mubr.bf16.vlgmr.msra.gmra.mrb[28].mxu1 %v1724_v50  ;;  %1800 = vmatmul.mubr.bf16.vlgmr.msra.gmra.mrb[36].mxu0 %v1724_v50  ;;  %5219 = vst [vmem:[#allocation50_spill] sm:$0xff] %v4559_v57  ;;  %v5221_v30 = vld [vmem:[#allocation57_spill] sm:$0xff]  ;;  %v5222_v18 = vld [vmem:[#allocation59_spill] sm:$0xff] }
 0x3a1   :  { %2776 = vmatpush3.bf16.msra.mxu1 %v4060_v32  ;;  %1840 = vmatprep.mubr.bf16.mxu1 %v1725_v58  ;;  %v4487_v32 = vld [vmem:[#allocation6 + $0x11c] ss:$20 sps:$4 sm:$0xff]   ;;  %v5223_v58 = vld [vmem:[#allocation70_spill] sm:$0xff] }
 0x3a2   :  { %2777 = vmatprep.subr.bf16.mxu1 %v4070_v7  ;;  %2017 = vmatpush1.bf16.msra.mxu0 %v4257_v47  ;;  %5185 = vst [vmem:[#allocation63_spill] sm:$0xff] %v4487_v32  ;;  %v4492_v7 = vld [vmem:[#allocation6 + $0x118] ss:$20 sps:$4 sm:$0xff]  }
 0x3a3   :  { %2018 = vmatprep.subr.bf16.mxu0 %v4260_v5  ;;  %5186 = vst [vmem:[#allocation90_spill] sm:$0xff] %v4492_v7 }
 0x3a5   :  { %2778 = vmatpush3.bf16.msra.mxu1 %v4081_v31  ;;  %v4495_v31 = vld [vmem:[#allocation6 + $0x144] ss:$20 sps:$4 sm:$0xff]  }
 0x3a6   :  { %2779 = vmatprep.subr.bf16.mxu1 %v4084_v34  ;;  %2019 = vmatpush1.bf16.msra.mxu0 %v4265_v10  ;;  %5187 = vst [vmem:[#allocation87_spill] sm:$0xff] %v4495_v31  ;;  %v5188_v34 = vld [vmem:[#allocation21_spill] sm:$0xff] }
 0x3a7   :  { %2020 = vmatprep.subr.bf16.mxu0 %v4268_v44 }
 0x3a9   :  { %2780 = vmatpush3.bf16.msra.mxu1 %v4089_v39  ;;  %v5189_v39 = vld [vmem:[#allocation22_spill] sm:$0xff] }
 0x3aa   :  { %2781 = vmatprep.subr.bf16.mxu1 %v4092_v21  ;;  %2021 = vmatpush1.bf16.msra.mxu0 %v4273_v38  ;;  %v4500_v21 = vld [vmem:[#allocation6 + $0x140] ss:$20 sps:$4 sm:$0xff]  }
 0x3ab   :  { %2022 = vmatprep.subr.bf16.mxu0 %v4276_v15  ;;  %5190 = vst [vmem:[#allocation88_spill] sm:$0xff] %v4500_v21 }
 0x3ad   :  { %2782 = vmatpush3.bf16.msra.mxu1 %v4097_v16  ;;  %v4503_v16 = vld [vmem:[#allocation6 + $0x16c] ss:$20 sps:$4 sm:$0xff]  }
 0x3ae   :  { %2783 = vmatprep.subr.bf16.mxu1 %v4100_v0  ;;  %2023 = vmatpush1.bf16.msra.mxu0 %v4281_v45  ;;  %5191 = vst [vmem:[#allocation89_spill] sm:$0xff] %v4503_v16  ;;  %v5192_v0 = vld [vmem:[#allocation23_spill] sm:$0xff] }
 0x3af   :  { %2024 = vmatprep.subr.bf16.mxu0 %v4284_v62 }
 0x3b1   :  { %2784 = vmatpush3.bf16.msra.mxu1 %v4105_v49  ;;  %v5193_v49 = vld [vmem:[#allocation24_spill] sm:$0xff] }
 0x3b2   :  { %2785 = vmatprep.subr.bf16.mxu1 %v4108_v52  ;;  %2025 = vmatpush1.bf16.msra.mxu0 %v4289_v35  ;;  %v4508_v52 = vld [vmem:[#allocation6 + $0x168] ss:$20 sps:$4 sm:$0xff]  }
 0x3b3   :  { %2026 = vmatprep.subr.bf16.mxu0 %v4292_v25  ;;  %5194 = vst [vmem:[#allocation39_spill] sm:$0xff] %v4508_v52 }
 0x3b5   :  { %2786 = vmatpush3.bf16.msra.mxu1 %v4113_v55  ;;  %v4511_v55 = vld [vmem:[#allocation6 + $0x194] ss:$20 sps:$4 sm:$0xff]  }
 0x3b6   :  { %2787 = vmatprep.subr.bf16.mxu1 %v4116_v56  ;;  %2027 = vmatpush1.bf16.msra.mxu0 %v4297_v37  ;;  %5195 = vst [vmem:[#allocation40_spill] sm:$0xff] %v4511_v55  ;;  %v5196_v56 = vld [vmem:[#allocation25_spill] sm:$0xff] }
 0x3b7   :  { %2028 = vmatprep.subr.bf16.mxu0 %v4300_v14 }
 0x3b9   :  { %2788 = vmatpush3.bf16.msra.mxu1 %v4121_v59  ;;  %v5197_v59 = vld [vmem:[#allocation26_spill] sm:$0xff] }
 0x3ba   :  { %2789 = vmatprep.subr.bf16.mxu1 %v4124_v60  ;;  %2029 = vmatpush1.bf16.msra.mxu0 %v4305_v8  ;;  %v4516_v60 = vld [vmem:[#allocation6 + $0x190] ss:$20 sps:$4 sm:$0xff]   ;;  %v5242_v8 = vld [vmem:[#allocation76_spill] sm:$0xff] }
 0x3bb   :  { %2030 = vmatprep.subr.bf16.mxu0 %v4487_v32  ;;  %5198 = vst [vmem:[#allocation43_spill] sm:$0xff] %v4516_v60 }
 0x3bd   :  { %2790 = vmatpush3.bf16.msra.mxu1 %v4129_v63  ;;  %v4519_v63 = vld [vmem:[#allocation6 + $0x1bc] ss:$20 sps:$4 sm:$0xff]  }
 0x3be   :  { %2057 = vmatprep.subr.bf16.mxu1 %v4310_v20  ;;  %2031 = vmatpush1.bf16.msra.mxu0 %v4492_v7  ;;  %5199 = vst [vmem:[#allocation44_spill] sm:$0xff] %v4519_v63  ;;  %v5240_v7 = vld [vmem:[#allocation65_spill] sm:$0xff] }
 0x3bf   :  { %2032 = vmatprep.subr.bf16.mxu0 %v4495_v31  ;;  %v5239_v31 = vld [vmem:[#allocation16_spill] sm:$0xff] }
 0x3c0   :  { %1841 = vmatmul.mubr.bf16.vlgmr.msra.gmra.mrb[32].mxu1 %v1724_v50  ;;  %v5224_v50 = vld [vmem:[#allocation60_spill] sm:$0xff]  ;;  %v425_v32 = vadd.f32 %v5240_v7, %v5239_v31 }
 0x3c1   :  { %2058 = vmatpush1.bf16.msra.mxu1 %v5188_v34 }
 0x3c2   :  { %2059 = vmatprep.subr.bf16.mxu1 %v5189_v39  ;;  %2033 = vmatpush1.bf16.msra.mxu0 %v4500_v21  ;;  %v5238_v21 = vld [vmem:[#allocation75_spill] sm:$0xff] }
 0x3c3   :  { %2034 = vmatprep.subr.bf16.mxu0 %v4503_v16  ;;  %v5237_v16 = vld [vmem:[#allocation31_spill] sm:$0xff] }
 0x3c5   :  { %2060 = vmatpush1.bf16.msra.mxu1 %v5192_v0 }
 0x3c6   :  { %2061 = vmatprep.subr.bf16.mxu1 %v5193_v49  ;;  %2035 = vmatpush1.bf16.msra.mxu0 %v4508_v52 }
 0x3c7   :  { %2036 = vmatprep.subr.bf16.mxu0 %v4511_v55  ;;  %v5236_v55 = vld [vmem:[#allocation64_spill] sm:$0xff] }
 0x3c9   :  { %2062 = vmatpush1.bf16.msra.mxu1 %v5196_v56 }
 0x3ca   :  { %2063 = vmatprep.subr.bf16.mxu1 %v5197_v59  ;;  %2037 = vmatpush1.bf16.msra.mxu0 %v4516_v60  ;;  %v5235_v60 = vld [vmem:[#allocation58_spill] sm:$0xff] }
 0x3cb   :  { %2038 = vmatprep.subr.bf16.mxu0 %v4519_v63  ;;  %v4588_v63 = vld [vmem:[#allocation6 + $0x260] ss:$20 sps:$4 sm:$0xff]   ;;  %v423_v52 = vadd.f32 %v5236_v55, %v5235_v60 }
 0x3cc   :  { %5234 = vst [vmem:[#allocation81_spill] sm:$0xff] %v4588_v63 }
 0x3cd   :  { %2064 = vmatpush1.bf16.msra.mxu1 %v5200_v24 }
 0x3ce   :  { %2065 = vmatprep.subr.bf16.mxu1 %v5201_v27  ;;  %2039 = vmatpush1.bf16.msra.mxu0 %v4524_v36  ;;  %v4585_v36 = vld [vmem:[#allocation6 + $0x264] ss:$20 sps:$4 sm:$0xff]  }
 0x3cf   :  { %2040 = vmatprep.subr.bf16.mxu0 %v4527_v40  ;;  %v4582_v40 = vld [vmem:[#allocation6 + $0x238] ss:$20 sps:$4 sm:$0xff]   ;;  %5233 = vst [vmem:[#allocation73_spill] sm:$0xff] %v4585_v36 }
 0x3d0   :  { %5232 = vst [vmem:[#allocation62_spill] sm:$0xff] %v4582_v40 }
 0x3d1   :  { %2066 = vmatpush1.bf16.msra.mxu1 %v5204_v48 }
 0x3d2   :  { %2067 = vmatprep.subr.bf16.mxu1 %v5205_v41  ;;  %2041 = vmatpush1.bf16.msra.mxu0 %v4532_v42  ;;  %v4579_v42 = vld [vmem:[#allocation6 + $0x23c] ss:$20 sps:$4 sm:$0xff]  }
 0x3d3   :  { %2042 = vmatprep.subr.bf16.mxu0 %v4535_v17  ;;  %v4576_v17 = vld [vmem:[#allocation6 + $0x210] ss:$20 sps:$4 sm:$0xff]   ;;  %5231 = vst [vmem:[#allocation72_spill] sm:$0xff] %v4579_v42 }
 0x3d4   :  { %5230 = vst [vmem:[#allocation61_spill] sm:$0xff] %v4576_v17 }
 0x3d5   :  { %2068 = vmatpush1.bf16.msra.mxu1 %v5208_v53 }
 0x3d6   :  { %2069 = vmatprep.subr.bf16.mxu1 %v5209_v19  ;;  %2043 = vmatpush1.bf16.msra.mxu0 %v4540_v51  ;;  %v4573_v51 = vld [vmem:[#allocation6 + $0x214] ss:$20 sps:$4 sm:$0xff]  }
 0x3d7   :  { %2044 = vmatprep.subr.bf16.mxu0 %v4543_v2  ;;  %v5227_v2 = vld [vmem:[#allocation66_spill] sm:$0xff]  ;;  %5229 = vst [vmem:[#allocation54_spill] sm:$0xff] %v4573_v51 }
 0x3d9   :  { %2070 = vmatpush1.bf16.msra.mxu1 %v5212_v43 }
 0x3da   :  { %2071 = vmatprep.subr.bf16.mxu1 %v5213_v46  ;;  %2045 = vmatpush1.bf16.msra.mxu0 %v4548_v1  ;;  %v5226_v1 = vld [vmem:[#allocation80_spill] sm:$0xff] }
 0x3db   :  { %2046 = vmatprep.subr.bf16.mxu0 %v4551_v22  ;;  %v5225_v22 = vld [vmem:[#allocation71_spill] sm:$0xff] }
 0x3dd   :  { %2072 = vmatpush1.bf16.msra.mxu1 %v5216_v11 }
 0x3de   :  { %2073 = vmatprep.subr.bf16.mxu1 %v5217_v13  ;;  %2047 = vmatpush1.bf16.msra.mxu0 %v4556_v4  ;;  %v4570_v4 = vld [vmem:[#allocation6 + $0x1e8] ss:$20 sps:$4 sm:$0xff]  }
 0x3df   :  { %2797 = vmatprep.subr.bf16.mxu0 %v4559_v57  ;;  %5228 = vst [vmem:[#allocation53_spill] sm:$0xff] %v4570_v4  ;;  %v494_v57 = vadd.f32 %v5238_v21, %v5237_v16 }
 0x3e1   :  { %2074 = vmatpush1.bf16.msra.mxu1 %v5220_v28 }
 0x3e2   :  { %2075 = vmatprep.subr.bf16.mxu1 %v5221_v30 }
 0x3e5   :  { %2076 = vmatpush1.bf16.msra.mxu1 %v5222_v18 }
 0x3e6   :  { %2077 = vmatprep.subr.bf16.mxu1 %v5223_v58 }
 0x3e9   :  { %2078 = vmatpush1.bf16.msra.mxu1 %v5224_v50 }
 0x3ea   :  { %2079 = vmatprep.subr.bf16.mxu1 %v5225_v22 }
 0x3ed   :  { %2080 = vmatpush1.bf16.msra.mxu1 %v5226_v1 }
 0x3ee   :  { %2081 = vmatprep.subr.bf16.mxu1 %v5227_v2 }
 0x3f1   :  { %2082 = vmatpush1.bf16.msra.mxu1 %v4570_v4 }
 0x3f2   :  { %2083 = vmatprep.subr.bf16.mxu1 %v4573_v51 }
 0x3f5   :  { %2084 = vmatpush1.bf16.msra.mxu1 %v4576_v17 }
 0x3f6   :  { %2085 = vmatprep.subr.bf16.mxu1 %v4579_v42 }
 0x3f9   :  { %2086 = vmatpush1.bf16.msra.mxu1 %v4582_v40  ;;  %v5241_v40 = vld [vmem:[#allocation68_spill] sm:$0xff] }
 0x3fa   :  { %2087 = vmatprep.subr.bf16.mxu1 %v4585_v36  ;;  %v496_v42 = vadd.f32 %v5242_v8, %v5241_v40 }
 0x3fd   :  { %2088 = vmatpush1.bf16.msra.mxu1 %v4588_v63 }
 0x3fe   :  { %2371 = vmatprep.subr.bf16.mxu1 %v4310_v20 }
 0x473   :  { %v1760_v17 = vpop.f32.mrb[28].mxu1  ;;  %v1801_v36 = vpop.f32.mrb[36].mxu0 }
 0x474   :  { %v1848_v14 = vadd.f32 %v1760_v17, %v423_v52  ;;  %v1850_v37 = vadd.f32 %v1801_v36, %v494_v57  ;;  %v1762_v51 = vpop.f32.mrb[29].mxu1  ;;  %v1803_v63 = vpop.f32.mrb[37].mxu0 }
 0x475   :  { %v1849_v4 = vadd.f32 %v1762_v51, %v425_v32  ;;  %v1851_v20 = vadd.f32 %v1803_v63, %v496_v42  ;;  %v1764_v25 = vpop.f32.mrb[30].mxu1  ;;  %v1805_v35 = vpop.f32.mrb[38].mxu0 }
 0x476   :  { %v2683_v55 = vmul.f32 -1.442695, %v1850_v37  ;;  %v1765_v60 = vpop.f32.mrb[31].mxu1  ;;  %v1806_v2 = vpop.f32.mrb[39].mxu0  ;;  %v2681_v7 = vmul.f32 -1.442695, %v1848_v14 }
 0x477   :  { %v2682_v21 = vmul.f32 -1.442695, %v1849_v4  ;;  %v2684_v37 = vmul.f32 -1.442695, %v1851_v20 }
 0x478   :  { %3223 = vpow2.f32 %v2683_v55  ;;  %v2979_v55 = vpop.permute.xlu0 %2978 }
 0x479   :  { %3225 = vpow2.f32 %v2682_v21 }
 0x47a   :  { %3227 = vpow2.f32 %v2681_v7 }
 0x482   :  { %v3224_v31 = vpop.eup %3223 }
 0x483   :  { %v3226_v16 = vpop.eup %3225  ;;  %v1867_v8 = vadd.f32 1.0, %v3224_v31  ;;  %v5243_v31 = vld [vmem:[#allocation85_spill] sm:$0xff] }
 0x484   :  { %v1866_v40 = vadd.f32 1.0, %v3226_v16  ;;  %v3228_v52 = vpop.eup %3227 }
 0x485   :  { %3229 = vrcp.f32 %v1867_v8  ;;  %v1865_v63 = vadd.f32 1.0, %v3228_v52  ;;  %v2981_v8 = vunpack.i.h.bf16 %v2979_v55 }
 0x486   :  { %3231 = vrcp.f32 %v1866_v40 }
 0x487   :  { %3233 = vpow2.f32 %v2684_v37 }
 0x488   :  { %3235 = vrcp.f32 %v1865_v63 }
 0x48f   :  { %v3230_v36 = vpop.eup %3229 }
 0x490   :  { %v3232_v32 = vpop.eup %3231  ;;  %v1881_v25 = vmul.f32 %v3230_v36, %v4429_v29  ;;  %v2980_v36 = vunpack.i.l.bf16 %v2979_v55 }
 0x491   :  { %v1879_v35 = vmul.f32 %v3232_v32, %v4432_v33  ;;  %v3234_v16 = vpop.eup %3233  ;;  %v5244_v33 = vld [vmem:[#allocation82_spill] sm:$0xff] }
 0x492   :  { %v3236_v40 = vpop.eup %3235  ;;  %v1868_v29 = vadd.f32 1.0, %v3234_v16  ;;  %v2956_v20 = vunpack.i.h.bf16 %v5244_v33  ;;  %v2955_v7 = vunpack.i.l.bf16 %v5244_v33  ;;  %v5267_v33 = vld [vmem:[#allocation43_spill] sm:$0xff] }
 0x493   :  { %v2791_v60 = vpop.f32.mrb[32].mxu1 }
 0x494   :  { %v2792_v42 = vpop.f32.mrb[33].mxu1 }
 0x495   :  { %v2793_v17 = vadd.f32 %v2792_v42, %v2791_v60  ;;  %v2794_v14 = vpop.f32.mrb[34].mxu1 }
 0x496   :  { %v2795_v51 = vpop.f32.mrb[35].mxu1 }
 0x497   :  { %v1852_v2 = vadd.f32 %v2793_v17, %v5243_v31 }
 0x499   :  { %3237 = vtanh.f32 %v1852_v2 }
 0x49a   :  { %3239 = vrcp.f32 %v1868_v29  ;;  %v4625_v29 = vld [vmem:[#allocation6 + $0x10] ss:$20 sps:$4 sm:$0xff]  }
 0x4a3   :  { %v3238_v4 = vpop.eup %3237 }
 0x4a4   :  { %v1878_v57 = vmul.f32 %v3238_v4, %v3236_v40 }
 0x4a6   :  { %v1880_v21 = vadd.f32 %v1879_v35, %v1878_v57 }
 0x4a8   :  { %v1882_v52 = vadd.f32 %v1881_v25, %v1880_v21  ;;  %v3240_v25 = vpop.eup %3239  ;;  %v4644_v21 = vld [vmem:[#allocation6 + $0x1c8] ss:$20 sps:$4 sm:$0xff]  }
 0x4aa   :  { %3241 = vtanh.f32 %v1882_v52  ;;  %v2012_v32 = vmul.f32 %v2955_v7, %v1882_v52  ;;  %v2003_v37 = vmul.f32 %v2956_v20, %v1882_v52  ;;  %v2293_v60 = vmul.f32 %v2981_v8, %v1882_v52 }
 0x4ab   :  { %v2302_v63 = vmul.f32 %v2980_v36, %v1882_v52  ;;  %v5271_v52 = vld [vmem:[#allocation51_spill] sm:$0xff] }
 0x4ac   :  { %v4606_v42 = vadd.f32 %v2012_v32, %v4435_v12  ;;  %v4609_v17 = vadd.f32 %v2003_v37, %v4438_v61  ;;  %v4612_v35 = vadd.f32 %v2293_v60, %v4441_v23  ;;  %v5273_v32 = vld [vmem:[#allocation55_spill] sm:$0xff]  ;;  %v5274_v37 = vld [vmem:[#allocation42_spill] sm:$0xff]  ;;  %v5275_v60 = vld [vmem:[#allocation45_spill] sm:$0xff] }
 0x4ad   :  { %v4615_v14 = vadd.f32 %v2302_v63, %v4444_v9  ;;  %v5276_v63 = vld [vmem:[#allocation46_spill] sm:$0xff] }
 0x4b4   :  { %v3242_v51 = vpop.eup %3241 }
 0x4b5   :  { %v1884_v31 = vmul.f32 %v3242_v51, %v3240_v25  ;;  %v5277_v25 = vld [vmem:[#allocation49_spill] sm:$0xff]  ;;  %v5278_v51 = vld [vmem:[#allocation58_spill] sm:$0xff] }
 0x4b7   :  { %v2010_v2 = vmul.f32 %v2955_v7, %v1884_v31  ;;  %v2001_v16 = vmul.f32 %v2956_v20, %v1884_v31  ;;  %v2300_v40 = vmul.f32 %v2980_v36, %v1884_v31  ;;  %v2291_v4 = vmul.f32 %v2981_v8, %v1884_v31  ;;  %v5268_v20 = vld [vmem:[#allocation44_spill] sm:$0xff]  ;;  %v5269_v7 = vld [vmem:[#allocation47_spill] sm:$0xff] }
 0x4b8   :  { %v5270_v8 = vld [vmem:[#allocation48_spill] sm:$0xff]  ;;  %v5279_v31 = vld [vmem:[#allocation67_spill] sm:$0xff] }
 0x4b9   :  { %v2011_v57 = vadd.f32 %v2010_v2, %v4449_v6  ;;  %v2002_v12 = vadd.f32 %v2001_v16, %v4452_v54  ;;  %v4620_v61 = vadd.f32 %v2300_v40, %v4455_v26  ;;  %v4623_v23 = vadd.f32 %v2291_v4, %v4458_v3  ;;  %v4628_v6 = vld [vmem:[#allocation6 + $0x178] ss:$20 sps:$4 sm:$0xff]   ;;  %v4636_v26 = vld [vmem:[#allocation6 + $0x1a0] ss:$20 sps:$4 sm:$0xff]  }
 0x4ba   :  { %v4633_v54 = vld [vmem:[#allocation6 + $0x38] ss:$20 sps:$4 sm:$0xff]   ;;  %v4641_v3 = vld [vmem:[#allocation6 + $0x60] ss:$20 sps:$4 sm:$0xff]   ;;  %v427_v2 = vadd.f32 %v5279_v31, %v5278_v51 }
 0x4bb   :  { %v2015_v55 = vpack.c.bf16 %v2011_v57, %v2011_v57  ;;  %v2014_v9 = vpack.c.bf16 %v2002_v12, %v2002_v12  ;;  %v5272_v36 = vld [vmem:[#allocation52_spill] sm:$0xff]  ;;  %v5280_v16 = vld [vmem:[#allocation31_spill] sm:$0xff]  ;;  %v5281_v40 = vld [vmem:[#allocation77_spill] sm:$0xff] }
 0x4bc   :  { %v498_v4 = vadd.f32 %v5281_v40, %v5280_v16  ;;  %v5282_v57 = vld [vmem:[#allocation16_spill] sm:$0xff]  ;;  %v5283_v12 = vld [vmem:[#allocation69_spill] sm:$0xff]  ;;  %v5286_v31 = vld [vmem:[#allocation86_spill] sm:$0xff] }
 0x4bd   :  { %2048 = vmatprep.mubr.bf16.mxu0 %v2015_v55  ;;  %2089 = vmatprep.mubr.bf16.mxu1 %v2015_v55 }
 0x4be   :  { %2049 = vmatmul.mubr.bf16.vlgmr.msra.gmra.mrb[40].mxu0 %v2014_v9  ;;  %2090 = vmatmul.mubr.bf16.vlgmr.msra.gmra.mrb[36].mxu1 %v2014_v9 }
 0x4bf   :  { %2798 = vmatpush3.bf16.msra.mxu0 %v4625_v29  ;;  %2130 = vmatprep.mubr.bf16.mxu0 %v2015_v55  ;;  %v429_v55 = vadd.f32 %v5283_v12, %v5282_v57 }
 0x4c0   :  { %2799 = vmatprep.subr.bf16.mxu0 %v4628_v6  ;;  %2372 = vmatpush1.bf16.msra.mxu1 %v5188_v34  ;;  %v4649_v34 = vld [vmem:[#allocation6 + $0x88] ss:$20 sps:$4 sm:$0xff]  }
 0x4c1   :  { %2373 = vmatprep.subr.bf16.mxu1 %v5189_v39  ;;  %v4652_v39 = vld [vmem:[#allocation6 + $0x1f0] ss:$20 sps:$4 sm:$0xff]  }
 0x4c3   :  { %2800 = vmatpush3.bf16.msra.mxu0 %v4633_v54 }
 0x4c4   :  { %2801 = vmatprep.subr.bf16.mxu0 %v4636_v26  ;;  %2374 = vmatpush1.bf16.msra.mxu1 %v5192_v0  ;;  %v4657_v0 = vld [vmem:[#allocation6 + $0xb0] ss:$20 sps:$4 sm:$0xff]  }
 0x4c5   :  { %2375 = vmatprep.subr.bf16.mxu1 %v5193_v49  ;;  %v4660_v49 = vld [vmem:[#allocation6 + $0x218] ss:$20 sps:$4 sm:$0xff]  }
 0x4c7   :  { %2802 = vmatpush3.bf16.msra.mxu0 %v4641_v3 }
 0x4c8   :  { %2803 = vmatprep.subr.bf16.mxu0 %v4644_v21  ;;  %2376 = vmatpush1.bf16.msra.mxu1 %v5196_v56  ;;  %v4665_v56 = vld [vmem:[#allocation6 + $0xd8] ss:$20 sps:$4 sm:$0xff]  }
 0x4c9   :  { %2377 = vmatprep.subr.bf16.mxu1 %v5197_v59  ;;  %v4668_v59 = vld [vmem:[#allocation6 + $0x240] ss:$20 sps:$4 sm:$0xff]  }
 0x4cb   :  { %2804 = vmatpush3.bf16.msra.mxu0 %v4649_v34 }
 0x4cc   :  { %2805 = vmatprep.subr.bf16.mxu0 %v4652_v39  ;;  %2378 = vmatpush1.bf16.msra.mxu1 %v5200_v24  ;;  %v4673_v24 = vld [vmem:[#allocation6 + $0x100] ss:$20 sps:$4 sm:$0xff]  }
 0x4cd   :  { %2379 = vmatprep.subr.bf16.mxu1 %v5201_v27  ;;  %v4676_v27 = vld [vmem:[#allocation6 + $0x268] ss:$20 sps:$4 sm:$0xff]  }
 0x4cf   :  { %2806 = vmatpush3.bf16.msra.mxu0 %v4657_v0 }
 0x4d0   :  { %2807 = vmatprep.subr.bf16.mxu0 %v4660_v49  ;;  %2380 = vmatpush1.bf16.msra.mxu1 %v5204_v48  ;;  %v4681_v48 = vld [vmem:[#allocation6 + $0x128] ss:$20 sps:$4 sm:$0xff]  }
 0x4d1   :  { %2381 = vmatprep.subr.bf16.mxu1 %v5205_v41  ;;  %v5245_v41 = vld [vmem:[#allocation78_spill] sm:$0xff] }
 0x4d3   :  { %2808 = vmatpush3.bf16.msra.mxu0 %v4665_v56 }
 0x4d4   :  { %2809 = vmatprep.subr.bf16.mxu0 %v4668_v59  ;;  %2382 = vmatpush1.bf16.msra.mxu1 %v5208_v53  ;;  %v5252_v53 = vld [vmem:[#allocation36_spill] sm:$0xff] }
 0x4d5   :  { %2383 = vmatprep.subr.bf16.mxu1 %v5209_v19  ;;  %v5253_v19 = vld [vmem:[#allocation61_spill] sm:$0xff] }
 0x4d7   :  { %2810 = vmatpush3.bf16.msra.mxu0 %v4673_v24 }
 0x4d8   :  { %2811 = vmatprep.subr.bf16.mxu0 %v4676_v27  ;;  %2384 = vmatpush1.bf16.msra.mxu1 %v5212_v43  ;;  %v5256_v43 = vld [vmem:[#allocation63_spill] sm:$0xff] }
 0x4d9   :  { %2385 = vmatprep.subr.bf16.mxu1 %v5213_v46  ;;  %v5257_v46 = vld [vmem:[#allocation62_spill] sm:$0xff] }
 0x4db   :  { %2812 = vmatpush3.bf16.msra.mxu0 %v4681_v48 }
 0x4dc   :  { %2330 = vmatprep.subr.bf16.mxu0 %v5245_v41  ;;  %2386 = vmatpush1.bf16.msra.mxu1 %v5216_v11  ;;  %v5260_v11 = vld [vmem:[#allocation87_spill] sm:$0xff] }
 0x4dd   :  { %2387 = vmatprep.subr.bf16.mxu1 %v5217_v13  ;;  %v5261_v13 = vld [vmem:[#allocation81_spill] sm:$0xff]  ;;  %v5285_v41 = vld [vmem:[#allocation79_spill] sm:$0xff] }
 0x4de   :  { %2131 = vmatmul.mubr.bf16.vlgmr.msra.gmra.mrb[44].mxu0 %v2014_v9  ;;  %v5284_v9 = vld [vmem:[#allocation68_spill] sm:$0xff] }
 0x4df   :  { %2331 = vmatpush1.bf16.msra.mxu0 %v4257_v47  ;;  %v5246_v47 = vld [vmem:[#allocation66_spill] sm:$0xff] }
 0x4e0   :  { %2332 = vmatprep.subr.bf16.mxu0 %v4260_v5  ;;  %2388 = vmatpush1.bf16.msra.mxu1 %v5220_v28  ;;  %v5247_v5 = vld [vmem:[#allocation35_spill] sm:$0xff]  ;;  %v5262_v28 = vld [vmem:[#allocation50_spill] sm:$0xff] }
 0x4e1   :  { %2389 = vmatprep.subr.bf16.mxu1 %v5221_v30  ;;  %v5263_v30 = vld [vmem:[#allocation88_spill] sm:$0xff] }
 0x4e3   :  { %2333 = vmatpush1.bf16.msra.mxu0 %v4265_v10  ;;  %v5248_v10 = vld [vmem:[#allocation18_spill] sm:$0xff] }
 0x4e4   :  { %2334 = vmatprep.subr.bf16.mxu0 %v4268_v44  ;;  %2390 = vmatpush1.bf16.msra.mxu1 %v5222_v18  ;;  %v5249_v44 = vld [vmem:[#allocation53_spill] sm:$0xff] }
 0x4e5   :  { %2391 = vmatprep.subr.bf16.mxu1 %v5223_v58  ;;  %v5264_v18 = vld [vmem:[#allocation89_spill] sm:$0xff]  ;;  %v5265_v58 = vld [vmem:[#allocation39_spill] sm:$0xff] }
 0x4e7   :  { %2335 = vmatpush1.bf16.msra.mxu0 %v4273_v38  ;;  %v5250_v38 = vld [vmem:[#allocation54_spill] sm:$0xff] }
 0x4e8   :  { %2336 = vmatprep.subr.bf16.mxu0 %v4276_v15  ;;  %2392 = vmatpush1.bf16.msra.mxu1 %v5224_v50  ;;  %v5251_v15 = vld [vmem:[#allocation19_spill] sm:$0xff]  ;;  %v5266_v50 = vld [vmem:[#allocation40_spill] sm:$0xff] }
 0x4e9   :  { %2393 = vmatprep.subr.bf16.mxu1 %v5225_v22  ;;  %v5259_v22 = vld [vmem:[#allocation90_spill] sm:$0xff] }
 0x4eb   :  { %2337 = vmatpush1.bf16.msra.mxu0 %v4281_v45  ;;  %v5254_v45 = vld [vmem:[#allocation72_spill] sm:$0xff] }
 0x4ec   :  { %2338 = vmatprep.subr.bf16.mxu0 %v4284_v62  ;;  %2394 = vmatpush1.bf16.msra.mxu1 %v5226_v1  ;;  %v5255_v62 = vld [vmem:[#allocation20_spill] sm:$0xff]  ;;  %v5258_v1 = vld [vmem:[#allocation73_spill] sm:$0xff] }
 0x4ed   :  { %2395 = vmatprep.subr.bf16.mxu1 %v5246_v47  ;;  %v500_v47 = vadd.f32 %v5285_v41, %v5284_v9  ;;  %v2984_v41 = vpop.permute.xlu1 %2983 }
 0x4ef   :  { %2339 = vmatpush1.bf16.msra.mxu0 %v5247_v5 }
 0x4f0   :  { %2340 = vmatprep.subr.bf16.mxu0 %v5248_v10  ;;  %2396 = vmatpush1.bf16.msra.mxu1 %v5249_v44 }
 0x4f1   :  { %2397 = vmatprep.subr.bf16.mxu1 %v5250_v38 }
 0x4f3   :  { %2341 = vmatpush1.bf16.msra.mxu0 %v5251_v15 }
 0x4f4   :  { %2342 = vmatprep.subr.bf16.mxu0 %v5252_v53  ;;  %2398 = vmatpush1.bf16.msra.mxu1 %v5253_v19 }
 0x4f5   :  { %2399 = vmatprep.subr.bf16.mxu1 %v5254_v45 }
 0x4f7   :  { %2343 = vmatpush1.bf16.msra.mxu0 %v5255_v62 }
 0x4f8   :  { %2344 = vmatprep.subr.bf16.mxu0 %v5256_v43  ;;  %2400 = vmatpush1.bf16.msra.mxu1 %v5257_v46 }
 0x4f9   :  { %2401 = vmatprep.subr.bf16.mxu1 %v5258_v1 }
 0x4fb   :  { %2345 = vmatpush1.bf16.msra.mxu0 %v5259_v22 }
 0x4fc   :  { %2346 = vmatprep.subr.bf16.mxu0 %v5260_v11  ;;  %2402 = vmatpush1.bf16.msra.mxu1 %v5261_v13 }
 0x4fd   :  { %2819 = vmatprep.subr.bf16.mxu1 %v5262_v28 }
 0x4ff   :  { %2347 = vmatpush1.bf16.msra.mxu0 %v5263_v30 }
 0x500   :  { %2348 = vmatprep.subr.bf16.mxu0 %v5264_v18 }
 0x503   :  { %2349 = vmatpush1.bf16.msra.mxu0 %v5265_v58 }
 0x504   :  { %2350 = vmatprep.subr.bf16.mxu0 %v5266_v50 }
 0x507   :  { %2351 = vmatpush1.bf16.msra.mxu0 %v5267_v33 }
 0x508   :  { %2352 = vmatprep.subr.bf16.mxu0 %v5268_v20 }
 0x50b   :  { %2353 = vmatpush1.bf16.msra.mxu0 %v5269_v7 }
 0x50c   :  { %2354 = vmatprep.subr.bf16.mxu0 %v5270_v8 }
 0x50f   :  { %2355 = vmatpush1.bf16.msra.mxu0 %v5271_v52 }
 0x510   :  { %2356 = vmatprep.subr.bf16.mxu0 %v5272_v36 }
 0x513   :  { %2357 = vmatpush1.bf16.msra.mxu0 %v5273_v32 }
 0x514   :  { %2358 = vmatprep.subr.bf16.mxu0 %v5274_v37 }
 0x517   :  { %2359 = vmatpush1.bf16.msra.mxu0 %v5275_v60 }
 0x518   :  { %2360 = vmatprep.subr.bf16.mxu0 %v5276_v63 }
 0x51b   :  { %2361 = vmatpush1.bf16.msra.mxu0 %v5277_v25 }
 0x591   :  { %v2050_v5 = vpop.f32.mrb[40].mxu0  ;;  %v2091_v10 = vpop.f32.mrb[36].mxu1 }
 0x592   :  { %v2138_v44 = vadd.f32 %v2050_v5, %v427_v2  ;;  %v2140_v38 = vadd.f32 %v2091_v10, %v498_v4  ;;  %v2052_v15 = vpop.f32.mrb[41].mxu0  ;;  %v2093_v53 = vpop.f32.mrb[37].mxu1  ;;  %v2985_v5 = vunpack.i.l.bf16 %v2984_v41 }
 0x593   :  { %v2139_v19 = vadd.f32 %v2052_v15, %v429_v55  ;;  %v2141_v45 = vadd.f32 %v2093_v53, %v500_v47  ;;  %v2054_v62 = vpop.f32.mrb[42].mxu0  ;;  %v2095_v43 = vpop.f32.mrb[38].mxu1 }
 0x594   :  { %v2699_v46 = vmul.f32 -1.442695, %v2140_v38  ;;  %v2055_v1 = vpop.f32.mrb[43].mxu0  ;;  %v2096_v22 = vpop.f32.mrb[39].mxu1  ;;  %v2697_v13 = vmul.f32 -1.442695, %v2138_v44 }
 0x595   :  { %v2698_v11 = vmul.f32 -1.442695, %v2139_v19  ;;  %v2700_v52 = vmul.f32 -1.442695, %v2141_v45 }
 0x596   :  { %3243 = vpow2.f32 %v2699_v46 }
 0x597   :  { %3245 = vpow2.f32 %v2698_v11 }
 0x598   :  { %3247 = vpow2.f32 %v2697_v13 }
 0x5a0   :  { %v3244_v28 = vpop.eup %3243 }
 0x5a1   :  { %v3246_v30 = vpop.eup %3245  ;;  %v2157_v18 = vadd.f32 1.0, %v3244_v28 }
 0x5a2   :  { %v2156_v58 = vadd.f32 1.0, %v3246_v30  ;;  %v3248_v50 = vpop.eup %3247 }
 0x5a3   :  { %3249 = vrcp.f32 %v2157_v18  ;;  %v2155_v32 = vadd.f32 1.0, %v3248_v50 }
 0x5a4   :  { %3251 = vrcp.f32 %v2156_v58 }
 0x5a5   :  { %3253 = vpow2.f32 %v2700_v52  ;;  %v5287_v52 = vld [vmem:[#allocation84_spill] sm:$0xff] }
 0x5a6   :  { %3255 = vrcp.f32 %v2155_v32 }
 0x5ad   :  { %v3250_v33 = vpop.eup %3249 }
 0x5ae   :  { %v3252_v20 = vpop.eup %3251  ;;  %v2171_v7 = vmul.f32 %v3250_v33, %v4606_v42 }
 0x5af   :  { %v2169_v8 = vmul.f32 %v3252_v20, %v4609_v17  ;;  %v3254_v40 = vpop.eup %3253  ;;  %v2986_v17 = vunpack.i.h.bf16 %v2984_v41 }
 0x5b0   :  { %v3256_v4 = vpop.eup %3255  ;;  %v2158_v42 = vadd.f32 1.0, %v3254_v40 }
 0x5b1   :  { %v2813_v36 = vpop.f32.mrb[44].mxu0 }
 0x5b2   :  { %v2814_v37 = vpop.f32.mrb[45].mxu0 }
 0x5b3   :  { %v2815_v60 = vadd.f32 %v2814_v37, %v2813_v36  ;;  %v2816_v63 = vpop.f32.mrb[46].mxu0 }
 0x5b4   :  { %v2817_v25 = vpop.f32.mrb[47].mxu0 }
 0x5b5   :  { %v2142_v2 = vadd.f32 %v2815_v60, %v5286_v31 }
 0x5b7   :  { %3257 = vtanh.f32 %v2142_v2 }
 0x5b8   :  { %3259 = vrcp.f32 %v2158_v42 }
 0x5c1   :  { %v3258_v12 = vpop.eup %3257 }
 0x5c2   :  { %v2168_v55 = vmul.f32 %v3258_v12, %v3256_v4  ;;  %v3260_v19 = vpop.eup %3259 }
 0x5c4   :  { %v2170_v47 = vadd.f32 %v2169_v8, %v2168_v55 }
 0x5c6   :  { %v2172_v10 = vadd.f32 %v2171_v7, %v2170_v47 }
 0x5c8   :  { %3261 = vtanh.f32 %v2172_v10  ;;  %v2317_v44 = vmul.f32 %v2986_v17, %v2172_v10  ;;  %v2326_v38 = vmul.f32 %v2985_v5, %v2172_v10 }
 0x5ca   :  { %v2318_v15 = vadd.f32 %v2317_v44, %v4612_v35  ;;  %v2327_v53 = vadd.f32 %v2326_v38, %v4615_v14 }
 0x5d2   :  { %v3262_v45 = vpop.eup %3261 }
 0x5d3   :  { %v2174_v62 = vmul.f32 %v3262_v45, %v3260_v19 }
 0x5d5   :  { %v2324_v43 = vmul.f32 %v2985_v5, %v2174_v62  ;;  %v2315_v46 = vmul.f32 %v2986_v17, %v2174_v62 }
 0x5d7   :  { %v2325_v1 = vadd.f32 %v2324_v43, %v4620_v61  ;;  %v2316_v22 = vadd.f32 %v2315_v46, %v4623_v23 }
 0x5d9   :  { %v2329_v11 = vpack.c.bf16 %v2325_v1, %v2325_v1  ;;  %v2328_v13 = vpack.c.bf16 %v2316_v22, %v2316_v22 }
 0x5db   :  { %2362 = vmatprep.mubr.bf16.mxu0 %v2329_v11  ;;  %2403 = vmatprep.mubr.bf16.mxu1 %v2329_v11 }
 0x5dc   :  { %2363 = vmatmul.mubr.bf16.vlgmr.msra.gmra.mrb[12].mxu0 %v2328_v13  ;;  %2404 = vmatmul.mubr.bf16.vlgmr.msra.gmra.mrb[12].mxu1 %v2328_v13 }
 0x5dd   :  { %2820 = vmatpush3.bf16.msra.mxu1 %v4625_v29  ;;  %2444 = vmatprep.mubr.bf16.mxu1 %v2329_v11 }
 0x5de   :  { %2821 = vmatprep.subr.bf16.mxu1 %v4628_v6 }
 0x5e1   :  { %2822 = vmatpush3.bf16.msra.mxu1 %v4633_v54 }
 0x5e2   :  { %2823 = vmatprep.subr.bf16.mxu1 %v4636_v26 }
 0x5e5   :  { %2824 = vmatpush3.bf16.msra.mxu1 %v4641_v3 }
 0x5e6   :  { %2825 = vmatprep.subr.bf16.mxu1 %v4644_v21 }
 0x5e9   :  { %2826 = vmatpush3.bf16.msra.mxu1 %v4649_v34 }
 0x5ea   :  { %2827 = vmatprep.subr.bf16.mxu1 %v4652_v39 }
 0x5ed   :  { %2828 = vmatpush3.bf16.msra.mxu1 %v4657_v0 }
 0x5ee   :  { %2829 = vmatprep.subr.bf16.mxu1 %v4660_v49 }
 0x5f1   :  { %2830 = vmatpush3.bf16.msra.mxu1 %v4665_v56 }
 0x5f2   :  { %2831 = vmatprep.subr.bf16.mxu1 %v4668_v59 }
 0x5f5   :  { %2832 = vmatpush3.bf16.msra.mxu1 %v4673_v24 }
 0x5f6   :  { %2833 = vmatprep.subr.bf16.mxu1 %v4676_v27 }
 0x5f9   :  { %2834 = vmatpush3.bf16.msra.mxu1 %v4681_v48 }
 0x5fc   :  { %2445 = vmatmul.mubr.bf16.vlgmr.msra.gmra.mrb[40].mxu1 %v2328_v13 }
 0x6af   :  { %v2364_v35 = vpop.f32.mrb[12].mxu0  ;;  %v2405_v14 = vpop.f32.mrb[12].mxu1 }
 0x6b0   :  { %v2867_v61 = vadd.f32 %v2405_v14, %v5280_v16  ;;  %v2366_v23 = vpop.f32.mrb[13].mxu0  ;;  %v2407_v29 = vpop.f32.mrb[13].mxu1  ;;  %v2865_v0 = vadd.f32 %v2364_v35, %v5278_v51 }
 0x6b1   :  { %v2866_v6 = vadd.f32 %v2366_v23, %v5282_v57  ;;  %v2368_v54 = vpop.f32.mrb[14].mxu0  ;;  %v2409_v26 = vpop.f32.mrb[14].mxu1  ;;  %v2868_v16 = vadd.f32 %v2407_v29, %v5284_v9 }
 0x6b2   :  { %v2717_v3 = vmul.f32 -1.442695, %v2867_v61  ;;  %v2369_v21 = vpop.f32.mrb[15].mxu0  ;;  %v2410_v34 = vpop.f32.mrb[15].mxu1  ;;  %v2715_v49 = vmul.f32 -1.442695, %v2865_v0 }
 0x6b3   :  { %v2716_v39 = vmul.f32 -1.442695, %v2866_v6  ;;  %v2718_v58 = vmul.f32 -1.442695, %v2868_v16 }
 0x6b4   :  { %3263 = vpow2.f32 %v2717_v3 }
 0x6b5   :  { %3265 = vpow2.f32 %v2716_v39 }
 0x6b6   :  { %3267 = vpow2.f32 %v2715_v49 }
 0x6be   :  { %v3264_v56 = vpop.eup %3263 }
 0x6bf   :  { %v3266_v59 = vpop.eup %3265  ;;  %v2471_v24 = vadd.f32 1.0, %v3264_v56 }
 0x6c0   :  { %v2470_v27 = vadd.f32 1.0, %v3266_v59  ;;  %v3268_v48 = vpop.eup %3267 }
 0x6c1   :  { %3269 = vrcp.f32 %v2471_v24  ;;  %v2469_v33 = vadd.f32 1.0, %v3268_v48 }
 0x6c2   :  { %3271 = vrcp.f32 %v2470_v27 }
 0x6c3   :  { %3273 = vpow2.f32 %v2718_v58 }
 0x6c4   :  { %3275 = vrcp.f32 %v2469_v33 }
 0x6cb   :  { %v3270_v57 = vpop.eup %3269 }
 0x6cc   :  { %v3272_v28 = vpop.eup %3271  ;;  %v2485_v30 = vmul.f32 %v3270_v57, %v2327_v53 }
 0x6cd   :  { %v2483_v18 = vmul.f32 %v3272_v28, %v2318_v15  ;;  %v3274_v32 = vpop.eup %3273 }
 0x6ce   :  { %v3276_v37 = vpop.eup %3275  ;;  %v2472_v63 = vadd.f32 1.0, %v3274_v32 }
 0x6cf   :  { %v2835_v50 = vpop.f32.mrb[40].mxu1 }
 0x6d0   :  { %v2836_v20 = vpop.f32.mrb[41].mxu1 }
 0x6d1   :  { %v2837_v51 = vadd.f32 %v2836_v20, %v2835_v50  ;;  %v2838_v7 = vpop.f32.mrb[42].mxu1 }
 0x6d2   :  { %v2839_v8 = vpop.f32.mrb[43].mxu1 }
 0x6d3   :  { %v2456_v36 = vadd.f32 %v2837_v51, %v5287_v52 }
 0x6d5   :  { %3277 = vtanh.f32 %v2456_v36 }
 0x6d6   :  { %3279 = vrcp.f32 %v2472_v63 }
 0x6df   :  { %v3278_v60 = vpop.eup %3277 }
 0x6e0   :  { %v2482_v9 = vmul.f32 %v3278_v60, %v3276_v37 }
 0x6e2   :  { %v2484_v25 = vadd.f32 %v2483_v18, %v2482_v9 }
 0x6e4   :  { %v2486_v31 = vadd.f32 %v2485_v30, %v2484_v25 }
 0x6e6   :  { %3281 = vtanh.f32 %v2486_v31  ;;  %2489 = vst [vmem:[#allocation8] sm:$0xff] %v2486_v31 }
 0x6e7   :  { %3418 = shalt.err (!%p3415_p6)
}
 0x6e8   :  { %s3419_s8 = scalar_lea.hbm %s4799_s6, 128 }
 0x6e9   :  { %p3420_p7 = scmp.ne.s32.totalorder %s4799_s6, %s3419_s8  ;;  %p3423_p8 = scmp.lt.u32.totalorder %s3419_s8, %s4799_s6 }
 0x6eb   :  { %p3425_p9 = pnand %p3423_p8, %p3420_p7 }
 0x6ed   :  { %3428 = shalt.err (!%p3425_p9)
}
 0x6ee   :  { %2500 = dma.vmem_to_hbm [thread:$0]  %s2498_s27, 128, %s4799_s6, [#allocation5]   ;;  %v3280_v2 = vpop.eup %3279 }
 0x6ef   :  { %s3466_s15 = smov [#allocation9]  }
 0x6f0   :  { %s2507_s16 = sshll.u32 %s3466_s15, 4  ;;  %v3282_v40 = vpop.eup %3281  ;;  %s2508_s16 = int_to_ptr.vmem [resolvable:$true] %s2507_s16 }
 0x6f1   :  { %v2488_v4 = vmul.f32 %v3282_v40, %v3280_v2  ;;  %s3429_s17 = scalar_lea.vmem %s2508_s16, 128  ;;  %p3434_p11 = scmp.lt.s32.totalorder %s2508_s16, %s2508_s16 }
 0x6f2   :  { %p3430_p10 = scmp.ne.s32.totalorder %s2508_s16, %s3429_s17  ;;  %p3435_p12 = scmp.lt.s32.totalorder %s3429_s17, %s3429_s17 }
 0x6f3   :  { %2490 = vst [vmem:[#allocation9] sm:$0xff] %v2488_v4 }
 0x6f4   :  { %p3436_p13 = por %p3435_p12, %p3434_p11 }
 0x6f6   :  { %p3437_p0 = pnand %p3436_p13, %p3430_p10 }
 0x6f8   :  { %3440 = shalt.err (!%p3437_p0)
}
 0x6f9   :  { %s3441_s20 = scalar_lea.hbm %s4800_s7, 128 }
 0x6fa   :  { %p3442_p1 = scmp.ne.s32.totalorder %s4800_s7, %s3441_s20  ;;  %p3445_p2 = scmp.lt.u32.totalorder %s3441_s20, %s4800_s7 }
 0x6fc   :  { %p3447_p3 = pnand %p3445_p2, %p3442_p1 }
 0x6fe   :  { %3450 = shalt.err (!%p3447_p3)
}
 0x6ff   :  { %2510 = dma.vmem_to_hbm [thread:$0]  %s2508_s16, 128, %s4800_s7, [#allocation10]  }
 0x700   :  { %3455 = dma.done.wait [#allocation5], 128  }
 0x701   :  { %3456 = vsyncadd [#allocation5], 4294967168 }
 0x702   :  { %3457 = dma.done.wait [#allocation10], 128  }
 0x703   :  { %3458 = vsyncadd [#allocation10], 4294967168 }
 0x704   :  { %2517 = vsyncpa [#allocation4], 1 }
 0x705   :  { %2518 = vsyncpa [#allocation7], 1 }
 0x706   :  { %2519 = vsyncpa [#allocation5], 1 }
 0x707   :  { %2520 = vsyncpa [#allocation10], 1 }

</bundles_post_ra>
